<compile_context>
chip_gen: v7x
topology: tpu7x:2x2x1
jax: 0.10.0
libtpu: 0.0.40
codegen_flags: <defaults>
</compile_context>

<pallas_src>
import functools

import numpy as np
import jax
import jax.numpy as jnp
from jax.experimental import pallas as pl
from jax.experimental.pallas import tpu as pltpu


def _vmem_spec():
    return pl.BlockSpec(memory_space=pltpu.MemorySpace.VMEM)


# --------------------------------------------------------------------------
# Fused conv + bias + ReLU + 2x2 maxpool kernel (one batch sample per grid step)
# --------------------------------------------------------------------------
def _conv_relu_pool_kernel(x_ref, w_ref, b_ref, sel_ref, o_ref, *, K, W, S, Zlen):
    # x_ref:   (1, C, H*W)    input sample, spatial flattened as h*W + w (lanes)
    # w_ref:   (K*K, OC, C)   conv weight taps, t = kh*K + kw
    # b_ref:   (OC, 1)
    # sel_ref: (Zlen, P)      0/1 selection matrix compacting pooled anchors
    # o_ref:   (1, OC, P)     pooled output, P = (Ho//2)*(Wo//2)
    x = x_ref[0]                                            # (C, H*W)

    # Convolution: accumulate one small MXU matmul per (kh, kw) tap.
    # acc[oc, h*W + w] = sum_{c,kh,kw} w[oc,c,kh,kw] * x[c, (h+kh)*W + (w+kw)]
    # Columns with w >= Wo are garbage (row wrap-around) but are never selected
    # by the pooling selection matrix below.
    acc = None
    for kh in range(K):
        for kw in range(K):
            t = kh * K + kw
            off = kh * W + kw
            x_tap = x[:, off:off + S]                       # (C, S) lane-offset slice
            contrib = jnp.dot(w_ref[t], x_tap,
                              preferred_element_type=jnp.float32)
            acc = contrib if acc is None else acc + contrib

    acc = jnp.maximum(acc + b_ref[...], 0.0)                # bias + ReLU, (OC, S)

    # 2x2 maxpool (stride 2): neighbour max along w, neighbour max along h
    # (row stride W), then exact compaction of the (2*po, 2*pw) anchors via a
    # 0/1 selection matmul (1.0 * value accumulates exactly on the MXU).
    m = jnp.maximum(acc[:, :S - 1], acc[:, 1:S])            # (OC, S-1)
    z = jnp.maximum(m[:, :Zlen], m[:, W:W + Zlen])          # (OC, Zlen)
    o_ref[0] = jnp.dot(z, sel_ref[...], preferred_element_type=jnp.float32)


@functools.lru_cache(maxsize=None)
def _pool_select_matrix(Ho, Wo, W):
    """0/1 matrix selecting flat anchor (2*po)*W + 2*pw -> pooled index po*Wp+pw."""
    Hp, Wp = Ho // 2, Wo // 2
    S = (Ho - 1) * W + Wo
    Zlen = S - 1 - W
    sel = np.zeros((Zlen, Hp * Wp), np.float32)
    for po in range(Hp):
        for pw in range(Wp):
            sel[(2 * po) * W + 2 * pw, po * Wp + pw] = 1.0
    return sel


def conv_relu_pool_pallas(x_flat, w_taps, b_col, H, W, K):
    """x_flat: (N, C, H*W) f32, w_taps: (K*K, OC, C), b_col: (OC, 1).
    Returns (N, OC, (Ho//2)*(Wo//2)) — i.e. the next stage's (N, C, H*W)."""
    N, C, HW = x_flat.shape
    assert HW == H * W
    KK, OC, Cw = w_taps.shape
    assert KK == K * K and Cw == C
    Ho, Wo = H - K + 1, W - K + 1
    Hp, Wp = Ho // 2, Wo // 2
    S = (Ho - 1) * W + Wo            # anchors needed; max tap index == H*W - 1
    Zlen = S - 1 - W
    P = Hp * Wp
    sel = jnp.asarray(_pool_select_matrix(Ho, Wo, W))

    kernel = functools.partial(_conv_relu_pool_kernel, K=K, W=W, S=S, Zlen=Zlen)
    return pl.pallas_call(
        kernel,
        out_shape=jax.ShapeDtypeStruct((N, OC, P), jnp.float32),
        grid=(N,),
        in_specs=[
            pl.BlockSpec((1, C, HW), lambda n: (n, 0, 0)),   # per-sample input
            pl.BlockSpec((KK, OC, C), lambda n: (0, 0, 0)),  # weights (resident)
            pl.BlockSpec((OC, 1), lambda n: (0, 0)),
            pl.BlockSpec((Zlen, P), lambda n: (0, 0)),
        ],
        out_specs=pl.BlockSpec((1, OC, P), lambda n: (n, 0, 0)),
        compiler_params=pltpu.CompilerParams(
            dimension_semantics=("parallel",)),              # 2 TCs on v7x
    )(x_flat, w_taps, b_col, sel)


# --------------------------------------------------------------------------
# Fused 3-layer MLP kernel: relu(x@W1+b1) -> relu(@W2+b2) -> @W3+b3
# --------------------------------------------------------------------------
def _mlp3_kernel(x_ref, w1_ref, b1_ref, w2_ref, b2_ref, w3_ref, b3_ref, o_ref):
    h = jnp.dot(x_ref[...], w1_ref[...], preferred_element_type=jnp.float32)
    h = jnp.maximum(h + b1_ref[...], 0.0)
    h = jnp.dot(h, w2_ref[...], preferred_element_type=jnp.float32)
    h = jnp.maximum(h + b2_ref[...], 0.0)
    o_ref[...] = (jnp.dot(h, w3_ref[...], preferred_element_type=jnp.float32)
                  + b3_ref[...])


def mlp3_pallas(x, w1, b1, w2, b2, w3, b3):
    M = x.shape[0]
    N_out = w3.shape[1]
    return pl.pallas_call(
        _mlp3_kernel,
        out_shape=jax.ShapeDtypeStruct((M, N_out), jnp.float32),
        in_specs=[_vmem_spec()] * 7,
        out_specs=_vmem_spec(),
    )(x, w1, b1, w2, b2, w3, b3)


# ------------------------------- parameters --------------------------------
def init_params(key):
    # Deterministic PyTorch-style U(-1/sqrt(fan_in), 1/sqrt(fan_in)) init.
    def uni(k, shape, fan_in):
        bound = 1.0 / (fan_in ** 0.5)
        return jax.random.uniform(k, shape, jnp.float32, -bound, bound)

    ks = jax.random.split(key, 10)
    return {
        "conv1_w": uni(ks[0], (6, 3, 5, 5), 3 * 25),
        "conv1_b": uni(ks[1], (6,), 3 * 25),
        "conv2_w": uni(ks[2], (16, 6, 5, 5), 6 * 25),
        "conv2_b": uni(ks[3], (16,), 6 * 25),
        "fc1_w":   uni(ks[4], (120, 400), 400),
        "fc1_b":   uni(ks[5], (120,), 400),
        "fc2_w":   uni(ks[6], (84, 120), 120),
        "fc2_b":   uni(ks[7], (84,), 120),
        "fc3_w":   uni(ks[8], (10, 84), 84),
        "fc3_b":   uni(ks[9], (10,), 84),
    }


def prepare_params(p):
    """One-time layout prep: conv weights to tap-major (K*K, OC, C), conv biases
    to (OC, 1); FC weights pre-transposed to (in, out), biases to (1, out)."""
    def conv_prep(w, b):
        OC, C, KH, KW = w.shape
        w_taps = jnp.transpose(w, (2, 3, 0, 1)).reshape(KH * KW, OC, C)
        return w_taps.astype(jnp.float32), b.reshape(OC, 1).astype(jnp.float32)

    c1w, c1b = conv_prep(p["conv1_w"], p["conv1_b"])
    c2w, c2b = conv_prep(p["conv2_w"], p["conv2_b"])
    return {
        "c1_w": c1w, "c1_b": c1b,
        "c2_w": c2w, "c2_b": c2b,
        "fc1_w": p["fc1_w"].T, "fc1_b": p["fc1_b"].reshape(1, -1),
        "fc2_w": p["fc2_w"].T, "fc2_b": p["fc2_b"].reshape(1, -1),
        "fc3_w": p["fc3_w"].T, "fc3_b": p["fc3_b"].reshape(1, -1),
    }


# -------------------------------- forward ----------------------------------
def convnet_forward(pp, x):
    N, C, H, W = x.shape                        # (N, 3, 32, 32)
    K = 5
    x1 = x.reshape(N, C, H * W)                 # flatten spatial once (cheap glue)

    h1 = conv_relu_pool_pallas(x1, pp["c1_w"], pp["c1_b"], H, W, K)   # (N, 6, 14*14)
    H1, W1 = (H - K + 1) // 2, (W - K + 1) // 2
    # h1's last dim is already the flattened (h, w) map -> feed stage 2 directly.
    h2 = conv_relu_pool_pallas(h1, pp["c2_w"], pp["c2_b"], H1, W1, K)  # (N, 16, 5*5)

    flat = h2.reshape(N, -1)                    # (N, 400) in (c, h, w) order == torch .view
    return mlp3_pallas(flat, pp["fc1_w"], pp["fc1_b"],
                       pp["fc2_w"], pp["fc2_b"],
                       pp["fc3_w"], pp["fc3_b"])                        # (N, 10)


if __name__ == "__main__":
    # 32x32 spatial is required by the module (fc1 expects 16*5*5 features).
    x = jax.random.normal(jax.random.PRNGKey(0), (2, 3, 32, 32), dtype=jnp.float32)
    params = prepare_params(init_params(jax.random.PRNGKey(42)))

    fwd = jax.jit(convnet_forward)
    logits = fwd(params, x)
    jax.block_until_ready(logits)

    assert logits.shape == (2, 10), logits.shape
    assert logits.dtype == jnp.float32
    print("KERNEL_OK")
</pallas_src>

<mosaic_0001>
module attributes {stable_mosaic.version = 11 : i64} {
  func.func @_conv_relu_pool_kernel(%arg0: i32, %arg1: memref<1x3x1024xf32, #tpu.memory_space<vmem>>, %arg2: memref<25x6x3xf32, #tpu.memory_space<vmem>>, %arg3: memref<6x1xf32, #tpu.memory_space<vmem>>, %arg4: memref<859x196xf32, #tpu.memory_space<vmem>>, %arg5: memref<1x6x196xf32, #tpu.memory_space<vmem>>) attributes {dimension_semantics = [#tpu.dimension_semantics<parallel>], iteration_bounds = array<i64: 2>, scalar_prefetch = 0 : i64, scratch_operands = 0 : i64, tpu.core_type = #tpu.core_type<tc>, window_params = [{transform_indices = @transform_0, window_bounds = array<i64: 1, 3, 1024>}, {pipeline_mode = #tpu.pipeline_mode<synchronous>, transform_indices = @transform_1, window_bounds = array<i64: 25, 6, 3>}, {pipeline_mode = #tpu.pipeline_mode<synchronous>, transform_indices = @transform_2, window_bounds = array<i64: 6, 1>}, {pipeline_mode = #tpu.pipeline_mode<synchronous>, transform_indices = @transform_3, window_bounds = array<i64: 859, 196>}, {transform_indices = @transform_4, window_bounds = array<i64: 1, 6, 196>}]} {
    %c0 = arith.constant 0 : index
    %c0_0 = arith.constant 0 : index
    %c0_1 = arith.constant 0 : index
    %0 = vector.load %arg1[%c0, %c0_0, %c0_1] : memref<1x3x1024xf32, #tpu.memory_space<vmem>>, vector<1x3x1024xf32>
    %1 = vector.shape_cast %0 : vector<1x3x1024xf32> to vector<3x1024xf32>
    %2 = vector.extract_strided_slice %1 {offsets = [0, 0], sizes = [3, 892], strides = [1, 1]} : vector<3x1024xf32> to vector<3x892xf32>
    %c0_2 = arith.constant 0 : index
    %c0_3 = arith.constant 0 : index
    %c0_4 = arith.constant 0 : index
    %3 = vector.load %arg2[%c0_2, %c0_3, %c0_4] : memref<25x6x3xf32, #tpu.memory_space<vmem>>, vector<1x6x3xf32>
    %4 = vector.shape_cast %3 : vector<1x6x3xf32> to vector<6x3xf32>
    %cst = arith.constant dense<0.000000e+00> : vector<6x892xf32>
    %5 = tpu.matmul %4, %2, %cst {dimension_numbers = #tpu.dot_dimension_numbers<[1], [0], [0], [1], [0, 0, 1, 1], [], []>} : vector<6x3xf32>, vector<3x892xf32>, vector<6x892xf32> -> vector<6x892xf32>
    %6 = vector.extract_strided_slice %1 {offsets = [0, 1], sizes = [3, 892], strides = [1, 1]} : vector<3x1024xf32> to vector<3x892xf32>
    %c1 = arith.constant 1 : index
    %c0_5 = arith.constant 0 : index
    %c0_6 = arith.constant 0 : index
    %7 = vector.load %arg2[%c1, %c0_5, %c0_6] : memref<25x6x3xf32, #tpu.memory_space<vmem>>, vector<1x6x3xf32>
    %8 = vector.shape_cast %7 : vector<1x6x3xf32> to vector<6x3xf32>
    %cst_7 = arith.constant dense<0.000000e+00> : vector<6x892xf32>
    %9 = tpu.matmul %8, %6, %cst_7 {dimension_numbers = #tpu.dot_dimension_numbers<[1], [0], [0], [1], [0, 0, 1, 1], [], []>} : vector<6x3xf32>, vector<3x892xf32>, vector<6x892xf32> -> vector<6x892xf32>
    %10 = arith.addf %5, %9 : vector<6x892xf32>
    %11 = vector.extract_strided_slice %1 {offsets = [0, 2], sizes = [3, 892], strides = [1, 1]} : vector<3x1024xf32> to vector<3x892xf32>
    %c2 = arith.constant 2 : index
    %c0_8 = arith.constant 0 : index
    %c0_9 = arith.constant 0 : index
    %12 = vector.load %arg2[%c2, %c0_8, %c0_9] : memref<25x6x3xf32, #tpu.memory_space<vmem>>, vector<1x6x3xf32>
    %13 = vector.shape_cast %12 : vector<1x6x3xf32> to vector<6x3xf32>
    %cst_10 = arith.constant dense<0.000000e+00> : vector<6x892xf32>
    %14 = tpu.matmul %13, %11, %cst_10 {dimension_numbers = #tpu.dot_dimension_numbers<[1], [0], [0], [1], [0, 0, 1, 1], [], []>} : vector<6x3xf32>, vector<3x892xf32>, vector<6x892xf32> -> vector<6x892xf32>
    %15 = arith.addf %10, %14 : vector<6x892xf32>
    %16 = vector.extract_strided_slice %1 {offsets = [0, 3], sizes = [3, 892], strides = [1, 1]} : vector<3x1024xf32> to vector<3x892xf32>
    %c3 = arith.constant 3 : index
    %c0_11 = arith.constant 0 : index
    %c0_12 = arith.constant 0 : index
    %17 = vector.load %arg2[%c3, %c0_11, %c0_12] : memref<25x6x3xf32, #tpu.memory_space<vmem>>, vector<1x6x3xf32>
    %18 = vector.shape_cast %17 : vector<1x6x3xf32> to vector<6x3xf32>
    %cst_13 = arith.constant dense<0.000000e+00> : vector<6x892xf32>
    %19 = tpu.matmul %18, %16, %cst_13 {dimension_numbers = #tpu.dot_dimension_numbers<[1], [0], [0], [1], [0, 0, 1, 1], [], []>} : vector<6x3xf32>, vector<3x892xf32>, vector<6x892xf32> -> vector<6x892xf32>
    %20 = arith.addf %15, %19 : vector<6x892xf32>
    %21 = vector.extract_strided_slice %1 {offsets = [0, 4], sizes = [3, 892], strides = [1, 1]} : vector<3x1024xf32> to vector<3x892xf32>
    %c4 = arith.constant 4 : index
    %c0_14 = arith.constant 0 : index
    %c0_15 = arith.constant 0 : index
    %22 = vector.load %arg2[%c4, %c0_14, %c0_15] : memref<25x6x3xf32, #tpu.memory_space<vmem>>, vector<1x6x3xf32>
    %23 = vector.shape_cast %22 : vector<1x6x3xf32> to vector<6x3xf32>
    %cst_16 = arith.constant dense<0.000000e+00> : vector<6x892xf32>
    %24 = tpu.matmul %23, %21, %cst_16 {dimension_numbers = #tpu.dot_dimension_numbers<[1], [0], [0], [1], [0, 0, 1, 1], [], []>} : vector<6x3xf32>, vector<3x892xf32>, vector<6x892xf32> -> vector<6x892xf32>
    %25 = arith.addf %20, %24 : vector<6x892xf32>
    %26 = vector.extract_strided_slice %1 {offsets = [0, 32], sizes = [3, 892], strides = [1, 1]} : vector<3x1024xf32> to vector<3x892xf32>
    %c5 = arith.constant 5 : index
    %c0_17 = arith.constant 0 : index
    %c0_18 = arith.constant 0 : index
    %27 = vector.load %arg2[%c5, %c0_17, %c0_18] : memref<25x6x3xf32, #tpu.memory_space<vmem>>, vector<1x6x3xf32>
    %28 = vector.shape_cast %27 : vector<1x6x3xf32> to vector<6x3xf32>
    %cst_19 = arith.constant dense<0.000000e+00> : vector<6x892xf32>
    %29 = tpu.matmul %28, %26, %cst_19 {dimension_numbers = #tpu.dot_dimension_numbers<[1], [0], [0], [1], [0, 0, 1, 1], [], []>} : vector<6x3xf32>, vector<3x892xf32>, vector<6x892xf32> -> vector<6x892xf32>
    %30 = arith.addf %25, %29 : vector<6x892xf32>
    %31 = vector.extract_strided_slice %1 {offsets = [0, 33], sizes = [3, 892], strides = [1, 1]} : vector<3x1024xf32> to vector<3x892xf32>
    %c6 = arith.constant 6 : index
    %c0_20 = arith.constant 0 : index
    %c0_21 = arith.constant 0 : index
    %32 = vector.load %arg2[%c6, %c0_20, %c0_21] : memref<25x6x3xf32, #tpu.memory_space<vmem>>, vector<1x6x3xf32>
    %33 = vector.shape_cast %32 : vector<1x6x3xf32> to vector<6x3xf32>
    %cst_22 = arith.constant dense<0.000000e+00> : vector<6x892xf32>
    %34 = tpu.matmul %33, %31, %cst_22 {dimension_numbers = #tpu.dot_dimension_numbers<[1], [0], [0], [1], [0, 0, 1, 1], [], []>} : vector<6x3xf32>, vector<3x892xf32>, vector<6x892xf32> -> vector<6x892xf32>
    %35 = arith.addf %30, %34 : vector<6x892xf32>
    %36 = vector.extract_strided_slice %1 {offsets = [0, 34], sizes = [3, 892], strides = [1, 1]} : vector<3x1024xf32> to vector<3x892xf32>
    %c7 = arith.constant 7 : index
    %c0_23 = arith.constant 0 : index
    %c0_24 = arith.constant 0 : index
    %37 = vector.load %arg2[%c7, %c0_23, %c0_24] : memref<25x6x3xf32, #tpu.memory_space<vmem>>, vector<1x6x3xf32>
    %38 = vector.shape_cast %37 : vector<1x6x3xf32> to vector<6x3xf32>
    %cst_25 = arith.constant dense<0.000000e+00> : vector<6x892xf32>
    %39 = tpu.matmul %38, %36, %cst_25 {dimension_numbers = #tpu.dot_dimension_numbers<[1], [0], [0], [1], [0, 0, 1, 1], [], []>} : vector<6x3xf32>, vector<3x892xf32>, vector<6x892xf32> -> vector<6x892xf32>
    %40 = arith.addf %35, %39 : vector<6x892xf32>
    %41 = vector.extract_strided_slice %1 {offsets = [0, 35], sizes = [3, 892], strides = [1, 1]} : vector<3x1024xf32> to vector<3x892xf32>
    %c8 = arith.constant 8 : index
    %c0_26 = arith.constant 0 : index
    %c0_27 = arith.constant 0 : index
    %42 = vector.load %arg2[%c8, %c0_26, %c0_27] : memref<25x6x3xf32, #tpu.memory_space<vmem>>, vector<1x6x3xf32>
    %43 = vector.shape_cast %42 : vector<1x6x3xf32> to vector<6x3xf32>
    %cst_28 = arith.constant dense<0.000000e+00> : vector<6x892xf32>
    %44 = tpu.matmul %43, %41, %cst_28 {dimension_numbers = #tpu.dot_dimension_numbers<[1], [0], [0], [1], [0, 0, 1, 1], [], []>} : vector<6x3xf32>, vector<3x892xf32>, vector<6x892xf32> -> vector<6x892xf32>
    %45 = arith.addf %40, %44 : vector<6x892xf32>
    %46 = vector.extract_strided_slice %1 {offsets = [0, 36], sizes = [3, 892], strides = [1, 1]} : vector<3x1024xf32> to vector<3x892xf32>
    %c9 = arith.constant 9 : index
    %c0_29 = arith.constant 0 : index
    %c0_30 = arith.constant 0 : index
    %47 = vector.load %arg2[%c9, %c0_29, %c0_30] : memref<25x6x3xf32, #tpu.memory_space<vmem>>, vector<1x6x3xf32>
    %48 = vector.shape_cast %47 : vector<1x6x3xf32> to vector<6x3xf32>
    %cst_31 = arith.constant dense<0.000000e+00> : vector<6x892xf32>
    %49 = tpu.matmul %48, %46, %cst_31 {dimension_numbers = #tpu.dot_dimension_numbers<[1], [0], [0], [1], [0, 0, 1, 1], [], []>} : vector<6x3xf32>, vector<3x892xf32>, vector<6x892xf32> -> vector<6x892xf32>
    %50 = arith.addf %45, %49 : vector<6x892xf32>
    %51 = vector.extract_strided_slice %1 {offsets = [0, 64], sizes = [3, 892], strides = [1, 1]} : vector<3x1024xf32> to vector<3x892xf32>
    %c10 = arith.constant 10 : index
    %c0_32 = arith.constant 0 : index
    %c0_33 = arith.constant 0 : index
    %52 = vector.load %arg2[%c10, %c0_32, %c0_33] : memref<25x6x3xf32, #tpu.memory_space<vmem>>, vector<1x6x3xf32>
    %53 = vector.shape_cast %52 : vector<1x6x3xf32> to vector<6x3xf32>
    %cst_34 = arith.constant dense<0.000000e+00> : vector<6x892xf32>
    %54 = tpu.matmul %53, %51, %cst_34 {dimension_numbers = #tpu.dot_dimension_numbers<[1], [0], [0], [1], [0, 0, 1, 1], [], []>} : vector<6x3xf32>, vector<3x892xf32>, vector<6x892xf32> -> vector<6x892xf32>
    %55 = arith.addf %50, %54 : vector<6x892xf32>
    %56 = vector.extract_strided_slice %1 {offsets = [0, 65], sizes = [3, 892], strides = [1, 1]} : vector<3x1024xf32> to vector<3x892xf32>
    %c11 = arith.constant 11 : index
    %c0_35 = arith.constant 0 : index
    %c0_36 = arith.constant 0 : index
    %57 = vector.load %arg2[%c11, %c0_35, %c0_36] : memref<25x6x3xf32, #tpu.memory_space<vmem>>, vector<1x6x3xf32>
    %58 = vector.shape_cast %57 : vector<1x6x3xf32> to vector<6x3xf32>
    %cst_37 = arith.constant dense<0.000000e+00> : vector<6x892xf32>
    %59 = tpu.matmul %58, %56, %cst_37 {dimension_numbers = #tpu.dot_dimension_numbers<[1], [0], [0], [1], [0, 0, 1, 1], [], []>} : vector<6x3xf32>, vector<3x892xf32>, vector<6x892xf32> -> vector<6x892xf32>
    %60 = arith.addf %55, %59 : vector<6x892xf32>
    %61 = vector.extract_strided_slice %1 {offsets = [0, 66], sizes = [3, 892], strides = [1, 1]} : vector<3x1024xf32> to vector<3x892xf32>
    %c12 = arith.constant 12 : index
    %c0_38 = arith.constant 0 : index
    %c0_39 = arith.constant 0 : index
    %62 = vector.load %arg2[%c12, %c0_38, %c0_39] : memref<25x6x3xf32, #tpu.memory_space<vmem>>, vector<1x6x3xf32>
    %63 = vector.shape_cast %62 : vector<1x6x3xf32> to vector<6x3xf32>
    %cst_40 = arith.constant dense<0.000000e+00> : vector<6x892xf32>
    %64 = tpu.matmul %63, %61, %cst_40 {dimension_numbers = #tpu.dot_dimension_numbers<[1], [0], [0], [1], [0, 0, 1, 1], [], []>} : vector<6x3xf32>, vector<3x892xf32>, vector<6x892xf32> -> vector<6x892xf32>
    %65 = arith.addf %60, %64 : vector<6x892xf32>
    %66 = vector.extract_strided_slice %1 {offsets = [0, 67], sizes = [3, 892], strides = [1, 1]} : vector<3x1024xf32> to vector<3x892xf32>
    %c13 = arith.constant 13 : index
    %c0_41 = arith.constant 0 : index
    %c0_42 = arith.constant 0 : index
    %67 = vector.load %arg2[%c13, %c0_41, %c0_42] : memref<25x6x3xf32, #tpu.memory_space<vmem>>, vector<1x6x3xf32>
    %68 = vector.shape_cast %67 : vector<1x6x3xf32> to vector<6x3xf32>
    %cst_43 = arith.constant dense<0.000000e+00> : vector<6x892xf32>
    %69 = tpu.matmul %68, %66, %cst_43 {dimension_numbers = #tpu.dot_dimension_numbers<[1], [0], [0], [1], [0, 0, 1, 1], [], []>} : vector<6x3xf32>, vector<3x892xf32>, vector<6x892xf32> -> vector<6x892xf32>
    %70 = arith.addf %65, %69 : vector<6x892xf32>
    %71 = vector.extract_strided_slice %1 {offsets = [0, 68], sizes = [3, 892], strides = [1, 1]} : vector<3x1024xf32> to vector<3x892xf32>
    %c14 = arith.constant 14 : index
    %c0_44 = arith.constant 0 : index
    %c0_45 = arith.constant 0 : index
    %72 = vector.load %arg2[%c14, %c0_44, %c0_45] : memref<25x6x3xf32, #tpu.memory_space<vmem>>, vector<1x6x3xf32>
    %73 = vector.shape_cast %72 : vector<1x6x3xf32> to vector<6x3xf32>
    %cst_46 = arith.constant dense<0.000000e+00> : vector<6x892xf32>
    %74 = tpu.matmul %73, %71, %cst_46 {dimension_numbers = #tpu.dot_dimension_numbers<[1], [0], [0], [1], [0, 0, 1, 1], [], []>} : vector<6x3xf32>, vector<3x892xf32>, vector<6x892xf32> -> vector<6x892xf32>
    %75 = arith.addf %70, %74 : vector<6x892xf32>
    %76 = vector.extract_strided_slice %1 {offsets = [0, 96], sizes = [3, 892], strides = [1, 1]} : vector<3x1024xf32> to vector<3x892xf32>
    %c15 = arith.constant 15 : index
    %c0_47 = arith.constant 0 : index
    %c0_48 = arith.constant 0 : index
    %77 = vector.load %arg2[%c15, %c0_47, %c0_48] : memref<25x6x3xf32, #tpu.memory_space<vmem>>, vector<1x6x3xf32>
    %78 = vector.shape_cast %77 : vector<1x6x3xf32> to vector<6x3xf32>
    %cst_49 = arith.constant dense<0.000000e+00> : vector<6x892xf32>
    %79 = tpu.matmul %78, %76, %cst_49 {dimension_numbers = #tpu.dot_dimension_numbers<[1], [0], [0], [1], [0, 0, 1, 1], [], []>} : vector<6x3xf32>, vector<3x892xf32>, vector<6x892xf32> -> vector<6x892xf32>
    %80 = arith.addf %75, %79 : vector<6x892xf32>
    %81 = vector.extract_strided_slice %1 {offsets = [0, 97], sizes = [3, 892], strides = [1, 1]} : vector<3x1024xf32> to vector<3x892xf32>
    %c16 = arith.constant 16 : index
    %c0_50 = arith.constant 0 : index
    %c0_51 = arith.constant 0 : index
    %82 = vector.load %arg2[%c16, %c0_50, %c0_51] : memref<25x6x3xf32, #tpu.memory_space<vmem>>, vector<1x6x3xf32>
    %83 = vector.shape_cast %82 : vector<1x6x3xf32> to vector<6x3xf32>
    %cst_52 = arith.constant dense<0.000000e+00> : vector<6x892xf32>
    %84 = tpu.matmul %83, %81, %cst_52 {dimension_numbers = #tpu.dot_dimension_numbers<[1], [0], [0], [1], [0, 0, 1, 1], [], []>} : vector<6x3xf32>, vector<3x892xf32>, vector<6x892xf32> -> vector<6x892xf32>
    %85 = arith.addf %80, %84 : vector<6x892xf32>
    %86 = vector.extract_strided_slice %1 {offsets = [0, 98], sizes = [3, 892], strides = [1, 1]} : vector<3x1024xf32> to vector<3x892xf32>
    %c17 = arith.constant 17 : index
    %c0_53 = arith.constant 0 : index
    %c0_54 = arith.constant 0 : index
    %87 = vector.load %arg2[%c17, %c0_53, %c0_54] : memref<25x6x3xf32, #tpu.memory_space<vmem>>, vector<1x6x3xf32>
    %88 = vector.shape_cast %87 : vector<1x6x3xf32> to vector<6x3xf32>
    %cst_55 = arith.constant dense<0.000000e+00> : vector<6x892xf32>
    %89 = tpu.matmul %88, %86, %cst_55 {dimension_numbers = #tpu.dot_dimension_numbers<[1], [0], [0], [1], [0, 0, 1, 1], [], []>} : vector<6x3xf32>, vector<3x892xf32>, vector<6x892xf32> -> vector<6x892xf32>
    %90 = arith.addf %85, %89 : vector<6x892xf32>
    %91 = vector.extract_strided_slice %1 {offsets = [0, 99], sizes = [3, 892], strides = [1, 1]} : vector<3x1024xf32> to vector<3x892xf32>
    %c18 = arith.constant 18 : index
    %c0_56 = arith.constant 0 : index
    %c0_57 = arith.constant 0 : index
    %92 = vector.load %arg2[%c18, %c0_56, %c0_57] : memref<25x6x3xf32, #tpu.memory_space<vmem>>, vector<1x6x3xf32>
    %93 = vector.shape_cast %92 : vector<1x6x3xf32> to vector<6x3xf32>
    %cst_58 = arith.constant dense<0.000000e+00> : vector<6x892xf32>
    %94 = tpu.matmul %93, %91, %cst_58 {dimension_numbers = #tpu.dot_dimension_numbers<[1], [0], [0], [1], [0, 0, 1, 1], [], []>} : vector<6x3xf32>, vector<3x892xf32>, vector<6x892xf32> -> vector<6x892xf32>
    %95 = arith.addf %90, %94 : vector<6x892xf32>
    %96 = vector.extract_strided_slice %1 {offsets = [0, 100], sizes = [3, 892], strides = [1, 1]} : vector<3x1024xf32> to vector<3x892xf32>
    %c19 = arith.constant 19 : index
    %c0_59 = arith.constant 0 : index
    %c0_60 = arith.constant 0 : index
    %97 = vector.load %arg2[%c19, %c0_59, %c0_60] : memref<25x6x3xf32, #tpu.memory_space<vmem>>, vector<1x6x3xf32>
    %98 = vector.shape_cast %97 : vector<1x6x3xf32> to vector<6x3xf32>
    %cst_61 = arith.constant dense<0.000000e+00> : vector<6x892xf32>
    %99 = tpu.matmul %98, %96, %cst_61 {dimension_numbers = #tpu.dot_dimension_numbers<[1], [0], [0], [1], [0, 0, 1, 1], [], []>} : vector<6x3xf32>, vector<3x892xf32>, vector<6x892xf32> -> vector<6x892xf32>
    %100 = arith.addf %95, %99 : vector<6x892xf32>
    %101 = vector.extract_strided_slice %1 {offsets = [0, 128], sizes = [3, 892], strides = [1, 1]} : vector<3x1024xf32> to vector<3x892xf32>
    %c20 = arith.constant 20 : index
    %c0_62 = arith.constant 0 : index
    %c0_63 = arith.constant 0 : index
    %102 = vector.load %arg2[%c20, %c0_62, %c0_63] : memref<25x6x3xf32, #tpu.memory_space<vmem>>, vector<1x6x3xf32>
    %103 = vector.shape_cast %102 : vector<1x6x3xf32> to vector<6x3xf32>
    %cst_64 = arith.constant dense<0.000000e+00> : vector<6x892xf32>
    %104 = tpu.matmul %103, %101, %cst_64 {dimension_numbers = #tpu.dot_dimension_numbers<[1], [0], [0], [1], [0, 0, 1, 1], [], []>} : vector<6x3xf32>, vector<3x892xf32>, vector<6x892xf32> -> vector<6x892xf32>
    %105 = arith.addf %100, %104 : vector<6x892xf32>
    %106 = vector.extract_strided_slice %1 {offsets = [0, 129], sizes = [3, 892], strides = [1, 1]} : vector<3x1024xf32> to vector<3x892xf32>
    %c21 = arith.constant 21 : index
    %c0_65 = arith.constant 0 : index
    %c0_66 = arith.constant 0 : index
    %107 = vector.load %arg2[%c21, %c0_65, %c0_66] : memref<25x6x3xf32, #tpu.memory_space<vmem>>, vector<1x6x3xf32>
    %108 = vector.shape_cast %107 : vector<1x6x3xf32> to vector<6x3xf32>
    %cst_67 = arith.constant dense<0.000000e+00> : vector<6x892xf32>
    %109 = tpu.matmul %108, %106, %cst_67 {dimension_numbers = #tpu.dot_dimension_numbers<[1], [0], [0], [1], [0, 0, 1, 1], [], []>} : vector<6x3xf32>, vector<3x892xf32>, vector<6x892xf32> -> vector<6x892xf32>
    %110 = arith.addf %105, %109 : vector<6x892xf32>
    %111 = vector.extract_strided_slice %1 {offsets = [0, 130], sizes = [3, 892], strides = [1, 1]} : vector<3x1024xf32> to vector<3x892xf32>
    %c22 = arith.constant 22 : index
    %c0_68 = arith.constant 0 : index
    %c0_69 = arith.constant 0 : index
    %112 = vector.load %arg2[%c22, %c0_68, %c0_69] : memref<25x6x3xf32, #tpu.memory_space<vmem>>, vector<1x6x3xf32>
    %113 = vector.shape_cast %112 : vector<1x6x3xf32> to vector<6x3xf32>
    %cst_70 = arith.constant dense<0.000000e+00> : vector<6x892xf32>
    %114 = tpu.matmul %113, %111, %cst_70 {dimension_numbers = #tpu.dot_dimension_numbers<[1], [0], [0], [1], [0, 0, 1, 1], [], []>} : vector<6x3xf32>, vector<3x892xf32>, vector<6x892xf32> -> vector<6x892xf32>
    %115 = arith.addf %110, %114 : vector<6x892xf32>
    %116 = vector.extract_strided_slice %1 {offsets = [0, 131], sizes = [3, 892], strides = [1, 1]} : vector<3x1024xf32> to vector<3x892xf32>
    %c23 = arith.constant 23 : index
    %c0_71 = arith.constant 0 : index
    %c0_72 = arith.constant 0 : index
    %117 = vector.load %arg2[%c23, %c0_71, %c0_72] : memref<25x6x3xf32, #tpu.memory_space<vmem>>, vector<1x6x3xf32>
    %118 = vector.shape_cast %117 : vector<1x6x3xf32> to vector<6x3xf32>
    %cst_73 = arith.constant dense<0.000000e+00> : vector<6x892xf32>
    %119 = tpu.matmul %118, %116, %cst_73 {dimension_numbers = #tpu.dot_dimension_numbers<[1], [0], [0], [1], [0, 0, 1, 1], [], []>} : vector<6x3xf32>, vector<3x892xf32>, vector<6x892xf32> -> vector<6x892xf32>
    %120 = arith.addf %115, %119 : vector<6x892xf32>
    %121 = vector.extract_strided_slice %1 {offsets = [0, 132], sizes = [3, 892], strides = [1, 1]} : vector<3x1024xf32> to vector<3x892xf32>
    %c24 = arith.constant 24 : index
    %c0_74 = arith.constant 0 : index
    %c0_75 = arith.constant 0 : index
    %122 = vector.load %arg2[%c24, %c0_74, %c0_75] : memref<25x6x3xf32, #tpu.memory_space<vmem>>, vector<1x6x3xf32>
    %123 = vector.shape_cast %122 : vector<1x6x3xf32> to vector<6x3xf32>
    %cst_76 = arith.constant dense<0.000000e+00> : vector<6x892xf32>
    %124 = tpu.matmul %123, %121, %cst_76 {dimension_numbers = #tpu.dot_dimension_numbers<[1], [0], [0], [1], [0, 0, 1, 1], [], []>} : vector<6x3xf32>, vector<3x892xf32>, vector<6x892xf32> -> vector<6x892xf32>
    %125 = arith.addf %120, %124 : vector<6x892xf32>
    %c0_77 = arith.constant 0 : index
    %c0_78 = arith.constant 0 : index
    %126 = vector.load %arg3[%c0_77, %c0_78] : memref<6x1xf32, #tpu.memory_space<vmem>>, vector<6x1xf32>
    %127 = vector.broadcast %126 : vector<6x1xf32> to vector<6x892xf32>
    %128 = arith.addf %125, %127 : vector<6x892xf32>
    %cst_79 = arith.constant 0.000000e+00 : f32
    %129 = vector.broadcast %cst_79 : f32 to vector<6x892xf32>
    %130 = arith.maximumf %128, %129 : vector<6x892xf32>
    %131 = vector.extract_strided_slice %130 {offsets = [0, 0], sizes = [6, 891], strides = [1, 1]} : vector<6x892xf32> to vector<6x891xf32>
    %132 = vector.extract_strided_slice %130 {offsets = [0, 1], sizes = [6, 891], strides = [1, 1]} : vector<6x892xf32> to vector<6x891xf32>
    %133 = arith.maximumf %131, %132 : vector<6x891xf32>
    %134 = vector.extract_strided_slice %133 {offsets = [0, 0], sizes = [6, 859], strides = [1, 1]} : vector<6x891xf32> to vector<6x859xf32>
    %135 = vector.extract_strided_slice %133 {offsets = [0, 32], sizes = [6, 859], strides = [1, 1]} : vector<6x891xf32> to vector<6x859xf32>
    %136 = arith.maximumf %134, %135 : vector<6x859xf32>
    %c0_80 = arith.constant 0 : index
    %c0_81 = arith.constant 0 : index
    %137 = vector.load %arg4[%c0_80, %c0_81] : memref<859x196xf32, #tpu.memory_space<vmem>>, vector<859x196xf32>
    %cst_82 = arith.constant dense<0.000000e+00> : vector<6x196xf32>
    %138 = tpu.matmul %136, %137, %cst_82 {dimension_numbers = #tpu.dot_dimension_numbers<[1], [0], [0], [1], [0, 0, 1, 1], [], []>} : vector<6x859xf32>, vector<859x196xf32>, vector<6x196xf32> -> vector<6x196xf32>
    %c0_83 = arith.constant 0 : index
    %c0_84 = arith.constant 0 : index
    %c0_85 = arith.constant 0 : index
    %139 = vector.load %arg5[%c0_83, %c0_84, %c0_85] : memref<1x6x196xf32, #tpu.memory_space<vmem>>, vector<1x6x196xf32>
    %140 = vector.shape_cast %139 : vector<1x6x196xf32> to vector<6x196xf32>
    %141 = vector.shape_cast %138 : vector<6x196xf32> to vector<1x6x196xf32>
    tpu.vector_store %arg5[%c0_83, %c0_84, %c0_85], %141 {strides = array<i32>} : memref<1x6x196xf32, #tpu.memory_space<vmem>>, vector<1x6x196xf32>,
    return
  }
  func.func @transform_0(%arg0: i32) -> (i32, i32, i32) {
    %c0_i32 = arith.constant 0 : i32
    %c0_i32_0 = arith.constant 0 : i32
    %c0_i32_1 = arith.constant 0 : i32
    return %arg0, %c0_i32, %c0_i32_0 : i32, i32, i32
  }
  func.func @transform_1(%arg0: i32) -> (i32, i32, i32) {
    %c0_i32 = arith.constant 0 : i32
    %c0_i32_0 = arith.constant 0 : i32
    %c0_i32_1 = arith.constant 0 : i32
    %c0_i32_2 = arith.constant 0 : i32
    return %c0_i32, %c0_i32_0, %c0_i32_1 : i32, i32, i32
  }
  func.func @transform_2(%arg0: i32) -> (i32, i32) {
    %c0_i32 = arith.constant 0 : i32
    %c0_i32_0 = arith.constant 0 : i32
    %c0_i32_1 = arith.constant 0 : i32
    return %c0_i32, %c0_i32_0 : i32, i32
  }
  func.func @transform_3(%arg0: i32) -> (i32, i32) {
    %c0_i32 = arith.constant 0 : i32
    %c0_i32_0 = arith.constant 0 : i32
    %c0_i32_1 = arith.constant 0 : i32
    return %c0_i32, %c0_i32_0 : i32, i32
  }
  func.func @transform_4(%arg0: i32) -> (i32, i32, i32) {
    %c0_i32 = arith.constant 0 : i32
    %c0_i32_0 = arith.constant 0 : i32
    %c0_i32_1 = arith.constant 0 : i32
    return %arg0, %c0_i32, %c0_i32_0 : i32, i32, i32
  }
}

module attributes {stable_mosaic.version = 11 : i64} {
  func.func @_conv_relu_pool_kernel(%arg0: i32, %arg1: memref<1x6x196xf32, #tpu.memory_space<vmem>>, %arg2: memref<25x16x6xf32, #tpu.memory_space<vmem>>, %arg3: memref<16x1xf32, #tpu.memory_space<vmem>>, %arg4: memref<121x25xf32, #tpu.memory_space<vmem>>, %arg5: memref<1x16x25xf32, #tpu.memory_space<vmem>>) attributes {dimension_semantics = [#tpu.dimension_semantics<parallel>], iteration_bounds = array<i64: 2>, scalar_prefetch = 0 : i64, scratch_operands = 0 : i64, tpu.core_type = #tpu.core_type<tc>, window_params = [{transform_indices = @transform_0, window_bounds = array<i64: 1, 6, 196>}, {pipeline_mode = #tpu.pipeline_mode<synchronous>, transform_indices = @transform_1, window_bounds = array<i64: 25, 16, 6>}, {pipeline_mode = #tpu.pipeline_mode<synchronous>, transform_indices = @transform_2, window_bounds = array<i64: 16, 1>}, {pipeline_mode = #tpu.pipeline_mode<synchronous>, transform_indices = @transform_3, window_bounds = array<i64: 121, 25>}, {transform_indices = @transform_4, window_bounds = array<i64: 1, 16, 25>}]} {
    %c0 = arith.constant 0 : index
    %c0_0 = arith.constant 0 : index
    %c0_1 = arith.constant 0 : index
    %0 = vector.load %arg1[%c0, %c0_0, %c0_1] : memref<1x6x196xf32, #tpu.memory_space<vmem>>, vector<1x6x196xf32>
    %1 = vector.shape_cast %0 : vector<1x6x196xf32> to vector<6x196xf32>
    %2 = vector.extract_strided_slice %1 {offsets = [0, 0], sizes = [6, 136], strides = [1, 1]} : vector<6x196xf32> to vector<6x136xf32>
    %c0_2 = arith.constant 0 : index
    %c0_3 = arith.constant 0 : index
    %c0_4 = arith.constant 0 : index
    %3 = vector.load %arg2[%c0_2, %c0_3, %c0_4] : memref<25x16x6xf32, #tpu.memory_space<vmem>>, vector<1x16x6xf32>
    %4 = vector.shape_cast %3 : vector<1x16x6xf32> to vector<16x6xf32>
    %cst = arith.constant dense<0.000000e+00> : vector<16x136xf32>
    %5 = tpu.matmul %4, %2, %cst {dimension_numbers = #tpu.dot_dimension_numbers<[1], [0], [0], [1], [0, 0, 1, 1], [], []>} : vector<16x6xf32>, vector<6x136xf32>, vector<16x136xf32> -> vector<16x136xf32>
    %6 = vector.extract_strided_slice %1 {offsets = [0, 1], sizes = [6, 136], strides = [1, 1]} : vector<6x196xf32> to vector<6x136xf32>
    %c1 = arith.constant 1 : index
    %c0_5 = arith.constant 0 : index
    %c0_6 = arith.constant 0 : index
    %7 = vector.load %arg2[%c1, %c0_5, %c0_6] : memref<25x16x6xf32, #tpu.memory_space<vmem>>, vector<1x16x6xf32>
    %8 = vector.shape_cast %7 : vector<1x16x6xf32> to vector<16x6xf32>
    %cst_7 = arith.constant dense<0.000000e+00> : vector<16x136xf32>
    %9 = tpu.matmul %8, %6, %cst_7 {dimension_numbers = #tpu.dot_dimension_numbers<[1], [0], [0], [1], [0, 0, 1, 1], [], []>} : vector<16x6xf32>, vector<6x136xf32>, vector<16x136xf32> -> vector<16x136xf32>
    %10 = arith.addf %5, %9 : vector<16x136xf32>
    %11 = vector.extract_strided_slice %1 {offsets = [0, 2], sizes = [6, 136], strides = [1, 1]} : vector<6x196xf32> to vector<6x136xf32>
    %c2 = arith.constant 2 : index
    %c0_8 = arith.constant 0 : index
    %c0_9 = arith.constant 0 : index
    %12 = vector.load %arg2[%c2, %c0_8, %c0_9] : memref<25x16x6xf32, #tpu.memory_space<vmem>>, vector<1x16x6xf32>
    %13 = vector.shape_cast %12 : vector<1x16x6xf32> to vector<16x6xf32>
    %cst_10 = arith.constant dense<0.000000e+00> : vector<16x136xf32>
    %14 = tpu.matmul %13, %11, %cst_10 {dimension_numbers = #tpu.dot_dimension_numbers<[1], [0], [0], [1], [0, 0, 1, 1], [], []>} : vector<16x6xf32>, vector<6x136xf32>, vector<16x136xf32> -> vector<16x136xf32>
    %15 = arith.addf %10, %14 : vector<16x136xf32>
    %16 = vector.extract_strided_slice %1 {offsets = [0, 3], sizes = [6, 136], strides = [1, 1]} : vector<6x196xf32> to vector<6x136xf32>
    %c3 = arith.constant 3 : index
    %c0_11 = arith.constant 0 : index
    %c0_12 = arith.constant 0 : index
    %17 = vector.load %arg2[%c3, %c0_11, %c0_12] : memref<25x16x6xf32, #tpu.memory_space<vmem>>, vector<1x16x6xf32>
    %18 = vector.shape_cast %17 : vector<1x16x6xf32> to vector<16x6xf32>
    %cst_13 = arith.constant dense<0.000000e+00> : vector<16x136xf32>
    %19 = tpu.matmul %18, %16, %cst_13 {dimension_numbers = #tpu.dot_dimension_numbers<[1], [0], [0], [1], [0, 0, 1, 1], [], []>} : vector<16x6xf32>, vector<6x136xf32>, vector<16x136xf32> -> vector<16x136xf32>
    %20 = arith.addf %15, %19 : vector<16x136xf32>
    %21 = vector.extract_strided_slice %1 {offsets = [0, 4], sizes = [6, 136], strides = [1, 1]} : vector<6x196xf32> to vector<6x136xf32>
    %c4 = arith.constant 4 : index
    %c0_14 = arith.constant 0 : index
    %c0_15 = arith.constant 0 : index
    %22 = vector.load %arg2[%c4, %c0_14, %c0_15] : memref<25x16x6xf32, #tpu.memory_space<vmem>>, vector<1x16x6xf32>
    %23 = vector.shape_cast %22 : vector<1x16x6xf32> to vector<16x6xf32>
    %cst_16 = arith.constant dense<0.000000e+00> : vector<16x136xf32>
    %24 = tpu.matmul %23, %21, %cst_16 {dimension_numbers = #tpu.dot_dimension_numbers<[1], [0], [0], [1], [0, 0, 1, 1], [], []>} : vector<16x6xf32>, vector<6x136xf32>, vector<16x136xf32> -> vector<16x136xf32>
    %25 = arith.addf %20, %24 : vector<16x136xf32>
    %26 = vector.extract_strided_slice %1 {offsets = [0, 14], sizes = [6, 136], strides = [1, 1]} : vector<6x196xf32> to vector<6x136xf32>
    %c5 = arith.constant 5 : index
    %c0_17 = arith.constant 0 : index
    %c0_18 = arith.constant 0 : index
    %27 = vector.load %arg2[%c5, %c0_17, %c0_18] : memref<25x16x6xf32, #tpu.memory_space<vmem>>, vector<1x16x6xf32>
    %28 = vector.shape_cast %27 : vector<1x16x6xf32> to vector<16x6xf32>
    %cst_19 = arith.constant dense<0.000000e+00> : vector<16x136xf32>
    %29 = tpu.matmul %28, %26, %cst_19 {dimension_numbers = #tpu.dot_dimension_numbers<[1], [0], [0], [1], [0, 0, 1, 1], [], []>} : vector<16x6xf32>, vector<6x136xf32>, vector<16x136xf32> -> vector<16x136xf32>
    %30 = arith.addf %25, %29 : vector<16x136xf32>
    %31 = vector.extract_strided_slice %1 {offsets = [0, 15], sizes = [6, 136], strides = [1, 1]} : vector<6x196xf32> to vector<6x136xf32>
    %c6 = arith.constant 6 : index
    %c0_20 = arith.constant 0 : index
    %c0_21 = arith.constant 0 : index
    %32 = vector.load %arg2[%c6, %c0_20, %c0_21] : memref<25x16x6xf32, #tpu.memory_space<vmem>>, vector<1x16x6xf32>
    %33 = vector.shape_cast %32 : vector<1x16x6xf32> to vector<16x6xf32>
    %cst_22 = arith.constant dense<0.000000e+00> : vector<16x136xf32>
    %34 = tpu.matmul %33, %31, %cst_22 {dimension_numbers = #tpu.dot_dimension_numbers<[1], [0], [0], [1], [0, 0, 1, 1], [], []>} : vector<16x6xf32>, vector<6x136xf32>, vector<16x136xf32> -> vector<16x136xf32>
    %35 = arith.addf %30, %34 : vector<16x136xf32>
    %36 = vector.extract_strided_slice %1 {offsets = [0, 16], sizes = [6, 136], strides = [1, 1]} : vector<6x196xf32> to vector<6x136xf32>
    %c7 = arith.constant 7 : index
    %c0_23 = arith.constant 0 : index
    %c0_24 = arith.constant 0 : index
    %37 = vector.load %arg2[%c7, %c0_23, %c0_24] : memref<25x16x6xf32, #tpu.memory_space<vmem>>, vector<1x16x6xf32>
    %38 = vector.shape_cast %37 : vector<1x16x6xf32> to vector<16x6xf32>
    %cst_25 = arith.constant dense<0.000000e+00> : vector<16x136xf32>
    %39 = tpu.matmul %38, %36, %cst_25 {dimension_numbers = #tpu.dot_dimension_numbers<[1], [0], [0], [1], [0, 0, 1, 1], [], []>} : vector<16x6xf32>, vector<6x136xf32>, vector<16x136xf32> -> vector<16x136xf32>
    %40 = arith.addf %35, %39 : vector<16x136xf32>
    %41 = vector.extract_strided_slice %1 {offsets = [0, 17], sizes = [6, 136], strides = [1, 1]} : vector<6x196xf32> to vector<6x136xf32>
    %c8 = arith.constant 8 : index
    %c0_26 = arith.constant 0 : index
    %c0_27 = arith.constant 0 : index
    %42 = vector.load %arg2[%c8, %c0_26, %c0_27] : memref<25x16x6xf32, #tpu.memory_space<vmem>>, vector<1x16x6xf32>
    %43 = vector.shape_cast %42 : vector<1x16x6xf32> to vector<16x6xf32>
    %cst_28 = arith.constant dense<0.000000e+00> : vector<16x136xf32>
    %44 = tpu.matmul %43, %41, %cst_28 {dimension_numbers = #tpu.dot_dimension_numbers<[1], [0], [0], [1], [0, 0, 1, 1], [], []>} : vector<16x6xf32>, vector<6x136xf32>, vector<16x136xf32> -> vector<16x136xf32>
    %45 = arith.addf %40, %44 : vector<16x136xf32>
    %46 = vector.extract_strided_slice %1 {offsets = [0, 18], sizes = [6, 136], strides = [1, 1]} : vector<6x196xf32> to vector<6x136xf32>
    %c9 = arith.constant 9 : index
    %c0_29 = arith.constant 0 : index
    %c0_30 = arith.constant 0 : index
    %47 = vector.load %arg2[%c9, %c0_29, %c0_30] : memref<25x16x6xf32, #tpu.memory_space<vmem>>, vector<1x16x6xf32>
    %48 = vector.shape_cast %47 : vector<1x16x6xf32> to vector<16x6xf32>
    %cst_31 = arith.constant dense<0.000000e+00> : vector<16x136xf32>
    %49 = tpu.matmul %48, %46, %cst_31 {dimension_numbers = #tpu.dot_dimension_numbers<[1], [0], [0], [1], [0, 0, 1, 1], [], []>} : vector<16x6xf32>, vector<6x136xf32>, vector<16x136xf32> -> vector<16x136xf32>
    %50 = arith.addf %45, %49 : vector<16x136xf32>
    %51 = vector.extract_strided_slice %1 {offsets = [0, 28], sizes = [6, 136], strides = [1, 1]} : vector<6x196xf32> to vector<6x136xf32>
    %c10 = arith.constant 10 : index
    %c0_32 = arith.constant 0 : index
    %c0_33 = arith.constant 0 : index
    %52 = vector.load %arg2[%c10, %c0_32, %c0_33] : memref<25x16x6xf32, #tpu.memory_space<vmem>>, vector<1x16x6xf32>
    %53 = vector.shape_cast %52 : vector<1x16x6xf32> to vector<16x6xf32>
    %cst_34 = arith.constant dense<0.000000e+00> : vector<16x136xf32>
    %54 = tpu.matmul %53, %51, %cst_34 {dimension_numbers = #tpu.dot_dimension_numbers<[1], [0], [0], [1], [0, 0, 1, 1], [], []>} : vector<16x6xf32>, vector<6x136xf32>, vector<16x136xf32> -> vector<16x136xf32>
    %55 = arith.addf %50, %54 : vector<16x136xf32>
    %56 = vector.extract_strided_slice %1 {offsets = [0, 29], sizes = [6, 136], strides = [1, 1]} : vector<6x196xf32> to vector<6x136xf32>
    %c11 = arith.constant 11 : index
    %c0_35 = arith.constant 0 : index
    %c0_36 = arith.constant 0 : index
    %57 = vector.load %arg2[%c11, %c0_35, %c0_36] : memref<25x16x6xf32, #tpu.memory_space<vmem>>, vector<1x16x6xf32>
    %58 = vector.shape_cast %57 : vector<1x16x6xf32> to vector<16x6xf32>
    %cst_37 = arith.constant dense<0.000000e+00> : vector<16x136xf32>
    %59 = tpu.matmul %58, %56, %cst_37 {dimension_numbers = #tpu.dot_dimension_numbers<[1], [0], [0], [1], [0, 0, 1, 1], [], []>} : vector<16x6xf32>, vector<6x136xf32>, vector<16x136xf32> -> vector<16x136xf32>
    %60 = arith.addf %55, %59 : vector<16x136xf32>
    %61 = vector.extract_strided_slice %1 {offsets = [0, 30], sizes = [6, 136], strides = [1, 1]} : vector<6x196xf32> to vector<6x136xf32>
    %c12 = arith.constant 12 : index
    %c0_38 = arith.constant 0 : index
    %c0_39 = arith.constant 0 : index
    %62 = vector.load %arg2[%c12, %c0_38, %c0_39] : memref<25x16x6xf32, #tpu.memory_space<vmem>>, vector<1x16x6xf32>
    %63 = vector.shape_cast %62 : vector<1x16x6xf32> to vector<16x6xf32>
    %cst_40 = arith.constant dense<0.000000e+00> : vector<16x136xf32>
    %64 = tpu.matmul %63, %61, %cst_40 {dimension_numbers = #tpu.dot_dimension_numbers<[1], [0], [0], [1], [0, 0, 1, 1], [], []>} : vector<16x6xf32>, vector<6x136xf32>, vector<16x136xf32> -> vector<16x136xf32>
    %65 = arith.addf %60, %64 : vector<16x136xf32>
    %66 = vector.extract_strided_slice %1 {offsets = [0, 31], sizes = [6, 136], strides = [1, 1]} : vector<6x196xf32> to vector<6x136xf32>
    %c13 = arith.constant 13 : index
    %c0_41 = arith.constant 0 : index
    %c0_42 = arith.constant 0 : index
    %67 = vector.load %arg2[%c13, %c0_41, %c0_42] : memref<25x16x6xf32, #tpu.memory_space<vmem>>, vector<1x16x6xf32>
    %68 = vector.shape_cast %67 : vector<1x16x6xf32> to vector<16x6xf32>
    %cst_43 = arith.constant dense<0.000000e+00> : vector<16x136xf32>
    %69 = tpu.matmul %68, %66, %cst_43 {dimension_numbers = #tpu.dot_dimension_numbers<[1], [0], [0], [1], [0, 0, 1, 1], [], []>} : vector<16x6xf32>, vector<6x136xf32>, vector<16x136xf32> -> vector<16x136xf32>
    %70 = arith.addf %65, %69 : vector<16x136xf32>
    %71 = vector.extract_strided_slice %1 {offsets = [0, 32], sizes = [6, 136], strides = [1, 1]} : vector<6x196xf32> to vector<6x136xf32>
    %c14 = arith.constant 14 : index
    %c0_44 = arith.constant 0 : index
    %c0_45 = arith.constant 0 : index
    %72 = vector.load %arg2[%c14, %c0_44, %c0_45] : memref<25x16x6xf32, #tpu.memory_space<vmem>>, vector<1x16x6xf32>
    %73 = vector.shape_cast %72 : vector<1x16x6xf32> to vector<16x6xf32>
    %cst_46 = arith.constant dense<0.000000e+00> : vector<16x136xf32>
    %74 = tpu.matmul %73, %71, %cst_46 {dimension_numbers = #tpu.dot_dimension_numbers<[1], [0], [0], [1], [0, 0, 1, 1], [], []>} : vector<16x6xf32>, vector<6x136xf32>, vector<16x136xf32> -> vector<16x136xf32>
    %75 = arith.addf %70, %74 : vector<16x136xf32>
    %76 = vector.extract_strided_slice %1 {offsets = [0, 42], sizes = [6, 136], strides = [1, 1]} : vector<6x196xf32> to vector<6x136xf32>
    %c15 = arith.constant 15 : index
    %c0_47 = arith.constant 0 : index
    %c0_48 = arith.constant 0 : index
    %77 = vector.load %arg2[%c15, %c0_47, %c0_48] : memref<25x16x6xf32, #tpu.memory_space<vmem>>, vector<1x16x6xf32>
    %78 = vector.shape_cast %77 : vector<1x16x6xf32> to vector<16x6xf32>
    %cst_49 = arith.constant dense<0.000000e+00> : vector<16x136xf32>
    %79 = tpu.matmul %78, %76, %cst_49 {dimension_numbers = #tpu.dot_dimension_numbers<[1], [0], [0], [1], [0, 0, 1, 1], [], []>} : vector<16x6xf32>, vector<6x136xf32>, vector<16x136xf32> -> vector<16x136xf32>
    %80 = arith.addf %75, %79 : vector<16x136xf32>
    %81 = vector.extract_strided_slice %1 {offsets = [0, 43], sizes = [6, 136], strides = [1, 1]} : vector<6x196xf32> to vector<6x136xf32>
    %c16 = arith.constant 16 : index
    %c0_50 = arith.constant 0 : index
    %c0_51 = arith.constant 0 : index
    %82 = vector.load %arg2[%c16, %c0_50, %c0_51] : memref<25x16x6xf32, #tpu.memory_space<vmem>>, vector<1x16x6xf32>
    %83 = vector.shape_cast %82 : vector<1x16x6xf32> to vector<16x6xf32>
    %cst_52 = arith.constant dense<0.000000e+00> : vector<16x136xf32>
    %84 = tpu.matmul %83, %81, %cst_52 {dimension_numbers = #tpu.dot_dimension_numbers<[1], [0], [0], [1], [0, 0, 1, 1], [], []>} : vector<16x6xf32>, vector<6x136xf32>, vector<16x136xf32> -> vector<16x136xf32>
    %85 = arith.addf %80, %84 : vector<16x136xf32>
    %86 = vector.extract_strided_slice %1 {offsets = [0, 44], sizes = [6, 136], strides = [1, 1]} : vector<6x196xf32> to vector<6x136xf32>
    %c17 = arith.constant 17 : index
    %c0_53 = arith.constant 0 : index
    %c0_54 = arith.constant 0 : index
    %87 = vector.load %arg2[%c17, %c0_53, %c0_54] : memref<25x16x6xf32, #tpu.memory_space<vmem>>, vector<1x16x6xf32>
    %88 = vector.shape_cast %87 : vector<1x16x6xf32> to vector<16x6xf32>
    %cst_55 = arith.constant dense<0.000000e+00> : vector<16x136xf32>
    %89 = tpu.matmul %88, %86, %cst_55 {dimension_numbers = #tpu.dot_dimension_numbers<[1], [0], [0], [1], [0, 0, 1, 1], [], []>} : vector<16x6xf32>, vector<6x136xf32>, vector<16x136xf32> -> vector<16x136xf32>
    %90 = arith.addf %85, %89 : vector<16x136xf32>
    %91 = vector.extract_strided_slice %1 {offsets = [0, 45], sizes = [6, 136], strides = [1, 1]} : vector<6x196xf32> to vector<6x136xf32>
    %c18 = arith.constant 18 : index
    %c0_56 = arith.constant 0 : index
    %c0_57 = arith.constant 0 : index
    %92 = vector.load %arg2[%c18, %c0_56, %c0_57] : memref<25x16x6xf32, #tpu.memory_space<vmem>>, vector<1x16x6xf32>
    %93 = vector.shape_cast %92 : vector<1x16x6xf32> to vector<16x6xf32>
    %cst_58 = arith.constant dense<0.000000e+00> : vector<16x136xf32>
    %94 = tpu.matmul %93, %91, %cst_58 {dimension_numbers = #tpu.dot_dimension_numbers<[1], [0], [0], [1], [0, 0, 1, 1], [], []>} : vector<16x6xf32>, vector<6x136xf32>, vector<16x136xf32> -> vector<16x136xf32>
    %95 = arith.addf %90, %94 : vector<16x136xf32>
    %96 = vector.extract_strided_slice %1 {offsets = [0, 46], sizes = [6, 136], strides = [1, 1]} : vector<6x196xf32> to vector<6x136xf32>
    %c19 = arith.constant 19 : index
    %c0_59 = arith.constant 0 : index
    %c0_60 = arith.constant 0 : index
    %97 = vector.load %arg2[%c19, %c0_59, %c0_60] : memref<25x16x6xf32, #tpu.memory_space<vmem>>, vector<1x16x6xf32>
    %98 = vector.shape_cast %97 : vector<1x16x6xf32> to vector<16x6xf32>
    %cst_61 = arith.constant dense<0.000000e+00> : vector<16x136xf32>
    %99 = tpu.matmul %98, %96, %cst_61 {dimension_numbers = #tpu.dot_dimension_numbers<[1], [0], [0], [1], [0, 0, 1, 1], [], []>} : vector<16x6xf32>, vector<6x136xf32>, vector<16x136xf32> -> vector<16x136xf32>
    %100 = arith.addf %95, %99 : vector<16x136xf32>
    %101 = vector.extract_strided_slice %1 {offsets = [0, 56], sizes = [6, 136], strides = [1, 1]} : vector<6x196xf32> to vector<6x136xf32>
    %c20 = arith.constant 20 : index
    %c0_62 = arith.constant 0 : index
    %c0_63 = arith.constant 0 : index
    %102 = vector.load %arg2[%c20, %c0_62, %c0_63] : memref<25x16x6xf32, #tpu.memory_space<vmem>>, vector<1x16x6xf32>
    %103 = vector.shape_cast %102 : vector<1x16x6xf32> to vector<16x6xf32>
    %cst_64 = arith.constant dense<0.000000e+00> : vector<16x136xf32>
    %104 = tpu.matmul %103, %101, %cst_64 {dimension_numbers = #tpu.dot_dimension_numbers<[1], [0], [0], [1], [0, 0, 1, 1], [], []>} : vector<16x6xf32>, vector<6x136xf32>, vector<16x136xf32> -> vector<16x136xf32>
    %105 = arith.addf %100, %104 : vector<16x136xf32>
    %106 = vector.extract_strided_slice %1 {offsets = [0, 57], sizes = [6, 136], strides = [1, 1]} : vector<6x196xf32> to vector<6x136xf32>
    %c21 = arith.constant 21 : index
    %c0_65 = arith.constant 0 : index
    %c0_66 = arith.constant 0 : index
    %107 = vector.load %arg2[%c21, %c0_65, %c0_66] : memref<25x16x6xf32, #tpu.memory_space<vmem>>, vector<1x16x6xf32>
    %108 = vector.shape_cast %107 : vector<1x16x6xf32> to vector<16x6xf32>
    %cst_67 = arith.constant dense<0.000000e+00> : vector<16x136xf32>
    %109 = tpu.matmul %108, %106, %cst_67 {dimension_numbers = #tpu.dot_dimension_numbers<[1], [0], [0], [1], [0, 0, 1, 1], [], []>} : vector<16x6xf32>, vector<6x136xf32>, vector<16x136xf32> -> vector<16x136xf32>
    %110 = arith.addf %105, %109 : vector<16x136xf32>
    %111 = vector.extract_strided_slice %1 {offsets = [0, 58], sizes = [6, 136], strides = [1, 1]} : vector<6x196xf32> to vector<6x136xf32>
    %c22 = arith.constant 22 : index
    %c0_68 = arith.constant 0 : index
    %c0_69 = arith.constant 0 : index
    %112 = vector.load %arg2[%c22, %c0_68, %c0_69] : memref<25x16x6xf32, #tpu.memory_space<vmem>>, vector<1x16x6xf32>
    %113 = vector.shape_cast %112 : vector<1x16x6xf32> to vector<16x6xf32>
    %cst_70 = arith.constant dense<0.000000e+00> : vector<16x136xf32>
    %114 = tpu.matmul %113, %111, %cst_70 {dimension_numbers = #tpu.dot_dimension_numbers<[1], [0], [0], [1], [0, 0, 1, 1], [], []>} : vector<16x6xf32>, vector<6x136xf32>, vector<16x136xf32> -> vector<16x136xf32>
    %115 = arith.addf %110, %114 : vector<16x136xf32>
    %116 = vector.extract_strided_slice %1 {offsets = [0, 59], sizes = [6, 136], strides = [1, 1]} : vector<6x196xf32> to vector<6x136xf32>
    %c23 = arith.constant 23 : index
    %c0_71 = arith.constant 0 : index
    %c0_72 = arith.constant 0 : index
    %117 = vector.load %arg2[%c23, %c0_71, %c0_72] : memref<25x16x6xf32, #tpu.memory_space<vmem>>, vector<1x16x6xf32>
    %118 = vector.shape_cast %117 : vector<1x16x6xf32> to vector<16x6xf32>
    %cst_73 = arith.constant dense<0.000000e+00> : vector<16x136xf32>
    %119 = tpu.matmul %118, %116, %cst_73 {dimension_numbers = #tpu.dot_dimension_numbers<[1], [0], [0], [1], [0, 0, 1, 1], [], []>} : vector<16x6xf32>, vector<6x136xf32>, vector<16x136xf32> -> vector<16x136xf32>
    %120 = arith.addf %115, %119 : vector<16x136xf32>
    %121 = vector.extract_strided_slice %1 {offsets = [0, 60], sizes = [6, 136], strides = [1, 1]} : vector<6x196xf32> to vector<6x136xf32>
    %c24 = arith.constant 24 : index
    %c0_74 = arith.constant 0 : index
    %c0_75 = arith.constant 0 : index
    %122 = vector.load %arg2[%c24, %c0_74, %c0_75] : memref<25x16x6xf32, #tpu.memory_space<vmem>>, vector<1x16x6xf32>
    %123 = vector.shape_cast %122 : vector<1x16x6xf32> to vector<16x6xf32>
    %cst_76 = arith.constant dense<0.000000e+00> : vector<16x136xf32>
    %124 = tpu.matmul %123, %121, %cst_76 {dimension_numbers = #tpu.dot_dimension_numbers<[1], [0], [0], [1], [0, 0, 1, 1], [], []>} : vector<16x6xf32>, vector<6x136xf32>, vector<16x136xf32> -> vector<16x136xf32>
    %125 = arith.addf %120, %124 : vector<16x136xf32>
    %c0_77 = arith.constant 0 : index
    %c0_78 = arith.constant 0 : index
    %126 = vector.load %arg3[%c0_77, %c0_78] : memref<16x1xf32, #tpu.memory_space<vmem>>, vector<16x1xf32>
    %127 = vector.broadcast %126 : vector<16x1xf32> to vector<16x136xf32>
    %128 = arith.addf %125, %127 : vector<16x136xf32>
    %cst_79 = arith.constant 0.000000e+00 : f32
    %129 = vector.broadcast %cst_79 : f32 to vector<16x136xf32>
    %130 = arith.maximumf %128, %129 : vector<16x136xf32>
    %131 = vector.extract_strided_slice %130 {offsets = [0, 0], sizes = [16, 135], strides = [1, 1]} : vector<16x136xf32> to vector<16x135xf32>
    %132 = vector.extract_strided_slice %130 {offsets = [0, 1], sizes = [16, 135], strides = [1, 1]} : vector<16x136xf32> to vector<16x135xf32>
    %133 = arith.maximumf %131, %132 : vector<16x135xf32>
    %134 = vector.extract_strided_slice %133 {offsets = [0, 0], sizes = [16, 121], strides = [1, 1]} : vector<16x135xf32> to vector<16x121xf32>
    %135 = vector.extract_strided_slice %133 {offsets = [0, 14], sizes = [16, 121], strides = [1, 1]} : vector<16x135xf32> to vector<16x121xf32>
    %136 = arith.maximumf %134, %135 : vector<16x121xf32>
    %c0_80 = arith.constant 0 : index
    %c0_81 = arith.constant 0 : index
    %137 = vector.load %arg4[%c0_80, %c0_81] : memref<121x25xf32, #tpu.memory_space<vmem>>, vector<121x25xf32>
    %cst_82 = arith.constant dense<0.000000e+00> : vector<16x25xf32>
    %138 = tpu.matmul %136, %137, %cst_82 {dimension_numbers = #tpu.dot_dimension_numbers<[1], [0], [0], [1], [0, 0, 1, 1], [], []>} : vector<16x121xf32>, vector<121x25xf32>, vector<16x25xf32> -> vector<16x25xf32>
    %c0_83 = arith.constant 0 : index
    %c0_84 = arith.constant 0 : index
    %c0_85 = arith.constant 0 : index
    %139 = vector.load %arg5[%c0_83, %c0_84, %c0_85] : memref<1x16x25xf32, #tpu.memory_space<vmem>>, vector<1x16x25xf32>
    %140 = vector.shape_cast %139 : vector<1x16x25xf32> to vector<16x25xf32>
    %141 = vector.shape_cast %138 : vector<16x25xf32> to vector<1x16x25xf32>
    tpu.vector_store %arg5[%c0_83, %c0_84, %c0_85], %141 {strides = array<i32>} : memref<1x16x25xf32, #tpu.memory_space<vmem>>, vector<1x16x25xf32>,
    return
  }
  func.func @transform_0(%arg0: i32) -> (i32, i32, i32) {
    %c0_i32 = arith.constant 0 : i32
    %c0_i32_0 = arith.constant 0 : i32
    %c0_i32_1 = arith.constant 0 : i32
    return %arg0, %c0_i32, %c0_i32_0 : i32, i32, i32
  }
  func.func @transform_1(%arg0: i32) -> (i32, i32, i32) {
    %c0_i32 = arith.constant 0 : i32
    %c0_i32_0 = arith.constant 0 : i32
    %c0_i32_1 = arith.constant 0 : i32
    %c0_i32_2 = arith.constant 0 : i32
    return %c0_i32, %c0_i32_0, %c0_i32_1 : i32, i32, i32
  }
  func.func @transform_2(%arg0: i32) -> (i32, i32) {
    %c0_i32 = arith.constant 0 : i32
    %c0_i32_0 = arith.constant 0 : i32
    %c0_i32_1 = arith.constant 0 : i32
    return %c0_i32, %c0_i32_0 : i32, i32
  }
  func.func @transform_3(%arg0: i32) -> (i32, i32) {
    %c0_i32 = arith.constant 0 : i32
    %c0_i32_0 = arith.constant 0 : i32
    %c0_i32_1 = arith.constant 0 : i32
    return %c0_i32, %c0_i32_0 : i32, i32
  }
  func.func @transform_4(%arg0: i32) -> (i32, i32, i32) {
    %c0_i32 = arith.constant 0 : i32
    %c0_i32_0 = arith.constant 0 : i32
    %c0_i32_1 = arith.constant 0 : i32
    return %arg0, %c0_i32, %c0_i32_0 : i32, i32, i32
  }
}

module attributes {stable_mosaic.version = 11 : i64} {
  func.func @_mlp3_kernel(%arg0: memref<2x400xf32, #tpu.memory_space<vmem>>, %arg1: memref<400x120xf32, #tpu.memory_space<vmem>>, %arg2: memref<1x120xf32, #tpu.memory_space<vmem>>, %arg3: memref<120x84xf32, #tpu.memory_space<vmem>>, %arg4: memref<1x84xf32, #tpu.memory_space<vmem>>, %arg5: memref<84x10xf32, #tpu.memory_space<vmem>>, %arg6: memref<1x10xf32, #tpu.memory_space<vmem>>, %arg7: memref<2x10xf32, #tpu.memory_space<vmem>>) attributes {dimension_semantics = [], scalar_prefetch = 0 : i64, scratch_operands = 0 : i64, tpu.core_type = #tpu.core_type<tc>} {
    %c0 = arith.constant 0 : index
    %c0_0 = arith.constant 0 : index
    %0 = vector.load %arg0[%c0, %c0_0] : memref<2x400xf32, #tpu.memory_space<vmem>>, vector<2x400xf32>
    %c0_1 = arith.constant 0 : index
    %c0_2 = arith.constant 0 : index
    %1 = vector.load %arg1[%c0_1, %c0_2] : memref<400x120xf32, #tpu.memory_space<vmem>>, vector<400x120xf32>
    %cst = arith.constant dense<0.000000e+00> : vector<2x120xf32>
    %2 = tpu.matmul %0, %1, %cst {dimension_numbers = #tpu.dot_dimension_numbers<[1], [0], [0], [1], [0, 0, 1, 1], [], []>} : vector<2x400xf32>, vector<400x120xf32>, vector<2x120xf32> -> vector<2x120xf32>
    %c0_3 = arith.constant 0 : index
    %c0_4 = arith.constant 0 : index
    %3 = vector.load %arg2[%c0_3, %c0_4] : memref<1x120xf32, #tpu.memory_space<vmem>>, vector<1x120xf32>
    %4 = vector.broadcast %3 : vector<1x120xf32> to vector<2x120xf32>
    %5 = arith.addf %2, %4 : vector<2x120xf32>
    %cst_5 = arith.constant 0.000000e+00 : f32
    %6 = vector.broadcast %cst_5 : f32 to vector<2x120xf32>
    %7 = arith.maximumf %5, %6 : vector<2x120xf32>
    %c0_6 = arith.constant 0 : index
    %c0_7 = arith.constant 0 : index
    %8 = vector.load %arg3[%c0_6, %c0_7] : memref<120x84xf32, #tpu.memory_space<vmem>>, vector<120x84xf32>
    %cst_8 = arith.constant dense<0.000000e+00> : vector<2x84xf32>
    %9 = tpu.matmul %7, %8, %cst_8 {dimension_numbers = #tpu.dot_dimension_numbers<[1], [0], [0], [1], [0, 0, 1, 1], [], []>} : vector<2x120xf32>, vector<120x84xf32>, vector<2x84xf32> -> vector<2x84xf32>
    %c0_9 = arith.constant 0 : index
    %c0_10 = arith.constant 0 : index
    %10 = vector.load %arg4[%c0_9, %c0_10] : memref<1x84xf32, #tpu.memory_space<vmem>>, vector<1x84xf32>
    %11 = vector.broadcast %10 : vector<1x84xf32> to vector<2x84xf32>
    %12 = arith.addf %9, %11 : vector<2x84xf32>
    %cst_11 = arith.constant 0.000000e+00 : f32
    %13 = vector.broadcast %cst_11 : f32 to vector<2x84xf32>
    %14 = arith.maximumf %12, %13 : vector<2x84xf32>
    %c0_12 = arith.constant 0 : index
    %c0_13 = arith.constant 0 : index
    %15 = vector.load %arg5[%c0_12, %c0_13] : memref<84x10xf32, #tpu.memory_space<vmem>>, vector<84x10xf32>
    %cst_14 = arith.constant dense<0.000000e+00> : vector<2x10xf32>
    %16 = tpu.matmul %14, %15, %cst_14 {dimension_numbers = #tpu.dot_dimension_numbers<[1], [0], [0], [1], [0, 0, 1, 1], [], []>} : vector<2x84xf32>, vector<84x10xf32>, vector<2x10xf32> -> vector<2x10xf32>
    %c0_15 = arith.constant 0 : index
    %c0_16 = arith.constant 0 : index
    %17 = vector.load %arg6[%c0_15, %c0_16] : memref<1x10xf32, #tpu.memory_space<vmem>>, vector<1x10xf32>
    %18 = vector.broadcast %17 : vector<1x10xf32> to vector<2x10xf32>
    %19 = arith.addf %16, %18 : vector<2x10xf32>
    %c0_17 = arith.constant 0 : index
    %c0_18 = arith.constant 0 : index
    %20 = vector.load %arg7[%c0_17, %c0_18] : memref<2x10xf32, #tpu.memory_space<vmem>>, vector<2x10xf32>
    tpu.vector_store %arg7[%c0_17, %c0_18], %19 {strides = array<i32>} : memref<2x10xf32, #tpu.memory_space<vmem>>, vector<2x10xf32>,
    return
  }
}

</mosaic_0001>

<bundles_post_ra>
// kernel: convnet_forward.5
= control target key start
LH: loop header
LB: loop body
LE: loop exit
PB: predicated region body
PF: predicated region fallthrough
CT: control target
= control target key end

     0   :  { %v712_v4 = vmov 0.0|0.0   ;;  %v713_v26 = vmov 1983009808   ;;  %v90_v28 = vlaneseq  ;;  %vm106_vm0 = vcmask 130048   ;;  %s1030_s0 = inlined_call_operand.vmem [shape: f32[2,400], index: 0, kind: input, shape index: {}]   ;;  %s1031_s1 = inlined_call_operand.vmem [shape: f32[400,120], index: 1, kind: input, shape index: {}]   ;;  %s1032_s2 = inlined_call_operand.vmem [shape: f32[1,120], index: 2, kind: input, shape index: {}]   ;;  %s1033_s3 = inlined_call_operand.vmem [shape: f32[120,84], index: 3, kind: input, shape index: {}]   ;;  %s1034_s4 = inlined_call_operand.vmem [shape: f32[1,84], index: 4, kind: input, shape index: {}]   ;;  %s1035_s5 = inlined_call_operand.vmem [shape: f32[84,10], index: 5, kind: input, shape index: {}]   ;;  %s1036_s6 = inlined_call_operand.vmem [shape: f32[1,10], index: 6, kind: input, shape index: {}]   ;;  %s1037_s7 = inlined_call_operand.hbm [shape: f32[2,10], index: 7, kind: output, shape index: {}]  }
   0x1   :  { %v44_v0 = vld [vmem:[%s1031_s1 + $0x80] sm:$0xff]  ;;  %v45_v1 = vld [vmem:[%s1031_s1 + $0x88] sm:$0xff]  ;;  %619 = vmatprep.subr.bf16.mxu1 %v712_v4  ;;  %v46_v10 = vld [vmem:[%s1031_s1 + $0x90] sm:$0xff]  ;;  %v88_v27 = vunpack.c.l.s4 %v713_v26 }
   0x2   :  { %v28_v2 = vld [vmem:[%s1031_s1] sm:$0xff]  ;;  %v587_v3 = vpack.c.bf16 %v45_v1, %v44_v0  ;;  %v29_v5 = vld [vmem:[%s1031_s1 + $0x8] sm:$0xff]  ;;  %v47_v11 = vld [vmem:[%s1031_s1 + $0x98] sm:$0xff]  ;;  %v91_v39 = vshrl.u32 %v90_v28, 7 }
   0x3   :  { %v60_v6 = vld [vmem:[%s1031_s1 + $0x100] sm:$0xff]  ;;  %v61_v7 = vld [vmem:[%s1031_s1 + $0x108] sm:$0xff]  ;;  %v589_v8 = vpack.c.bf16 %v29_v5, %v28_v2  ;;  %v30_v12 = vld [vmem:[%s1031_s1 + $0x10] sm:$0xff]  ;;  %v591_v13 = vpack.c.bf16 %v47_v11, %v46_v10  ;;  %v89_v38 = vunpack.c.0.s8 %v88_v27 }
   0x4   :  { %v620_v9 = vpack.c.bf16 %v61_v7, %v60_v6  ;;  %588 = vmatprep.subr.bf16.mxu0 %v587_v3  ;;  %v31_v14 = vld [vmem:[%s1031_s1 + $0x18] sm:$0xff]  ;;  %v62_v15 = vld [vmem:[%s1031_s1 + $0x110] sm:$0xff]  ;;  %v48_v19 = vld [vmem:[%s1031_s1 + $0xa0] sm:$0xff] }
   0x5   :  { %v63_v16 = vld [vmem:[%s1031_s1 + $0x118] sm:$0xff]  ;;  %590 = vmatpush3.bf16.msra.mxu0 %v589_v8  ;;  %v593_v17 = vpack.c.bf16 %v31_v14, %v30_v12  ;;  %v49_v20 = vld [vmem:[%s1031_s1 + $0xa8] sm:$0xff]  ;;  %v32_v21 = vld [vmem:[%s1031_s1 + $0x20] sm:$0xff]  ;;  %v92_v49 = vsub.s32 %v89_v38, %v91_v39 }
   0x6   :  { %621 = vmatpush1.bf16.msra.mxu1 %v620_v9  ;;  %v623_v18 = vpack.c.bf16 %v63_v16, %v62_v15  ;;  %592 = vmatprep.subr.bf16.mxu0 %v591_v13  ;;  %v595_v22 = vpack.c.bf16 %v49_v20, %v48_v19  ;;  %v33_v23 = vld [vmem:[%s1031_s1 + $0x28] sm:$0xff]  ;;  %v64_v24 = vld [vmem:[%s1031_s1 + $0x120] sm:$0xff]  ;;  %v50_v29 = vld [vmem:[%s1031_s1 + $0xb0] sm:$0xff] }
   0x7   :  { %622 = vmatprep.subr.bf16.mxu1 %v712_v4  ;;  %v65_v25 = vld [vmem:[%s1031_s1 + $0x128] sm:$0xff]  ;;  %v51_v30 = vld [vmem:[%s1031_s1 + $0xb8] sm:$0xff]  ;;  %v597_v31 = vpack.c.bf16 %v33_v23, %v32_v21  ;;  %v34_v33 = vld [vmem:[%s1031_s1 + $0x30] sm:$0xff] }
   0x8   :  { %v626_v32 = vpack.c.bf16 %v65_v25, %v64_v24  ;;  %v599_v34 = vpack.c.bf16 %v51_v30, %v50_v29  ;;  %v35_v35 = vld [vmem:[%s1031_s1 + $0x38] sm:$0xff]  ;;  %v66_v36 = vld [vmem:[%s1031_s1 + $0x130] sm:$0xff]  ;;  %v52_v40 = vld [vmem:[%s1031_s1 + $0xc0] sm:$0xff] }
   0x9   :  { %594 = vmatpush3.bf16.msra.mxu0 %v593_v17  ;;  %v67_v37 = vld [vmem:[%s1031_s1 + $0x138] sm:$0xff]  ;;  %v53_v41 = vld [vmem:[%s1031_s1 + $0xc8] sm:$0xff]  ;;  %v601_v42 = vpack.c.bf16 %v35_v35, %v34_v33  ;;  %v36_v44 = vld [vmem:[%s1031_s1 + $0x40] sm:$0xff] }
   0xa   :  { %624 = vmatpush1.bf16.msra.mxu1 %v623_v18  ;;  %596 = vmatprep.subr.bf16.mxu0 %v595_v22  ;;  %v629_v43 = vpack.c.bf16 %v67_v37, %v66_v36  ;;  %v603_v45 = vpack.c.bf16 %v53_v41, %v52_v40  ;;  %v37_v46 = vld [vmem:[%s1031_s1 + $0x48] sm:$0xff]  ;;  %v68_v47 = vld [vmem:[%s1031_s1 + $0x140] sm:$0xff]  ;;  %v54_v50 = vld [vmem:[%s1031_s1 + $0xd0] sm:$0xff] }
   0xb   :  { %625 = vmatprep.subr.bf16.mxu1 %v712_v4  ;;  %v69_v48 = vld [vmem:[%s1031_s1 + $0x148] sm:$0xff]  ;;  %v55_v51 = vld [vmem:[%s1031_s1 + $0xd8] sm:$0xff]  ;;  %v605_v52 = vpack.c.bf16 %v37_v46, %v36_v44  ;;  %v38_v54 = vld [vmem:[%s1031_s1 + $0x50] sm:$0xff] }
   0xc   :  { %v632_v53 = vpack.c.bf16 %v69_v48, %v68_v47  ;;  %v27_v55 = vld [vmem:[%s1030_s0] sm:$0xff]  ;;  %v607_v56 = vpack.c.bf16 %v55_v51, %v54_v50  ;;  %v39_v57 = vld [vmem:[%s1031_s1 + $0x58] sm:$0xff]  ;;  %v70_v58 = vld [vmem:[%s1031_s1 + $0x150] sm:$0xff] }
   0xd   :  { %598 = vmatpush3.bf16.msra.mxu0 %v597_v31  ;;  %v71_v59 = vld [vmem:[%s1031_s1 + $0x158] sm:$0xff]  ;;  %v86_v60 = vcombine.high %v27_v55, %v27_v55  ;;  %v93_v61 = vrot.slane %v27_v55, %v92_v49  ;;  %v56_v62 = vld [vmem:[%s1031_s1 + $0xe0] sm:$0xff]  ;;  %v57_v63 = vld [vmem:[%s1031_s1 + $0xe8] sm:$0xff]  ;;  %v609_v2 = vpack.c.bf16 %v39_v57, %v38_v54 }
   0xe   :  { %627 = vmatpush1.bf16.msra.mxu1 %v626_v32  ;;  %600 = vmatprep.subr.bf16.mxu0 %v599_v34  ;;  %v635_v3 = vpack.c.bf16 %v71_v59, %v70_v58  ;;  %v40_v5 = vld [vmem:[%s1031_s1 + $0x60] sm:$0xff] }
   0xf   :  { %628 = vmatprep.subr.bf16.mxu1 %v712_v4  ;;  %v101_v0 = vcombine.high %v93_v61, %v93_v61  ;;  %v100_v1 = vrot.slane %v86_v60, %v92_v49 }
  0x11   :  { %602 = vmatpush3.bf16.msra.mxu0 %v601_v42 }
  0x12   :  { %630 = vmatpush1.bf16.msra.mxu1 %v629_v43  ;;  %604 = vmatprep.subr.bf16.mxu0 %v603_v45 }
  0x13   :  { %631 = vmatprep.subr.bf16.mxu1 %v712_v4 }
  0x15   :  { %606 = vmatpush3.bf16.msra.mxu0 %v605_v52 }
  0x16   :  { %633 = vmatpush1.bf16.msra.mxu1 %v632_v53 }
  0x17   :  { %12 = vsyncpa [#allocation3], 0  ;;  %608 = vmatprep.subr.bf16.mxu0 %v607_v56  ;;  %634 = vmatprep.subr.bf16.mxu1 %v712_v4  ;;  %v611_v6 = vpack.c.bf16 %v57_v63, %v56_v62  ;;  %v41_v7 = vld [vmem:[%s1031_s1 + $0x68] sm:$0xff]  ;;  %v72_v8 = vld [vmem:[%s1031_s1 + $0x160] sm:$0xff]  ;;  %v102_v10 = vcombine.high %v100_v1, %v100_v1  ;;  %v714_v46 = vmov 0.0   ;;  %vm715_vm1 = vmmov 0  }
  0x18   :  { %v73_v9 = vld [vmem:[%s1031_s1 + $0x168] sm:$0xff]  ;;  %v58_v11 = vld [vmem:[%s1031_s1 + $0xf0] sm:$0xff]  ;;  %v59_v12 = vld [vmem:[%s1031_s1 + $0xf8] sm:$0xff]  ;;  %173 = vmatprep.mubr.f32.mxu0 %v101_v0  ;;  %v613_v13 = vpack.c.bf16 %v41_v7, %v40_v5  ;;  %vm272_vm2 = vcmask 982016   ;;  %vm369_vm3 = vcmask 1043456   ;;  %vm365_vm4 = vcmask 687104  }
  0x19   :  { %460 = vmatprep.mubr.msk.f32.mxu1 %vm106_vm0, %v102_v10  ;;  %610 = vmatpush3.bf16.msra.mxu0 %v609_v2  ;;  %v638_v14 = vpack.c.bf16 %v73_v9, %v72_v8  ;;  %v42_v15 = vld [vmem:[%s1031_s1 + $0x70] sm:$0xff]  ;;  %v615_v16 = vpack.c.bf16 %v59_v12, %v58_v11  ;;  %v43_v17 = vld [vmem:[%s1031_s1 + $0x78] sm:$0xff]  ;;  %v76_v22 = vld [vmem:[%s1031_s1 + $0x180] sm:$0xff]  ;;  %vm443_vm5 = vcmask 74752  }
  0x1a   :  { %636 = vmatpush1.bf16.msra.mxu1 %v635_v3  ;;  %612 = vmatprep.subr.bf16.mxu0 %v611_v6  ;;  %v74_v18 = vld [vmem:[%s1031_s1 + $0x170] sm:$0xff]  ;;  %v75_v19 = vld [vmem:[%s1031_s1 + $0x178] sm:$0xff]  ;;  %v617_v20 = vpack.c.bf16 %v43_v17, %v42_v15  ;;  %v77_v23 = vld [vmem:[%s1031_s1 + $0x188] sm:$0xff]  ;;  %s716_s1 = smov [#allocation2]  }
  0x1b   :  { %637 = vmatprep.subr.bf16.mxu1 %v712_v4  ;;  %v641_v21 = vpack.c.bf16 %v75_v19, %v74_v18  ;;  %v250_v24 = vld [vmem:[%s1033_s3] sm:$0xff]  ;;  %v251_v25 = vld [vmem:[%s1033_s3 + $0x8] sm:$0xff]  ;;  %v644_v26 = vpack.c.bf16 %v77_v23, %v76_v22  ;;  %v252_v28 = vld [vmem:[%s1033_s3 + $0x10] sm:$0xff]  ;;  %s451_s15 = sshll.u32 %s716_s1, 4  ;;  %s452_s15 = int_to_ptr.vmem [resolvable:$true] %s451_s15 }
  0x1c   :  { %v647_v27 = vpack.c.bf16 %v251_v25, %v250_v24  ;;  %v253_v29 = vld [vmem:[%s1033_s3 + $0x18] sm:$0xff]  ;;  %v254_v31 = vld [vmem:[%s1033_s3 + $0x20] sm:$0xff]  ;;  %v255_v32 = vld [vmem:[%s1033_s3 + $0x28] sm:$0xff]  ;;  %p693_p1 = scmp.lt.s32.totalorder %s452_s15, %s452_s15 }
  0x1d   :  { %614 = vmatpush3.bf16.msra.mxu0 %v613_v13  ;;  %v650_v30 = vpack.c.bf16 %v253_v29, %v252_v28  ;;  %v653_v33 = vpack.c.bf16 %v255_v32, %v254_v31  ;;  %v256_v34 = vld [vmem:[%s1033_s3 + $0x30] sm:$0xff]  ;;  %v257_v35 = vld [vmem:[%s1033_s3 + $0x38] sm:$0xff]  ;;  %v258_v37 = vld [vmem:[%s1033_s3 + $0x40] sm:$0xff] }
  0x1e   :  { %639 = vmatpush1.bf16.msra.mxu1 %v638_v14  ;;  %616 = vmatprep.subr.bf16.mxu0 %v615_v16  ;;  %v656_v36 = vpack.c.bf16 %v257_v35, %v256_v34  ;;  %v259_v38 = vld [vmem:[%s1033_s3 + $0x48] sm:$0xff]  ;;  %v260_v40 = vld [vmem:[%s1033_s3 + $0x50] sm:$0xff]  ;;  %v261_v41 = vld [vmem:[%s1033_s3 + $0x58] sm:$0xff] }
  0x1f   :  { %640 = vmatprep.subr.bf16.mxu1 %v712_v4  ;;  %v659_v39 = vpack.c.bf16 %v259_v38, %v258_v37  ;;  %v662_v42 = vpack.c.bf16 %v261_v41, %v260_v40  ;;  %v262_v43 = vld [vmem:[%s1033_s3 + $0x60] sm:$0xff]  ;;  %v263_v44 = vld [vmem:[%s1033_s3 + $0x68] sm:$0xff]  ;;  %v264_v47 = vld [vmem:[%s1033_s3 + $0x70] sm:$0xff] }
  0x20   :  { %v665_v45 = vpack.c.bf16 %v263_v44, %v262_v43  ;;  %v347_v48 = vld [vmem:[%s1035_s5] sm:$0xff]  ;;  %v348_v49 = vld [vmem:[%s1035_s5 + $0x8] sm:$0xff]  ;;  %v349_v50 = vld [vmem:[%s1035_s5 + $0x10] sm:$0xff] }
  0x21   :  { %618 = vmatpush3.bf16.msra.mxu0 %v617_v20  ;;  %v668_v51 = vpack.c.bf16 %v348_v49, %v347_v48  ;;  %v350_v52 = vld [vmem:[%s1035_s5 + $0x18] sm:$0xff]  ;;  %v351_v54 = vld [vmem:[%s1035_s5 + $0x20] sm:$0xff]  ;;  %v352_v55 = vld [vmem:[%s1035_s5 + $0x28] sm:$0xff] }
  0x22   :  { %642 = vmatpush1.bf16.msra.mxu1 %v641_v21  ;;  %646 = vmatprep.subr.bf16.mxu0 %v712_v4  ;;  %v671_v53 = vpack.c.bf16 %v350_v52, %v349_v50  ;;  %v674_v56 = vpack.c.bf16 %v352_v55, %v351_v54  ;;  %v353_v57 = vld [vmem:[%s1035_s5 + $0x30] sm:$0xff]  ;;  %v354_v58 = vld [vmem:[%s1035_s5 + $0x38] sm:$0xff]  ;;  %v459_v62 = vld [vmem:[%s1032_s2] ss:$0 sm:$0xff] }
  0x23   :  { %643 = vmatprep.subr.bf16.mxu1 %v712_v4  ;;  %v677_v59 = vpack.c.bf16 %v354_v58, %v353_v57  ;;  %v355_v6 = vld [vmem:[%s1035_s5 + $0x40] sm:$0xff]  ;;  %v357_v8 = vld [vmem:[%s1035_s5 + $0x50] sm:$0xf] }
  0x24   :  { %174 = vmatmul.mubr.f32.vlgmr.msra.gmra.mrb[0].mxu0 %v93_v61  ;;  %v461_v9 = vld [vmem:[%s1034_s4] ss:$0 sm:$0xff] }
  0x25   :  { %648 = vmatpush3.bf16.msra.mxu0 %v647_v27  ;;  %559 = vmatprep.mubr.msk.f32.mxu0 %vm715_vm1, %v714_v46  ;;  %v463_v14 = vld [vmem:[%s1036_s6] ss:$0 sm:$0xff] }
  0x26   :  { %645 = vmatpush1.bf16.msra.mxu1 %v644_v26  ;;  %649 = vmatprep.subr.bf16.mxu0 %v712_v4 }
  0x27   :  { %667 = vmatprep.subr.bf16.mxu1 %v712_v4 }
  0x29   :  { %244 = vmatmul.mubr.f32.vlgmr.msra.gmra.mrb[0].mxu1 %v100_v1  ;;  %651 = vmatpush3.bf16.msra.mxu0 %v650_v30 }
  0x2a   :  { %652 = vmatprep.subr.bf16.mxu0 %v712_v4  ;;  %584 = vmatprep.mubr.msk.f32.mxu1 %vm715_vm1, %v714_v46 }
  0x2b   :  { %669 = vmatpush3.bf16.msra.mxu1 %v668_v51 }
  0x2c   :  { %670 = vmatprep.subr.bf16.mxu1 %v712_v4 }
  0x2d   :  { %654 = vmatpush3.bf16.msra.mxu0 %v653_v33 }
  0x2e   :  { %655 = vmatprep.subr.bf16.mxu0 %v712_v4 }
  0x2f   :  { %672 = vmatpush3.bf16.msra.mxu1 %v671_v53 }
  0x30   :  { %673 = vmatprep.subr.bf16.mxu1 %v712_v4 }
  0x31   :  { %657 = vmatpush3.bf16.msra.mxu0 %v656_v36 }
  0x32   :  { %658 = vmatprep.subr.bf16.mxu0 %v712_v4 }
  0x33   :  { %675 = vmatpush3.bf16.msra.mxu1 %v674_v56 }
  0x34   :  { %676 = vmatprep.subr.bf16.mxu1 %v712_v4 }
  0x35   :  { %660 = vmatpush3.bf16.msra.mxu0 %v659_v39 }
  0x36   :  { %661 = vmatprep.subr.bf16.mxu0 %v712_v4 }
  0x37   :  { %678 = vmatpush3.bf16.msra.mxu1 %v677_v59 }
  0x38   :  { %679 = vmatprep.subr.bf16.mxu1 %v712_v4 }
  0x39   :  { %663 = vmatpush3.bf16.msra.mxu0 %v662_v42 }
  0x3a   :  { %664 = vmatprep.subr.bf16.mxu0 %v712_v4  ;;  %v356_v4 = vld [vmem:[%s1035_s5 + $0x48] sm:$0xff]  ;;  %s688_s5 = scalar_lea.vmem %s452_s15, 32 }
  0x3b   :  { %v680_v7 = vpack.c.bf16 %v356_v4, %v355_v6  ;;  %p689_p0 = scmp.ne.s32.totalorder %s452_s15, %s688_s5  ;;  %p694_p2 = scmp.lt.s32.totalorder %s688_s5, %s688_s5 }
  0x3d   :  { %666 = vmatpush3.bf16.msra.mxu0 %v665_v45  ;;  %681 = vmatpush3.bf16.msra.mxu1 %v680_v7  ;;  %p695_p3 = por %p694_p2, %p693_p1 }
  0x3e   :  { %557 = vmatprep.subr.mxu0 %v714_v46  ;;  %582 = vmatprep.subr.mxu1 %v714_v46 }
  0x3f   :  { %p696_p4 = pnand %p695_p3, %p689_p0 }
  0x41   :  { %558 = vmatpush3.msra.mxu0 %v264_v47  ;;  %583 = vmatpush3.msk.msra.mxu1 %vm369_vm3, %v357_v8 }
  0xf7   :  { %v498_v60 = vpop.f32.mrb[0].mxu0 }
  0xf8   :  { %v499_v61 = vpop.f32.mrb[1].mxu0 }
  0xf9   :  { %v500_v63 = vadd.f32 %v499_v61, %v498_v60 }
  0xfb   :  { %v176_v0 = vadd.f32 %v500_v63, %v459_v62 }
  0xfc   :  { %v245_v1 = vpop.f32.mrb[0].mxu1 }
  0xfd   :  { %v247_v2 = vpop.f32.mrb[1].mxu1  ;;  %v246_v3 = vadd.f32 %v245_v1, %v176_v0 }
  0xff   :  { %v249_v5 = vmax.f32 %v246_v3, 0.0 }
 0x101   :  { %560 = vmatmul.mubr.msk.f32.vlgmr.msra.gmra.mrb[2].mxu0 %vm272_vm2, %v249_v5 }
 0x1d4   :  { %v342_v10 = vpop.f32.mrb[2].mxu0 }
 0x1d5   :  { %v343_v11 = vadd.f32 %v461_v9, %v342_v10  ;;  %v561_v12 = vpop.f32.mrb[3].mxu0 }
 0x1d7   :  { %v346_v13 = vmax.f32 %v343_v11, 0.0 }
 0x1d9   :  { %585 = vmatmul.mubr.msk.f32.vlgmr.msra.gmra.mrb[2].mxu1 %vm365_vm4, %v346_v13 }
 0x2ac   :  { %v439_v15 = vpop.f32.mrb[2].mxu1 }
 0x2ad   :  { %v440_v16 = vadd.f32 %v463_v14, %v439_v15  ;;  %v586_v17 = vpop.f32.mrb[3].mxu1 }
 0x2af   :  { %444 = vst.msk [vmem:[#allocation2] sm:$0x3] %vm443_vm5, %v440_v16 }
 0x2b0   :  { %699 = shalt.err (!%p696_p4)
}
 0x2b1   :  { %s700_s17 = scalar_lea.hbm %s1037_s7, 32 }
 0x2b2   :  { %p701_p5 = scmp.ne.s32.totalorder %s1037_s7, %s700_s17  ;;  %p704_p6 = scmp.lt.u32.totalorder %s700_s17, %s1037_s7 }
 0x2b4   :  { %p706_p7 = pnand %p704_p6, %p701_p5 }
 0x2b6   :  { %709 = shalt.err (!%p706_p7)
}
 0x2b7   :  { %454 = dma.vmem_to_hbm [thread:$0]  %s452_s15, 32, %s1037_s7, [#allocation3]  }
 0x2b8   :  { %710 = dma.done.wait [#allocation3], 32  }
 0x2b9   :  { %711 = vsyncadd [#allocation3], 4294967264 }
 0x2ba   :  { %458 = vsyncpa [#allocation3], 1 }

// kernel: convnet_forward.4
= control target key start
LH: loop header
LB: loop body
LE: loop exit
PB: predicated region body
PF: predicated region fallthrough
CT: control target
= control target key end

     0   :  { %s3353_s15 = smov 0   ;;  %s3803_s0 = inlined_call_operand.vmem [shape: f32[2,6,196], index: 0, kind: input, shape index: {}]   ;;  %s3804_s1 = inlined_call_operand.vmem [shape: f32[25,16,6], index: 1, kind: input, shape index: {}]   ;;  %s3805_s2 = inlined_call_operand.vmem [shape: f32[16,1], index: 2, kind: input, shape index: {}]   ;;  %s3806_s3 = inlined_call_operand.vmem [shape: f32[121,25], index: 3, kind: input, shape index: {}]   ;;  %s3807_s4 = inlined_call_operand.vmem [shape: f32[2,16,25], index: 4, kind: output, shape index: {}]  }
   0x1 LB: > { %s2909_s16 = sadd.s32 4294967295, %s3299_s15   ;;  %p2913_p0 = scmp.ge.s32.totalorder %s3299_s15, 1  ;;  %s3299_s15 = sphi %s3353_s15, %s14_s15  }
   0x2   : > { %p162_p1 = scmp.lt.s32.totalorder %s3299_s15, 3 }
   0x4   : > { %p163_p2 = pnand %p2913_p0, %p162_p1 }
   0x5   : > { %p188_p3 = scmp.lt.s32.totalorder (!%p163_p2), %s2909_s16, 1  ;;  %v3301_v0 = vmov (!%p163_p2), 0.0   ;;  %s3302_s21 = smov (!%p163_p2), 98   ;;  %v2689_v3 = vld [vmem:[%s3805_s2] sm:$0xff] (!%p163_p2)  ;;  %v2690_v4 = vld [vmem:[%s3805_s2 + $0x8] sm:$0xff] (!%p163_p2)  ;;  %v3326_v5 = vmov (!%p163_p2), 0  }
   0x6   : > { %166 = sbr.rel (%p163_p2) target bundleno = 915 (0x393), region = 36  ;;  %1372 = vmatprep.mubr.f32.mxu0 (!%p163_p2), %v3301_v0  ;;  %289 = vmatprep.mubr.f32.mxu1 (!%p163_p2), %v3301_v0  ;;  %s3303_s22 = smov (!%p163_p2), 99   ;;  %vm1396_vm0 = vcmask (!%p163_p2), 801792   ;;  %vm220_vm1 = vcmask (!%p163_p2), 1045504   ;;  %vm1296_vm2 = vcmask (!%p163_p2), 809984   ;;  %vm213_vm3 = vcmask (!%p163_p2), 48128  }
   0x7   : > { %s3304_s23 = smov (!%p163_p2), 97   ;;  %s3305_s24 = smov (!%p163_p2), 127   ;;  %3291 = vset.pattern.permute.xlu0 (!%p163_p2), %v3326_v5  ;;  %3292 = vset.pattern.permute.xlu1 (!%p163_p2), %v3326_v5  ;;  %v2982_v10 = vld [vmem:[%s3804_s1 + $0xb0] sm:$0xff] (!%p163_p2)  ;;  %v2983_v15 = vld [vmem:[%s3804_s1 + $0xb8] sm:$0xff] (!%p163_p2)  ;;  %vm1496_vm4 = vcmask (!%p163_p2), 793600   ;;  %vm211_vm5 = vcmask (!%p163_p2), 1039360  }
   0x8   : > { %s3306_s25 = smov (!%p163_p2), 96   ;;  %s3307_s26 = smov (!%p163_p2), 86   ;;  %v2918_v18 = vld [vmem:[%s3804_s1 + $0x10] sm:$0xff] (!%p163_p2)  ;;  %v2988_v19 = vld [vmem:[%s3804_s1 + $0xc0] sm:$0xff] (!%p163_p2)  ;;  %v2919_v22 = vld [vmem:[%s3804_s1 + $0x18] sm:$0xff] (!%p163_p2)  ;;  %vm1596_vm6 = vcmask (!%p163_p2), 785408  }
   0x9   : > { %s3308_s27 = smov (!%p163_p2), 126   ;;  %s3309_s28 = smov (!%p163_p2), 85   ;;  %v2989_v23 = vld [vmem:[%s3804_s1 + $0xc8] sm:$0xff] (!%p163_p2)  ;;  %v200_v26 = vld [vmem:[%s3804_s1] sm:$0xff] (!%p163_p2)  ;;  %v2994_v27 = vld [vmem:[%s3804_s1 + $0xd0] sm:$0xff] (!%p163_p2)  ;;  %vm396_vm7 = vcmask (!%p163_p2), 1031168  }
   0xa   : > { %s3310_s29 = smov (!%p163_p2), 125   ;;  %s3311_s30 = smov (!%p163_p2), 84   ;;  %v201_v31 = vld [vmem:[%s3804_s1 + $0x8] sm:$0xff] (!%p163_p2)  ;;  %v2995_v32 = vld [vmem:[%s3804_s1 + $0xd8] sm:$0xff] (!%p163_p2)  ;;  %vm1696_vm8 = vcmask (!%p163_p2), 703488   ;;  %v2928_v36 = vld [vmem:[%s3804_s1 + $0x20] sm:$0xff] (!%p163_p2) }
   0xb   : > { %s3312_s5 = smov (!%p163_p2), 124   ;;  %s3313_s6 = smov (!%p163_p2), 83   ;;  %v3000_v37 = vld [vmem:[%s3804_s1 + $0xe0] sm:$0xff] (!%p163_p2)  ;;  %vm496_vm9 = vcmask (!%p163_p2), 1022976   ;;  %v2929_v41 = vld [vmem:[%s3804_s1 + $0x28] sm:$0xff] (!%p163_p2)  ;;  %vm1796_vm10 = vcmask (!%p163_p2), 695296  }
   0xc   : > { %s3314_s7 = smov (!%p163_p2), 114   ;;  %s3315_s8 = smov (!%p163_p2), 82   ;;  %v3001_v42 = vld [vmem:[%s3804_s1 + $0xe8] sm:$0xff] (!%p163_p2)  ;;  %v2934_v46 = vld [vmem:[%s3804_s1 + $0x30] sm:$0xff] (!%p163_p2)  ;;  %vm596_vm11 = vcmask (!%p163_p2), 1014784   ;;  %v2935_v51 = vld [vmem:[%s3804_s1 + $0x38] sm:$0xff] (!%p163_p2) }
   0xd   : > { %s3809_s16 = smov (!%p188_p3, %s2909_s16), 1  ;;  %s3316_s9 = smov 113   ;;  %v3006_v47 = vld [vmem:[%s3804_s1 + $0xf0] sm:$0xff]  ;;  %v3007_v52 = vld [vmem:[%s3804_s1 + $0xf8] sm:$0xff]  ;;  %vm1896_vm12 = vcmask 687104   ;;  %v2940_v56 = vld [vmem:[%s3804_s1 + $0x40] sm:$0xff] }
   0xe   : > { %s3071_s17 = sshll.u32 %s3809_s16, 4  ;;  %s3317_s10 = smov 72   ;;  %v3012_v57 = vld [vmem:[%s3804_s1 + $0x100] sm:$0xff]  ;;  %vm696_vm13 = vcmask 932864   ;;  %v2941_v61 = vld [vmem:[%s3804_s1 + $0x48] sm:$0xff]  ;;  %vm1996_vm14 = vcmask 678912  }
   0xf   : > { %s192_s20 = scalar_lea.vmem %s3803_s0, %s3071_s17  ;;  %s3318_s11 = smov 112   ;;  %v3013_v62 = vld [vmem:[%s3804_s1 + $0x108] sm:$0xff]  ;;  %vm796_vm15 = vcmask 924672  }
  0x10   : > { %v3371_v1 = vld [vmem:[%s192_s20] sm:$0x3f]  ;;  %v3375_v2 = vld [vmem:[%s192_s20 + $0x8] sm:$0x3f]  ;;  %s3319_s12 = smov 71   ;;  %s3320_s13 = smov 111  }
  0x11   : > { %1392 = vrot.lane.b32.xlu1 %v3371_v1, %s3302_s21  ;;  %1292 = vrot.lane.b32.xlu0 %v3371_v1, %s3303_s22  ;;  %s3321_s14 = smov 70   ;;  %s3322_s18 = smov 110  }
  0x12   : > { %s3323_s19 = smov 69   ;;  %s3324_s20 = smov 100  }
  0x15   : > { %1394 = vrot.lane.b32.xlu1 %v3375_v2, %s3302_s21  ;;  %1294 = vrot.lane.b32.xlu0 %v3375_v2, %s3303_s22  ;;  %s3325_s21 = smov 68  }
  0x19   : > { %1494 = vrot.lane.b32.xlu1 %v3375_v2, %s3304_s23  ;;  %1492 = vrot.lane.b32.xlu0 %v3371_v1, %s3304_s23 }
  0x1d   : > { %209 = vrot.lane.b32.xlu1 %v3375_v2, %s3305_s24  ;;  %207 = vrot.lane.b32.xlu0 %v3371_v1, %s3305_s24 }
  0x21   : > { %1594 = vrot.lane.b32.xlu1 %v3375_v2, %s3306_s25  ;;  %1592 = vrot.lane.b32.xlu0 %v3371_v1, %s3306_s25 }
  0x25   : > { %1694 = vrot.lane.b32.xlu1 %v3375_v2, %s3307_s26  ;;  %1692 = vrot.lane.b32.xlu0 %v3371_v1, %s3307_s26 }
  0x29   : > { %394 = vrot.lane.b32.xlu1 %v3375_v2, %s3308_s27  ;;  %392 = vrot.lane.b32.xlu0 %v3371_v1, %s3308_s27 }
  0x2d   : > { %1794 = vrot.lane.b32.xlu1 %v3375_v2, %s3309_s28  ;;  %1792 = vrot.lane.b32.xlu0 %v3371_v1, %s3309_s28 }
  0x31   : > { %494 = vrot.lane.b32.xlu1 %v3375_v2, %s3310_s29  ;;  %492 = vrot.lane.b32.xlu0 %v3371_v1, %s3310_s29 }
  0x35   : > { %1894 = vrot.lane.b32.xlu1 %v3375_v2, %s3311_s30  ;;  %1892 = vrot.lane.b32.xlu0 %v3371_v1, %s3311_s30 }
  0x39   : > { %594 = vrot.lane.b32.xlu1 %v3375_v2, %s3312_s5  ;;  %592 = vrot.lane.b32.xlu0 %v3371_v1, %s3312_s5 }
  0x3d   : > { %1994 = vrot.lane.b32.xlu1 %v3375_v2, %s3313_s6  ;;  %1992 = vrot.lane.b32.xlu0 %v3371_v1, %s3313_s6 }
  0x41   : > { %694 = vrot.lane.b32.xlu1 %v3375_v2, %s3314_s7  ;;  %692 = vrot.lane.b32.xlu0 %v3371_v1, %s3314_s7 }
  0x45   : > { %2094 = vrot.lane.b32.xlu1 %v3375_v2, %s3315_s8  ;;  %2092 = vrot.lane.b32.xlu0 %v3371_v1, %s3315_s8 }
  0x49   : > { %794 = vrot.lane.b32.xlu1 %v3375_v2, %s3316_s9  ;;  %792 = vrot.lane.b32.xlu0 %v3371_v1, %s3316_s9  ;;  %s197_s9 = scalar_lea.vmem %s3807_s4, %s3071_s17 }
  0x4d   : > { %2194 = vrot.lane.b32.xlu1 %v3375_v2, %s3317_s10  ;;  %2192 = vrot.lane.b32.xlu0 %v3371_v1, %s3317_s10 }
  0x51   : > { %894 = vrot.lane.b32.xlu1 %v3375_v2, %s3318_s11  ;;  %892 = vrot.lane.b32.xlu0 %v3371_v1, %s3318_s11 }
  0x55   : > { %2294 = vrot.lane.b32.xlu1 %v3375_v2, %s3319_s12  ;;  %2292 = vrot.lane.b32.xlu0 %v3371_v1, %s3319_s12 }
  0x59   : > { %994 = vrot.lane.b32.xlu1 %v3375_v2, %s3320_s13  ;;  %992 = vrot.lane.b32.xlu0 %v3371_v1, %s3320_s13 }
  0x5d   : > { %2394 = vrot.lane.b32.xlu1 %v3375_v2, %s3321_s14  ;;  %2392 = vrot.lane.b32.xlu0 %v3371_v1, %s3321_s14 }
  0x61   : > { %1094 = vrot.lane.b32.xlu1 %v3375_v2, %s3322_s18  ;;  %1092 = vrot.lane.b32.xlu0 %v3371_v1, %s3322_s18 }
  0x65   : > { %2494 = vrot.lane.b32.xlu1 %v3375_v2, %s3323_s19  ;;  %2492 = vrot.lane.b32.xlu0 %v3371_v1, %s3323_s19 }
  0x69   : > { %1194 = vrot.lane.b32.xlu1 %v3375_v2, %s3324_s20  ;;  %1192 = vrot.lane.b32.xlu0 %v3371_v1, %s3324_s20 }
  0x6d   : > { %2594 = vrot.lane.b32.xlu1 %v3375_v2, %s3325_s21  ;;  %2592 = vrot.lane.b32.xlu0 %v3371_v1, %s3325_s21 }
  0x71   : > { %2693 = vperm.xlu0 %3291, %v2689_v3   ;;  %2698 = vperm.xlu1 %3292, %v2690_v4   ;;  %v2946_v3 = vld [vmem:[%s3804_s1 + $0x50] sm:$0xff] }
  0x72   : > { %v3018_v4 = vld [vmem:[%s3804_s1 + $0x110] sm:$0xff] }
  0x83   : > { %v1393_v6 = vpop.permute.xlu1 %1392  ;;  %v1293_v7 = vpop.permute.xlu0 %1292 }
  0x87   : > { %v1395_v8 = vpop.permute.xlu1 %1394  ;;  %v1295_v9 = vpop.permute.xlu0 %1294 }
  0x88   : > { %v1397_v11 = vsel %vm1396_vm0, %v1393_v6, %v1395_v8  ;;  %2984 = vmatprep.subr.msk.mxu0 %vm220_vm1, %v1295_v9  ;;  %v1297_v12 = vsel %vm1296_vm2, %v1293_v7, %v1295_v9  ;;  %v3019_v9 = vld [vmem:[%s3804_s1 + $0x118] sm:$0xff]  ;;  %vm2096_vm0 = vcmask 670720   ;;  %vm896_vm2 = vcmask 916480  }
  0x89   : > { %2985 = vmatpush1.msk.msra.mxu0 %vm220_vm1, %v1297_v12 }
  0x8a   : > { %2986 = vmatmul.mubr.msk.f32.vlgmr.msra.gmra.mrb[0].mxu0 %vm213_vm3, %v2982_v10  ;;  %2990 = vmatprep.subr.msk.mxu0 %vm220_vm1, %v1395_v8  ;;  %v2947_v8 = vld [vmem:[%s3804_s1 + $0x58] sm:$0xff] }
  0x8b   : > { %v1495_v13 = vpop.permute.xlu1 %1494  ;;  %2991 = vmatpush1.msk.msra.mxu0 %vm220_vm1, %v1397_v11  ;;  %v1493_v14 = vpop.permute.xlu0 %1492  ;;  %1378 = vmatprep.mubr.f32.mxu0 %v3301_v0 }
  0x8c   : > { %2996 = vmatprep.subr.msk.mxu0 %vm220_vm1, %v1495_v13  ;;  %v1497_v20 = vsel %vm1496_vm4, %v1493_v14, %v1495_v13  ;;  %v2952_v13 = vld [vmem:[%s3804_s1 + $0x60] sm:$0xff]  ;;  %vm2196_vm4 = vcmask 588800  }
  0x8d   : > { %v3024_v14 = vld [vmem:[%s3804_s1 + $0x120] sm:$0xff] }
  0x8e   : > { %2987 = vmatmul.mubr.msk.f32.gmra.mrb[2].mxu0 %vm213_vm3, %v2983_v15 }
  0x8f   : > { %v210_v16 = vpop.permute.xlu1 %209  ;;  %v208_v17 = vpop.permute.xlu0 %207  ;;  %1472 = vmatprep.mubr.f32.mxu0 %v3301_v0 }
  0x90   : > { %2920 = vmatprep.subr.msk.mxu1 %vm220_vm1, %v210_v16  ;;  %v212_v21 = vsel %vm211_vm5, %v208_v17, %v210_v16 }
  0x91   : > { %2921 = vmatpush1.msk.msra.mxu1 %vm220_vm1, %v212_v21 }
  0x92   : > { %2922 = vmatmul.mubr.msk.f32.vlgmr.msra.gmra.mrb[0].mxu1 %vm213_vm3, %v2918_v18  ;;  %2992 = vmatmul.mubr.msk.f32.vlgmr.msra.gmra.mrb[0].mxu0 %vm213_vm3, %v2988_v19  ;;  %v2953_v18 = vld [vmem:[%s3804_s1 + $0x68] sm:$0xff] }
  0x93   : > { %2997 = vmatpush1.msk.msra.mxu0 %vm220_vm1, %v1497_v20  ;;  %295 = vmatprep.mubr.f32.mxu1 %v3301_v0  ;;  %v1595_v24 = vpop.permute.xlu1 %1594  ;;  %v1593_v25 = vpop.permute.xlu0 %1592  ;;  %v3025_v19 = vld [vmem:[%s3804_s1 + $0x128] sm:$0xff] }
  0x94   : > { %1478 = vmatprep.mubr.f32.mxu0 %v3301_v0  ;;  %2924 = vmatprep.subr.msk.mxu1 %vm220_vm1, %v3375_v2  ;;  %v1597_v30 = vsel %vm1596_vm6, %v1593_v25, %v1595_v24  ;;  %vm996_vm6 = vcmask 908288  }
  0x95   : > { %2925 = vmatpush1.msk.msra.mxu1 %vm220_vm1, %v3371_v1  ;;  %3002 = vmatprep.subr.msk.mxu0 %vm220_vm1, %v1595_v24  ;;  %v3030_v24 = vld [vmem:[%s3804_s1 + $0x130] sm:$0xff] }
  0x96   : > { %2923 = vmatmul.mubr.msk.f32.gmra.mrb[2].mxu1 %vm213_vm3, %v2919_v22  ;;  %2993 = vmatmul.mubr.msk.f32.gmra.mrb[2].mxu0 %vm213_vm3, %v2989_v23  ;;  %v2958_v23 = vld [vmem:[%s3804_s1 + $0x70] sm:$0xff] }
  0x97   : > { %376 = vmatprep.mubr.f32.mxu1 %v3301_v0  ;;  %1572 = vmatprep.mubr.f32.mxu0 %v3301_v0  ;;  %v1695_v28 = vpop.permute.xlu1 %1694  ;;  %v1693_v29 = vpop.permute.xlu0 %1692 }
  0x98   : > { %v1697_v40 = vsel %vm1696_vm8, %v1693_v29, %v1695_v28  ;;  %v3031_v29 = vld [vmem:[%s3804_s1 + $0x138] sm:$0xff]  ;;  %vm1096_vm8 = vcmask 900096  }
  0x9a   : > { %2926 = vmatmul.mubr.msk.f32.vlgmr.msra.gmra.mrb[0].mxu1 %vm213_vm3, %v200_v26  ;;  %2998 = vmatmul.mubr.msk.f32.vlgmr.msra.gmra.mrb[0].mxu0 %vm213_vm3, %v2994_v27 }
  0x9b   : > { %3003 = vmatpush1.msk.msra.mxu0 %vm220_vm1, %v1597_v30  ;;  %382 = vmatprep.mubr.f32.mxu1 %v3301_v0  ;;  %v395_v33 = vpop.permute.xlu1 %394  ;;  %v393_v34 = vpop.permute.xlu0 %392 }
  0x9c   : > { %1578 = vmatprep.mubr.f32.mxu0 %v3301_v0  ;;  %v397_v35 = vsel %vm396_vm7, %v393_v34, %v395_v33  ;;  %2930 = vmatprep.subr.msk.mxu1 %vm220_vm1, %v395_v33  ;;  %vm2296_vm7 = vcmask 580608   ;;  %v2964_v33 = vld [vmem:[%s3804_s1 + $0x80] sm:$0xff] }
  0x9d   : > { %2931 = vmatpush1.msk.msra.mxu1 %vm220_vm1, %v397_v35  ;;  %3008 = vmatprep.subr.msk.mxu0 %vm220_vm1, %v1695_v28  ;;  %v2959_v28 = vld [vmem:[%s3804_s1 + $0x78] sm:$0xff]  ;;  %v3036_v34 = vld [vmem:[%s3804_s1 + $0x140] sm:$0xff] }
  0x9e   : > { %2927 = vmatmul.mubr.msk.f32.gmra.mrb[2].mxu1 %vm213_vm3, %v201_v31  ;;  %2999 = vmatmul.mubr.msk.f32.gmra.mrb[2].mxu0 %vm213_vm3, %v2995_v32 }
  0x9f   : > { %472 = vmatprep.mubr.f32.mxu1 %v3301_v0  ;;  %1672 = vmatprep.mubr.f32.mxu0 %v3301_v0  ;;  %v1795_v38 = vpop.permute.xlu1 %1794  ;;  %v1793_v39 = vpop.permute.xlu0 %1792 }
  0xa0   : > { %v1797_v50 = vsel %vm1796_vm10, %v1793_v39, %v1795_v38  ;;  %v3037_v39 = vld [vmem:[%s3804_s1 + $0x148] sm:$0xff]  ;;  %vm1196_vm10 = vcmask 818176  }
  0xa2   : > { %2932 = vmatmul.mubr.msk.f32.vlgmr.msra.gmra.mrb[0].mxu1 %vm213_vm3, %v2928_v36  ;;  %3004 = vmatmul.mubr.msk.f32.vlgmr.msra.gmra.mrb[0].mxu0 %vm213_vm3, %v3000_v37 }
  0xa3   : > { %3009 = vmatpush1.msk.msra.mxu0 %vm220_vm1, %v1697_v40  ;;  %478 = vmatprep.mubr.f32.mxu1 %v3301_v0  ;;  %v495_v43 = vpop.permute.xlu1 %494  ;;  %v493_v44 = vpop.permute.xlu0 %492 }
  0xa4   : > { %1678 = vmatprep.mubr.f32.mxu0 %v3301_v0  ;;  %v497_v45 = vsel %vm496_vm9, %v493_v44, %v495_v43  ;;  %2936 = vmatprep.subr.msk.mxu1 %vm220_vm1, %v495_v43  ;;  %vm2396_vm9 = vcmask 572416   ;;  %v2970_v43 = vld [vmem:[%s3804_s1 + $0x90] sm:$0xff] }
  0xa5   : > { %2937 = vmatpush1.msk.msra.mxu1 %vm220_vm1, %v497_v45  ;;  %3014 = vmatprep.subr.msk.mxu0 %vm220_vm1, %v1795_v38  ;;  %v2965_v38 = vld [vmem:[%s3804_s1 + $0x88] sm:$0xff]  ;;  %v3042_v44 = vld [vmem:[%s3804_s1 + $0x150] sm:$0xff] }
  0xa6   : > { %2933 = vmatmul.mubr.msk.f32.gmra.mrb[2].mxu1 %vm213_vm3, %v2929_v41  ;;  %3005 = vmatmul.mubr.msk.f32.gmra.mrb[2].mxu0 %vm213_vm3, %v3001_v42 }
  0xa7   : > { %572 = vmatprep.mubr.f32.mxu1 %v3301_v0  ;;  %1772 = vmatprep.mubr.f32.mxu0 %v3301_v0  ;;  %v1895_v48 = vpop.permute.xlu1 %1894  ;;  %v1893_v49 = vpop.permute.xlu0 %1892 }
  0xa8   : > { %v1897_v60 = vsel %vm1896_vm12, %v1893_v49, %v1895_v48  ;;  %v3043_v49 = vld [vmem:[%s3804_s1 + $0x158] sm:$0xff]  ;;  %vm2596_vm12 = vcmask 556032  }
  0xaa   : > { %2938 = vmatmul.mubr.msk.f32.vlgmr.msra.gmra.mrb[0].mxu1 %vm213_vm3, %v2934_v46  ;;  %3010 = vmatmul.mubr.msk.f32.vlgmr.msra.gmra.mrb[0].mxu0 %vm213_vm3, %v3006_v47 }
  0xab   : > { %3015 = vmatpush1.msk.msra.mxu0 %vm220_vm1, %v1797_v50  ;;  %578 = vmatprep.mubr.f32.mxu1 %v3301_v0  ;;  %v595_v53 = vpop.permute.xlu1 %594  ;;  %v593_v54 = vpop.permute.xlu0 %592 }
  0xac   : > { %1778 = vmatprep.mubr.f32.mxu0 %v3301_v0  ;;  %v597_v55 = vsel %vm596_vm11, %v593_v54, %v595_v53  ;;  %2942 = vmatprep.subr.msk.mxu1 %vm220_vm1, %v595_v53  ;;  %vm2496_vm11 = vcmask 564224   ;;  %v2976_v53 = vld [vmem:[%s3804_s1 + $0xa0] sm:$0xff] }
  0xad   : > { %2943 = vmatpush1.msk.msra.mxu1 %vm220_vm1, %v597_v55  ;;  %3020 = vmatprep.subr.msk.mxu0 %vm220_vm1, %v1895_v48  ;;  %v2971_v48 = vld [vmem:[%s3804_s1 + $0x98] sm:$0xff]  ;;  %v3048_v54 = vld [vmem:[%s3804_s1 + $0x160] sm:$0xff] }
  0xae   : > { %2939 = vmatmul.mubr.msk.f32.gmra.mrb[2].mxu1 %vm213_vm3, %v2935_v51  ;;  %3011 = vmatmul.mubr.msk.f32.gmra.mrb[2].mxu0 %vm213_vm3, %v3007_v52 }
  0xaf   : > { %672 = vmatprep.mubr.f32.mxu1 %v3301_v0  ;;  %1872 = vmatprep.mubr.f32.mxu0 %v3301_v0  ;;  %v1995_v58 = vpop.permute.xlu1 %1994  ;;  %v1993_v59 = vpop.permute.xlu0 %1992 }
  0xb0   : > { %v1997_v7 = vsel %vm1996_vm14, %v1993_v59, %v1995_v58 }
  0xb2   : > { %2944 = vmatmul.mubr.msk.f32.vlgmr.msra.gmra.mrb[0].mxu1 %vm213_vm3, %v2940_v56  ;;  %3016 = vmatmul.mubr.msk.f32.vlgmr.msra.gmra.mrb[0].mxu0 %vm213_vm3, %v3012_v57  ;;  %v2977_v57 = vld [vmem:[%s3804_s1 + $0xa8] sm:$0xff] }
  0xb3   : > { %3021 = vmatpush1.msk.msra.mxu0 %vm220_vm1, %v1897_v60  ;;  %678 = vmatprep.mubr.f32.mxu1 %v3301_v0  ;;  %v695_v63 = vpop.permute.xlu1 %694  ;;  %v693_v1 = vpop.permute.xlu0 %692  ;;  %v3054_v60 = vld [vmem:[%s3804_s1 + $0x170] sm:$0xff] }
  0xb4   : > { %1878 = vmatprep.mubr.f32.mxu0 %v3301_v0  ;;  %v697_v2 = vsel %vm696_vm13, %v693_v1, %v695_v63  ;;  %2948 = vmatprep.subr.msk.mxu1 %vm220_vm1, %v695_v63  ;;  %v3060_v63 = vld [vmem:[%s3804_s1 + $0x180] sm:$0xff]  ;;  %v3061_v1 = vld [vmem:[%s3804_s1 + $0x188] sm:$0xff] }
  0xb5   : > { %2949 = vmatpush1.msk.msra.mxu1 %vm220_vm1, %v697_v2  ;;  %3026 = vmatprep.subr.msk.mxu0 %vm220_vm1, %v1995_v58  ;;  %v3049_v58 = vld [vmem:[%s3804_s1 + $0x168] sm:$0xff] }
  0xb6   : > { %2945 = vmatmul.mubr.msk.f32.gmra.mrb[2].mxu1 %vm213_vm3, %v2941_v61  ;;  %3017 = vmatmul.mubr.msk.f32.gmra.mrb[2].mxu0 %vm213_vm3, %v3013_v62  ;;  %v3055_v62 = vld [vmem:[%s3804_s1 + $0x178] sm:$0xff] }
  0xb7   : > { %772 = vmatprep.mubr.f32.mxu1 %v3301_v0  ;;  %1972 = vmatprep.mubr.f32.mxu0 %v3301_v0  ;;  %v2095_v5 = vpop.permute.xlu1 %2094  ;;  %v2093_v6 = vpop.permute.xlu0 %2092 }
  0xb8   : > { %v2097_v17 = vsel %vm2096_vm0, %v2093_v6, %v2095_v5 }
  0xba   : > { %2950 = vmatmul.mubr.msk.f32.vlgmr.msra.gmra.mrb[0].mxu1 %vm213_vm3, %v2946_v3  ;;  %3022 = vmatmul.mubr.msk.f32.vlgmr.msra.gmra.mrb[0].mxu0 %vm213_vm3, %v3018_v4 }
  0xbb   : > { %3027 = vmatpush1.msk.msra.mxu0 %vm220_vm1, %v1997_v7  ;;  %778 = vmatprep.mubr.f32.mxu1 %v3301_v0  ;;  %v795_v10 = vpop.permute.xlu1 %794  ;;  %v793_v11 = vpop.permute.xlu0 %792 }
  0xbc   : > { %1978 = vmatprep.mubr.f32.mxu0 %v3301_v0  ;;  %v797_v12 = vsel %vm796_vm15, %v793_v11, %v795_v10  ;;  %2954 = vmatprep.subr.msk.mxu1 %vm220_vm1, %v795_v10  ;;  %v2749_v11 = vld [vmem:[%s3806_s3] sm:$0xff]  ;;  %vm2765_vm15 = vcmask 990208  }
  0xbd   : > { %2955 = vmatpush1.msk.msra.mxu1 %vm220_vm1, %v797_v12  ;;  %3032 = vmatprep.subr.msk.mxu0 %vm220_vm1, %v2095_v5  ;;  %v2751_v12 = vld [vmem:[%s3806_s3 + $0x10] sm:$0xff] }
  0xbe   : > { %2951 = vmatmul.mubr.msk.f32.gmra.mrb[2].mxu1 %vm213_vm3, %v2947_v8  ;;  %3023 = vmatmul.mubr.msk.f32.gmra.mrb[2].mxu0 %vm213_vm3, %v3019_v9 }
  0xbf   : > { %872 = vmatprep.mubr.f32.mxu1 %v3301_v0  ;;  %2072 = vmatprep.mubr.f32.mxu0 %v3301_v0  ;;  %v2195_v15 = vpop.permute.xlu1 %2194  ;;  %v2193_v16 = vpop.permute.xlu0 %2192 }
  0xc0   : > { %v2197_v27 = vsel %vm2196_vm4, %v2193_v16, %v2195_v15 }
  0xc2   : > { %2956 = vmatmul.mubr.msk.f32.vlgmr.msra.gmra.mrb[0].mxu1 %vm213_vm3, %v2952_v13  ;;  %3028 = vmatmul.mubr.msk.f32.vlgmr.msra.gmra.mrb[0].mxu0 %vm213_vm3, %v3024_v14 }
  0xc3   : > { %3033 = vmatpush1.msk.msra.mxu0 %vm220_vm1, %v2097_v17  ;;  %878 = vmatprep.mubr.f32.mxu1 %v3301_v0  ;;  %v895_v20 = vpop.permute.xlu1 %894  ;;  %v893_v21 = vpop.permute.xlu0 %892 }
  0xc4   : > { %2078 = vmatprep.mubr.f32.mxu0 %v3301_v0  ;;  %v897_v22 = vsel %vm896_vm2, %v893_v21, %v895_v20  ;;  %2960 = vmatprep.subr.msk.mxu1 %vm220_vm1, %v895_v20  ;;  %v2753_v20 = vld [vmem:[%s3806_s3 + $0x20] sm:$0xff]  ;;  %v2754_v21 = vld [vmem:[%s3806_s3 + $0x28] sm:$0xff] }
  0xc5   : > { %2961 = vmatpush1.msk.msra.mxu1 %vm220_vm1, %v897_v22  ;;  %3038 = vmatprep.subr.msk.mxu0 %vm220_vm1, %v2195_v15  ;;  %v2752_v15 = vld [vmem:[%s3806_s3 + $0x18] sm:$0xff] }
  0xc6   : > { %2957 = vmatmul.mubr.msk.f32.gmra.mrb[2].mxu1 %vm213_vm3, %v2953_v18  ;;  %3029 = vmatmul.mubr.msk.f32.gmra.mrb[2].mxu0 %vm213_vm3, %v3025_v19  ;;  %v3130_v19 = vpack.c.bf16 %v2752_v15, %v2751_v12 }
  0xc7   : > { %972 = vmatprep.mubr.f32.mxu1 %v3301_v0  ;;  %2172 = vmatprep.mubr.f32.mxu0 %v3301_v0  ;;  %v2295_v25 = vpop.permute.xlu1 %2294  ;;  %v2293_v26 = vpop.permute.xlu0 %2292 }
  0xc8   : > { %v2297_v37 = vsel %vm2296_vm7, %v2293_v26, %v2295_v25 }
  0xca   : > { %2962 = vmatmul.mubr.msk.f32.vlgmr.msra.gmra.mrb[0].mxu1 %vm213_vm3, %v2958_v23  ;;  %3034 = vmatmul.mubr.msk.f32.vlgmr.msra.gmra.mrb[0].mxu0 %vm213_vm3, %v3030_v24 }
  0xcb   : > { %3039 = vmatpush1.msk.msra.mxu0 %vm220_vm1, %v2197_v27  ;;  %978 = vmatprep.mubr.f32.mxu1 %v3301_v0  ;;  %v995_v30 = vpop.permute.xlu1 %994  ;;  %v993_v31 = vpop.permute.xlu0 %992 }
  0xcc   : > { %2178 = vmatprep.mubr.f32.mxu0 %v3301_v0  ;;  %v997_v32 = vsel %vm996_vm6, %v993_v31, %v995_v30  ;;  %2966 = vmatprep.subr.msk.mxu1 %vm220_vm1, %v995_v30  ;;  %v2755_v30 = vld [vmem:[%s3806_s3 + $0x30] sm:$0xff]  ;;  %v2756_v31 = vld [vmem:[%s3806_s3 + $0x38] sm:$0xff] }
  0xcd   : > { %2967 = vmatpush1.msk.msra.mxu1 %vm220_vm1, %v997_v32  ;;  %3044 = vmatprep.subr.msk.mxu0 %vm220_vm1, %v2295_v25 }
  0xce   : > { %2963 = vmatmul.mubr.msk.f32.gmra.mrb[2].mxu1 %vm213_vm3, %v2959_v28  ;;  %3035 = vmatmul.mubr.msk.f32.gmra.mrb[2].mxu0 %vm213_vm3, %v3031_v29  ;;  %v3134_v28 = vpack.c.bf16 %v2754_v21, %v2753_v20 }
  0xcf   : > { %1072 = vmatprep.mubr.f32.mxu1 %v3301_v0  ;;  %2272 = vmatprep.mubr.f32.mxu0 %v3301_v0  ;;  %v2395_v35 = vpop.permute.xlu1 %2394  ;;  %v2393_v36 = vpop.permute.xlu0 %2392 }
  0xd0   : > { %v2397_v47 = vsel %vm2396_vm9, %v2393_v36, %v2395_v35  ;;  %v2758_v36 = vld [vmem:[%s3806_s3 + $0x48] sm:$0xff] }
  0xd2   : > { %2968 = vmatmul.mubr.msk.f32.vlgmr.msra.gmra.mrb[0].mxu1 %vm213_vm3, %v2964_v33  ;;  %3040 = vmatmul.mubr.msk.f32.vlgmr.msra.gmra.mrb[0].mxu0 %vm213_vm3, %v3036_v34  ;;  %v3138_v34 = vpack.c.bf16 %v2756_v31, %v2755_v30 }
  0xd3   : > { %3045 = vmatpush1.msk.msra.mxu0 %vm220_vm1, %v2297_v37  ;;  %1078 = vmatprep.mubr.f32.mxu1 %v3301_v0  ;;  %v1095_v40 = vpop.permute.xlu1 %1094  ;;  %v1093_v41 = vpop.permute.xlu0 %1092 }
  0xd4   : > { %2278 = vmatprep.mubr.f32.mxu0 %v3301_v0  ;;  %v1097_v42 = vsel %vm1096_vm8, %v1093_v41, %v1095_v40  ;;  %2972 = vmatprep.subr.msk.mxu1 %vm220_vm1, %v1095_v40  ;;  %v2761_v41 = vld [vmem:[%s3806_s3 + $0x60] sm:$0xff] }
  0xd5   : > { %2973 = vmatpush1.msk.msra.mxu1 %vm220_vm1, %v1097_v42  ;;  %3050 = vmatprep.subr.msk.mxu0 %vm220_vm1, %v2395_v35  ;;  %v2757_v35 = vld [vmem:[%s3806_s3 + $0x40] sm:$0xff]  ;;  %v2762_v42 = vld [vmem:[%s3806_s3 + $0x68] sm:$0xff] }
  0xd6   : > { %2969 = vmatmul.mubr.msk.f32.gmra.mrb[2].mxu1 %vm213_vm3, %v2965_v38  ;;  %3041 = vmatmul.mubr.msk.f32.gmra.mrb[2].mxu0 %vm213_vm3, %v3037_v39  ;;  %v3142_v37 = vpack.c.bf16 %v2758_v36, %v2757_v35  ;;  %v2759_v38 = vld [vmem:[%s3806_s3 + $0x50] sm:$0xff]  ;;  %v2760_v39 = vld [vmem:[%s3806_s3 + $0x58] sm:$0xff] }
  0xd7   : > { %1172 = vmatprep.mubr.f32.mxu1 %v3301_v0  ;;  %2372 = vmatprep.mubr.f32.mxu0 %v3301_v0  ;;  %v2495_v45 = vpop.permute.xlu1 %2494  ;;  %v2493_v46 = vpop.permute.xlu0 %2492  ;;  %v3146_v40 = vpack.c.bf16 %v2760_v39, %v2759_v38 }
  0xd8   : > { %v2497_v55 = vsel %vm2496_vm11, %v2493_v46, %v2495_v45 }
  0xda   : > { %2974 = vmatmul.mubr.msk.f32.vlgmr.msra.gmra.mrb[0].mxu1 %vm213_vm3, %v2970_v43  ;;  %3046 = vmatmul.mubr.msk.f32.vlgmr.msra.gmra.mrb[0].mxu0 %vm213_vm3, %v3042_v44  ;;  %v3150_v43 = vpack.c.bf16 %v2762_v42, %v2761_v41  ;;  %v2763_v44 = vld [vmem:[%s3806_s3 + $0x70] sm:$0xff] }
  0xdb   : > { %3051 = vmatpush1.msk.msra.mxu0 %vm220_vm1, %v2397_v47  ;;  %1178 = vmatprep.mubr.f32.mxu1 %v3301_v0  ;;  %v1195_v50 = vpop.permute.xlu1 %1194  ;;  %v1193_v51 = vpop.permute.xlu0 %1192 }
  0xdc   : > { %2378 = vmatprep.mubr.f32.mxu0 %v3301_v0  ;;  %v1197_v52 = vsel %vm1196_vm10, %v1193_v51, %v1195_v50  ;;  %2978 = vmatprep.subr.msk.mxu1 %vm220_vm1, %v1195_v50 }
  0xdd   : > { %2979 = vmatpush1.msk.msra.mxu1 %vm220_vm1, %v1197_v52  ;;  %3056 = vmatprep.subr.msk.mxu0 %vm220_vm1, %v2495_v45  ;;  %v2764_v45 = vld [vmem:[%s3806_s3 + $0x78] sm:$0x1] }
  0xde   : > { %2975 = vmatmul.mubr.msk.f32.gmra.mrb[2].mxu1 %vm213_vm3, %v2971_v48  ;;  %3047 = vmatmul.mubr.msk.f32.gmra.mrb[2].mxu0 %vm213_vm3, %v3043_v49  ;;  %v3154_v46 = vpack.c.bf16 %v2764_v45, %v2763_v44 }
  0xdf   : > { %1272 = vmatprep.mubr.f32.mxu1 %v3301_v0  ;;  %2472 = vmatprep.mubr.f32.mxu0 %v3301_v0  ;;  %v2595_v56 = vpop.permute.xlu1 %2594  ;;  %v2593_v59 = vpop.permute.xlu0 %2592 }
  0xe0   : > { %v2597_v61 = vsel %vm2596_vm12, %v2593_v59, %v2595_v56 }
  0xe2   : > { %2980 = vmatmul.mubr.msk.f32.vlgmr.msra.gmra.mrb[0].mxu1 %vm213_vm3, %v2976_v53  ;;  %3052 = vmatmul.mubr.msk.f32.vlgmr.msra.gmra.mrb[0].mxu0 %vm213_vm3, %v3048_v54 }
  0xe3   : > { %3057 = vmatpush1.msk.msra.mxu0 %vm220_vm1, %v2497_v55  ;;  %1278 = vmatprep.mubr.f32.mxu1 %v3301_v0 }
  0xe4   : > { %2478 = vmatprep.mubr.f32.mxu0 %v3301_v0  ;;  %3062 = vmatprep.subr.msk.mxu0 %vm220_vm1, %v2595_v56 }
  0xe6   : > { %2981 = vmatmul.mubr.msk.f32.gmra.mrb[2].mxu1 %vm213_vm3, %v2977_v57  ;;  %3053 = vmatmul.mubr.msk.f32.gmra.mrb[2].mxu0 %vm213_vm3, %v3049_v58 }
  0xe7   : > { %2572 = vmatprep.mubr.f32.mxu0 %v3301_v0 }
  0xea   : > { %3058 = vmatmul.mubr.msk.f32.vlgmr.msra.gmra.mrb[0].mxu0 %vm213_vm3, %v3054_v60 }
  0xeb   : > { %3063 = vmatpush1.msk.msra.mxu0 %vm220_vm1, %v2597_v61  ;;  %2578 = vmatprep.mubr.f32.mxu0 %v3301_v0  ;;  %vm2772_vm1 = vcmask 1040384  }
  0xee   : > { %3059 = vmatmul.mubr.msk.f32.gmra.mrb[2].mxu0 %vm213_vm3, %v3055_v62 }
  0xef   : > { %2672 = vmatprep.mubr.f32.mxu0 %v3301_v0 }
  0xf0   : > { %v2694_v7 = vpop.permute.xlu0 %2693  ;;  %v2699_v18 = vpop.permute.xlu1 %2698 }
  0xf2   : > { %3064 = vmatmul.mubr.msk.f32.vlgmr.msra.gmra.mrb[0].mxu0 %vm213_vm3, %v3060_v63 }
  0xf3   : > { %2678 = vmatprep.mubr.f32.mxu0 %v3301_v0  ;;  %v2750_v0 = vld [vmem:[%s3806_s3 + $0x8] sm:$0xff] }
  0xf4   : > { %v3126_v14 = vpack.c.bf16 %v2750_v0, %v2749_v11 }
  0xf6   : > { %3065 = vmatmul.mubr.msk.f32.gmra.mrb[2].mxu0 %vm213_vm3, %v3061_v1  ;;  %3127 = vmatprep.subr.bf16.mxu1 %v3126_v14  ;;  %vm3327_vm3 = vmmov 1  }
  0xf7   : > { %3129 = vmatpush3.bf16.msra.mxu1 %v3126_v14  ;;  %vm3155_vm14 = vmpackc.low %vm2772_vm1, %vm3327_vm3 }
  0xf8   : > { %3131 = vmatprep.subr.bf16.mxu1 %v3130_v19 }
  0xfb   : > { %3133 = vmatpush3.bf16.msra.mxu1 %v3130_v19 }
  0xfc   : > { %3135 = vmatprep.subr.bf16.mxu1 %v3134_v28 }
  0xff   : > { %3137 = vmatpush3.bf16.msra.mxu1 %v3134_v28 }
 0x100   : > { %3139 = vmatprep.subr.bf16.mxu1 %v3138_v34 }
 0x103   : > { %3141 = vmatpush3.bf16.msra.mxu1 %v3138_v34 }
 0x104   : > { %3143 = vmatprep.subr.bf16.mxu1 %v3142_v37 }
 0x107   : > { %3145 = vmatpush3.bf16.msra.mxu1 %v3142_v37 }
 0x108   : > { %3147 = vmatprep.subr.bf16.mxu1 %v3146_v40 }
 0x10b   : > { %3149 = vmatpush3.bf16.msra.mxu1 %v3146_v40 }
 0x10c   : > { %3151 = vmatprep.subr.bf16.mxu1 %v3150_v43 }
 0x10f   : > { %3153 = vmatpush3.bf16.msra.mxu1 %v3150_v43 }
 0x110   : > { %3156 = vmatprep.subr.msk.bf16.mxu1 %vm3155_vm14, %v3154_v46 }
 0x113   : > { %3159 = vmatpush3.bf16.msk.msra.mxu1 %vm3155_vm14, %v3154_v46 }
 0x1b5   : > { %v1274_v2 = vpop.f32.mrb[0].mxu1 }
 0x1b6   : > { %v1276_v3 = vpop.f32.mrb[1].mxu1 }
 0x1b9   : > { %v1280_v4 = vpop.f32.mrb[2].mxu1 }
 0x1ba   : > { %v1282_v5 = vpop.f32.mrb[3].mxu1 }
 0x1c5   : > { %v2674_v6 = vpop.f32.mrb[0].mxu0 }
 0x1c6   : > { %v3160_v8 = vadd.f32 %v2674_v6, %v1274_v2  ;;  %v2676_v9 = vpop.f32.mrb[1].mxu0 }
 0x1c7   : > { %v3161_v10 = vadd.f32 %v2676_v9, %v1276_v3 }
 0x1c8   : > { %v2701_v13 = vadd.f32 %v3160_v8, %v2694_v7 }
 0x1c9   : > { %v2702_v16 = vadd.f32 %v3161_v10, %v2694_v7  ;;  %v2680_v17 = vpop.f32.mrb[2].mxu0 }
 0x1ca   : > { %v2705_v22 = vmax.f32 %v2701_v13, 0.0  ;;  %v3162_v23 = vadd.f32 %v2680_v17, %v1280_v4  ;;  %v2682_v24 = vpop.f32.mrb[3].mxu0 }
 0x1cb   : > { %v2706_v25 = vmax.f32 %v2702_v16, 0.0  ;;  %v3163_v26 = vadd.f32 %v2682_v24, %v1282_v5 }
 0x1cc   : > { %v2703_v27 = vadd.f32 %v3162_v23, %v2699_v18  ;;  %2713 = vrot.lane.b32.xlu1 %v2705_v22, %s3305_s24 }
 0x1cd   : > { %v2704_v29 = vadd.f32 %v3163_v26, %v2699_v18  ;;  %2715 = vrot.lane.b32.xlu0 %v2706_v25, %s3305_s24 }
 0x1ce   : > { %v2707_v32 = vmax.f32 %v2703_v27, 0.0 }
 0x1cf   : > { %v2708_v33 = vmax.f32 %v2704_v29, 0.0 }
 0x1d0   : > { %2717 = vrot.lane.b32.xlu1 %v2707_v32, %s3305_s24 }
 0x1d1   : > { %2719 = vrot.lane.b32.xlu0 %v2708_v33, %s3305_s24 }
 0x23e   : > { %v2714_v47 = vpop.permute.xlu1 %2713 }
 0x23f   : > { %v2716_v48 = vpop.permute.xlu0 %2715 }
 0x240   : > { %v2721_v49 = vsel %vm211_vm5, %v2714_v47, %v2716_v48  ;;  %v2728_v50 = vmax.f32 %v2706_v25, %v2716_v48 }
 0x241   : > { %v2727_v51 = vmax.f32 %v2705_v22, %v2721_v49 }
 0x242   : > { %2737 = vrot.lane.b32.xlu0 %v2728_v50, %s3314_s7  ;;  %v2718_v52 = vpop.permute.xlu1 %2717 }
 0x243   : > { %v2720_v53 = vpop.permute.xlu0 %2719  ;;  %2735 = vrot.lane.b32.xlu1 %v2727_v51, %s3314_s7 }
 0x244   : > { %v2722_v54 = vsel %vm211_vm5, %v2718_v52, %v2720_v53  ;;  %v2730_v55 = vmax.f32 %v2708_v33, %v2720_v53  ;;  %vm2851_vm5 = vcmask 203776  }
 0x245   : > { %v2729_v56 = vmax.f32 %v2707_v32, %v2722_v54 }
 0x246   : > { %2741 = vrot.lane.b32.xlu0 %v2730_v55, %s3314_s7 }
 0x247   : > { %2739 = vrot.lane.b32.xlu1 %v2729_v56, %s3314_s7 }
 0x2b4   : > { %v2738_v57 = vpop.permute.xlu0 %2737 }
 0x2b5   : > { %v2736_v58 = vpop.permute.xlu1 %2735 }
 0x2b6   : > { %v2743_v59 = vsel %vm696_vm13, %v2736_v58, %v2738_v57 }
 0x2b7   : > { %v2747_v60 = vmax.f32 %v2727_v51, %v2743_v59 }
 0x2b8   : > { %v2742_v61 = vpop.permute.xlu0 %2741 }
 0x2b9   : > { %3123 = vmatprep.mubr.msk.f32.mxu1 %vm2765_vm15, %v2747_v60  ;;  %v2740_v62 = vpop.permute.xlu1 %2739 }
 0x2ba   : > { %v2744_v63 = vsel %vm696_vm13, %v2740_v62, %v2742_v61 }
 0x2bb   : > { %v2748_v1 = vmax.f32 %v2729_v56, %v2744_v63 }
 0x2bd   : > { %3124 = vmatmul.mubr.msk.f32.vlgmr.msra.gmra.mrb[4].mxu1 %vm2765_vm15, %v2748_v1 }
 0x390   : > { %v3125_v2 = vpop.f32.mrb[4].mxu1 }
 0x391   : > { %2853 = vst.msk [vmem:[%s197_s9 + $0x8] sm:$0xff] %vm2851_vm5, %v3125_v2  ;;  %v2842_v3 = vpop.f32.mrb[5].mxu1 }
 0x392   : > { %2852 = vst.msk [vmem:[%s197_s9] sm:$0xff] %vm2851_vm5, %v2842_v3 }
 0x393 PF: > { %s14_s15 = sadd.s32 1, %s3299_s15  }
 0x394   : > { %p11_p4 = scmp.ge.s32.totalorder %s14_s15, 4  }
 0x396   :  { %13 = sbr.rel (!%p11_p4) target bundleno = 1 (0x1), region = 90 }

// kernel: convnet_forward.3
= control target key start
LH: loop header
LB: loop body
LE: loop exit
PB: predicated region body
PF: predicated region fallthrough
CT: control target
= control target key end

     0   :  { %9 = vsyncpa [#allocation3], 0  ;;  %s10052_s15 = smov 0   ;;  %s11339_s0 = inlined_call_operand.vmem [shape: f32[2,3,1024], index: 0, kind: input, shape index: {}]   ;;  %s11340_s1 = inlined_call_operand.vmem [shape: f32[25,6,3], index: 1, kind: input, shape index: {}]   ;;  %s11341_s2 = inlined_call_operand.vmem [shape: f32[6,1], index: 2, kind: input, shape index: {}]   ;;  %s11342_s3 = inlined_call_operand.hbm [shape: f32[859,196], index: 3, kind: input, shape index: {}]   ;;  %s11343_s4 = inlined_call_operand.vmem [shape: f32[2,6,196], index: 4, kind: output, shape index: {}]  }
   0x1 LB: > { %s10058_s16 = sadd.s32 4294967295, %s9999_s15   ;;  %p9025_p0 = scmp.ge.s32.totalorder %s9999_s15, 1  ;;  %s9999_s15 = sphi %s10052_s15, %s15_s15  }
   0x2   : > { %p135_p1 = scmp.lt.s32.totalorder %s9999_s15, 3  ;;  %s10001_s17 = smov [#allocation2]  }
   0x3   : > { %s153_s18 = sshll.u32 %s10001_s17, 4  ;;  %p11344_p3 = scmp.eq.s32.totalorder %s10058_s16, 0  ;;  %s154_s18 = int_to_ptr.vmem [resolvable:$true] %s153_s18 }
   0x4   : > { %p10062_p2 = pnand %p9025_p0, %p135_p1  ;;  %s9961_s23 = scalar_lea.hbm %s11342_s3, 27648 }
   0x5   : > { %p9962_p6 = scmp.ne.s32.totalorder %s11342_s3, %s9961_s23  ;;  %p9968_p10 = scmp.lt.u32.totalorder %s9961_s23, %s11342_s3 }
   0x6   : > { %s11346_s19 = scalar_select %p10062_p2, 1, 0 }
   0x7   : > { %p9887_p4 = pneg %p10062_p2 }
   0x9   : > { %p10071_p5 = pnand %p11344_p3, %p9887_p4 }
   0xb   : > { %p9963_p7 = pneg %p10071_p5 }
   0xd   : > { %p9964_p8 = pnand %p9963_p7, %p9962_p6 }
   0xf   : > { %p9965_p9 = pneg %p9964_p8 }
  0x11   : > { %p9970_p11 = pnand %p9968_p10, %p9965_p9 }
  0x13   : > { %9973 = shalt.err (!%p9970_p11)
}
  0x14   : > { %s9974_s28 = scalar_lea.vmem %s154_s18, 27648  ;;  %p9982_p1 = scmp.lt.s32.totalorder %s154_s18, %s154_s18 }
  0x15   : > { %p9975_p12 = scmp.ne.s32.totalorder %s154_s18, %s9974_s28  ;;  %p9983_p4 = scmp.lt.s32.totalorder %s9974_s28, %s9974_s28 }
  0x17   : > { %p9977_p13 = pnand %p9975_p12, %p9963_p7  ;;  %p9984_p3 = por %p9983_p4, %p9982_p1 }
  0x19   : > { %p9978_p0 = pneg %p9977_p13 }
  0x1b   : > { %p9985_p2 = pnand %p9984_p3, %p9978_p0 }
  0x1d   : > { %9988 = shalt.err (!%p9985_p2)
}
  0x1e   : > { %s10002_s29 = smov 256   ;;  %s10003_s30 = smov 16  }
  0x1f   : > { %9890 = dma.hbm_to_vmem [thread:$0]  (!%p10071_p5), %s11342_s3, 27648, %s154_s18, [#allocation3], %s10002_s29, %s10002_s29, %s10003_s30  }
  0x20   : > { %p11348_p6 = scmp.ne.s32.totalorder %s11346_s19, 0 }
  0x21   : > { %p11349_p8 = scmp.eq.s32.totalorder (!%p11348_p6), %s10058_s16, 0 }
  0x22   : > { %177 = sbr.rel (%p11348_p6) target bundleno = 1244 (0x4dc), region = 36 }
  0x29   : > { %9994 = dma.done.wait (%p11349_p8), [#allocation3], 27648   ;;  %p11350_p7 = pmov %p11349_p8 }
  0x2a   : > { %p203_p2 = scmp.lt.s32.totalorder %s10058_s16, 1  ;;  %v10004_v0 = vmov 0.0   ;;  %s10005_s11 = smov 127   ;;  %vm10006_vm0 = vmmov 0   ;;  %vm241_vm1 = vcmask 1039360   ;;  %vm252_vm2 = vcmask 1042432  }
  0x2b   : > { %9996 = vsyncadd (%p11350_p7), [#allocation3], 4294939648  ;;  %331 = vmatprep.mubr.f32.mxu0 %v10004_v0  ;;  %9400 = vmatprep.subr.mxu1 %v10004_v0  ;;  %s10007_s12 = smov 126   ;;  %s10008_s13 = smov 125   ;;  %v9034_v17 = vld [vmem:[%s11340_s1 + $0x8] sm:$0x3f] }
  0x2c   : > { %s11352_s16 = smov (!%p203_p2, %s10058_s16), 1  ;;  %9402 = vmatprep.mubr.msk.f32.mxu1 %vm10006_vm0, %v10004_v0  ;;  %s10009_s14 = smov 124   ;;  %vm248_vm3 = vcmask 23552   ;;  %v10320_v30 = vld [vmem:[%s11340_s1 + $0x10] sm:$0x3f]  ;;  %vm1196_vm4 = vcmask 1022976  }
  0x2d   : > { %s9338_s7 = sshll.u32 %s11352_s16, 5  ;;  %s10010_s17 = smov 96   ;;  %v217_v31 = vld [vmem:[%s11340_s1] sm:$0x3f]  ;;  %vm866_vm5 = vcmask 1031168   ;;  %vm1526_vm6 = vcmask 1014784  }
  0x2e   : > { %s10105_s10 = scalar_lea.vmem %s11339_s0, %s9338_s7  ;;  %s10011_s18 = smov 95   ;;  %v10378_v40 = vld [vmem:[%s11340_s1 + $0x18] sm:$0x3f]  ;;  %v10478_v56 = vld [vmem:[%s11340_s1 + $0x20] sm:$0x3f]  ;;  %vm1859_vm7 = vcmask 785408  }
  0x2f   : > { %v10110_v1 = vld [vmem:[%s10105_s10 + $0x8] sm:$0x77]  ;;  %v10113_v2 = vld [vmem:[%s10105_s10] sm:$0x77]  ;;  %v10124_v4 = vld [vmem:[%s10105_s10 + $0x10] sm:$0x77] }
  0x30   : > { %231 = vrot.lane.b32.xlu0 %v10110_v1, %s10005_s11  ;;  %227 = vrot.lane.b32.xlu1 %v10113_v2, %s10005_s11  ;;  %v10121_v3 = vcombine.high %v10110_v1, %v10110_v1  ;;  %v10132_v5 = vcombine.high %v10124_v4, %v10124_v4  ;;  %v10136_v6 = vcombine.high %v10113_v2, %v10113_v2  ;;  %v10143_v7 = vld [vmem:[%s10105_s10 + $0x18] sm:$0x77]  ;;  %s10012_s19 = smov 94   ;;  %s10013_s20 = smov 93   ;;  %vm2192_vm8 = vcmask 777216  }
  0x31   : > { %v10205_v8 = vcombine.high %v10143_v7, %v10143_v7  ;;  %s10014_s21 = smov 92   ;;  %s10015_s24 = smov 64   ;;  %vm2525_vm9 = vcmask 769024   ;;  %vm2858_vm10 = vcmask 760832   ;;  %vm3191_vm11 = vcmask 752640  }
  0x32   : > { %s10016_s5 = smov 63   ;;  %s10017_s8 = smov 62   ;;  %vm3524_vm12 = vcmask 523264   ;;  %vm3857_vm13 = vcmask 515072   ;;  %vm4190_vm14 = vcmask 506880   ;;  %vm4523_vm15 = vcmask 498688  }
  0x33   : > { %s10019_s22 = smov 60   ;;  %s10020_s25 = smov 32  }
  0x34   : > { %235 = vrot.lane.b32.xlu0 %v10124_v4, %s10005_s11  ;;  %233 = vrot.lane.b32.xlu1 %v10121_v3, %s10005_s11  ;;  %s10021_s28 = smov 31  }
  0x38   : > { %237 = vrot.lane.b32.xlu1 %v10132_v5, %s10005_s11  ;;  %229 = vrot.lane.b32.xlu0 %v10136_v6, %s10005_s11 }
  0x3c   : > { %854 = vrot.lane.b32.xlu1 %v10136_v6, %s10007_s12  ;;  %239 = vrot.lane.b32.xlu0 %v10143_v7, %s10005_s11 }
  0x40   : > { %852 = vrot.lane.b32.xlu1 %v10113_v2, %s10007_s12  ;;  %856 = vrot.lane.b32.xlu0 %v10110_v1, %s10007_s12 }
  0x44   : > { %860 = vrot.lane.b32.xlu1 %v10124_v4, %s10007_s12  ;;  %858 = vrot.lane.b32.xlu0 %v10121_v3, %s10007_s12 }
  0x48   : > { %864 = vrot.lane.b32.xlu1 %v10143_v7, %s10007_s12  ;;  %862 = vrot.lane.b32.xlu0 %v10132_v5, %s10007_s12 }
  0x4c   : > { %1190 = vrot.lane.b32.xlu1 %v10124_v4, %s10008_s13  ;;  %1188 = vrot.lane.b32.xlu0 %v10121_v3, %s10008_s13 }
  0x50   : > { %1184 = vrot.lane.b32.xlu1 %v10136_v6, %s10008_s13  ;;  %1186 = vrot.lane.b32.xlu0 %v10110_v1, %s10008_s13 }
  0x54   : > { %1192 = vrot.lane.b32.xlu1 %v10132_v5, %s10008_s13  ;;  %1182 = vrot.lane.b32.xlu0 %v10113_v2, %s10008_s13 }
  0x58   : > { %1518 = vrot.lane.b32.xlu1 %v10121_v3, %s10009_s14  ;;  %1194 = vrot.lane.b32.xlu0 %v10143_v7, %s10008_s13 }
  0x5c   : > { %1516 = vrot.lane.b32.xlu1 %v10110_v1, %s10009_s14  ;;  %1520 = vrot.lane.b32.xlu0 %v10124_v4, %s10009_s14 }
  0x60   : > { %1512 = vrot.lane.b32.xlu1 %v10113_v2, %s10009_s14  ;;  %1514 = vrot.lane.b32.xlu0 %v10136_v6, %s10009_s14 }
  0x64   : > { %1524 = vrot.lane.b32.xlu1 %v10143_v7, %s10009_s14  ;;  %1522 = vrot.lane.b32.xlu0 %v10132_v5, %s10009_s14 }
  0x68   : > { %1851 = vrot.lane.b32.xlu1 %v10124_v4, %s10010_s17  ;;  %1849 = vrot.lane.b32.xlu0 %v10121_v3, %s10010_s17 }
  0x6c   : > { %1845 = vrot.lane.b32.xlu1 %v10136_v6, %s10010_s17  ;;  %1847 = vrot.lane.b32.xlu0 %v10110_v1, %s10010_s17 }
  0x70   : > { %1855 = vrot.lane.b32.xlu1 %v10143_v7, %s10010_s17  ;;  %1843 = vrot.lane.b32.xlu0 %v10113_v2, %s10010_s17 }
  0x74   : > { %1853 = vrot.lane.b32.xlu1 %v10132_v5, %s10010_s17  ;;  %1857 = vrot.lane.b32.xlu0 %v10205_v8, %s10010_s17 }
  0x78   : > { %2184 = vrot.lane.b32.xlu1 %v10124_v4, %s10011_s18  ;;  %2182 = vrot.lane.b32.xlu0 %v10121_v3, %s10011_s18 }
  0x7c   : > { %2178 = vrot.lane.b32.xlu1 %v10136_v6, %s10011_s18  ;;  %2180 = vrot.lane.b32.xlu0 %v10110_v1, %s10011_s18 }
  0x80   : > { %2188 = vrot.lane.b32.xlu1 %v10143_v7, %s10011_s18  ;;  %2176 = vrot.lane.b32.xlu0 %v10113_v2, %s10011_s18 }
  0x84   : > { %2186 = vrot.lane.b32.xlu1 %v10132_v5, %s10011_s18  ;;  %2190 = vrot.lane.b32.xlu0 %v10205_v8, %s10011_s18 }
  0x88   : > { %2517 = vrot.lane.b32.xlu1 %v10124_v4, %s10012_s19  ;;  %2515 = vrot.lane.b32.xlu0 %v10121_v3, %s10012_s19 }
  0x8c   : > { %2511 = vrot.lane.b32.xlu1 %v10136_v6, %s10012_s19  ;;  %2513 = vrot.lane.b32.xlu0 %v10110_v1, %s10012_s19 }
  0x90   : > { %2521 = vrot.lane.b32.xlu1 %v10143_v7, %s10012_s19  ;;  %2509 = vrot.lane.b32.xlu0 %v10113_v2, %s10012_s19 }
  0x94   : > { %2519 = vrot.lane.b32.xlu1 %v10132_v5, %s10012_s19  ;;  %2523 = vrot.lane.b32.xlu0 %v10205_v8, %s10012_s19  ;;  %s10018_s19 = smov 61  }
  0x98   : > { %2850 = vrot.lane.b32.xlu1 %v10124_v4, %s10013_s20  ;;  %2848 = vrot.lane.b32.xlu0 %v10121_v3, %s10013_s20 }
  0x9c   : > { %2844 = vrot.lane.b32.xlu1 %v10136_v6, %s10013_s20  ;;  %2846 = vrot.lane.b32.xlu0 %v10110_v1, %s10013_s20 }
  0xa0   : > { %2854 = vrot.lane.b32.xlu1 %v10143_v7, %s10013_s20  ;;  %2842 = vrot.lane.b32.xlu0 %v10113_v2, %s10013_s20 }
  0xa2   : > { %v232_v9 = vpop.permute.xlu0 %231  ;;  %v228_v10 = vpop.permute.xlu1 %227 }
  0xa4   : > { %2852 = vrot.lane.b32.xlu1 %v10132_v5, %s10013_s20  ;;  %2856 = vrot.lane.b32.xlu0 %v10205_v8, %s10013_s20 }
  0xa6   : > { %v236_v11 = vpop.permute.xlu0 %235  ;;  %v234_v12 = vpop.permute.xlu1 %233 }
  0xa7   : > { %v10256_v19 = vsel %vm241_vm1, %v234_v12, %v236_v11  ;;  %v10261_v21 = vsel %vm241_vm1, %v232_v9, %v234_v12 }
  0xa8   : > { %3183 = vrot.lane.b32.xlu1 %v10124_v4, %s10014_s21  ;;  %3181 = vrot.lane.b32.xlu0 %v10121_v3, %s10014_s21 }
  0xaa   : > { %v238_v13 = vpop.permute.xlu1 %237  ;;  %v230_v14 = vpop.permute.xlu0 %229 }
  0xab   : > { %v10240_v15 = vsel %vm241_vm1, %v230_v14, %v232_v9  ;;  %v242_v16 = vsel %vm241_vm1, %v228_v10, %v230_v14  ;;  %v10284_v25 = vsel %vm241_vm1, %v236_v11, %v238_v13 }
  0xac   : > { %3177 = vrot.lane.b32.xlu1 %v10136_v6, %s10014_s21  ;;  %3179 = vrot.lane.b32.xlu0 %v10110_v1, %s10014_s21 }
  0xad   : > { %9035 = vmatprep.subr.msk.mxu0 %vm252_vm2, %v10240_v15 }
  0xae   : > { %9036 = vmatpush1.msk.msra.mxu0 %vm252_vm2, %v242_v16  ;;  %v10253_v18 = vpop.permute.xlu1 %854  ;;  %v10258_v20 = vpop.permute.xlu0 %239 }
  0xaf   : > { %9037 = vmatmul.mubr.msk.f32.vlgmr.msra.gmra.mrb[0].mxu0 %vm248_vm3, %v9034_v17  ;;  %9038 = vmatprep.subr.msk.mxu0 %vm252_vm2, %v10256_v19  ;;  %v10268_v22 = vsel %vm241_vm1, %v238_v13, %v10258_v20 }
  0xb0   : > { %9039 = vmatpush1.msk.msra.mxu0 %vm252_vm2, %v10261_v21  ;;  %3187 = vrot.lane.b32.xlu1 %v10143_v7, %s10014_s21 }
  0xb1   : > { %3175 = vrot.lane.b32.xlu0 %v10113_v2, %s10014_s21  ;;  %9041 = vmatprep.subr.msk.mxu0 %vm252_vm2, %v10268_v22 }
  0xb2   : > { %402 = vmatprep.mubr.f32.mxu0 %v10004_v0  ;;  %v10279_v23 = vpop.permute.xlu1 %852  ;;  %v10281_v24 = vpop.permute.xlu0 %856 }
  0xb3   : > { %9040 = vmatmul.mubr.msk.f32.vlgmr.msra.gmra.mrb[2].mxu0 %vm248_vm3, %v9034_v17  ;;  %v10385_v41 = vsel %vm866_vm5, %v10253_v18, %v10281_v24  ;;  %v867_v44 = vsel %vm866_vm5, %v10279_v23, %v10253_v18 }
  0xb4   : > { %9042 = vmatpush1.msk.msra.mxu0 %vm252_vm2, %v10284_v25  ;;  %3185 = vrot.lane.b32.xlu1 %v10132_v5, %s10014_s21 }
  0xb5   : > { %3189 = vrot.lane.b32.xlu0 %v10205_v8, %s10014_s21  ;;  %473 = vmatprep.mubr.f32.mxu0 %v10004_v0 }
  0xb6   : > { %9390 = vmatprep.subr.mxu0 %v10004_v0  ;;  %v10295_v26 = vpop.permute.xlu1 %860  ;;  %v10297_v27 = vpop.permute.xlu0 %858 }
  0xb7   : > { %9043 = vmatmul.mubr.msk.f32.vlgmr.msra.gmra.mrb[4].mxu0 %vm248_vm3, %v9034_v17  ;;  %v10409_v45 = vsel %vm866_vm5, %v10297_v27, %v10295_v26  ;;  %v10425_v48 = vsel %vm866_vm5, %v10281_v24, %v10297_v27  ;;  %v9093_v24 = vld [vmem:[%s11340_s1 + $0x28] sm:$0x3f] }
  0xb8   : > { %9391 = vmatpush3.msk.msra.mxu0 %vm252_vm2, %v10258_v20  ;;  %3516 = vrot.lane.b32.xlu1 %v10124_v4, %s10015_s24 }
  0xb9   : > { %3514 = vrot.lane.b32.xlu0 %v10121_v3, %s10015_s24  ;;  %9392 = vmatprep.mubr.msk.f32.mxu0 %vm10006_vm0, %v10004_v0 }
  0xba   : > { %v10308_v28 = vpop.permute.xlu1 %864  ;;  %v10310_v29 = vpop.permute.xlu0 %862  ;;  %9046 = vmatprep.subr.msk.mxu0 %vm252_vm2, %v10136_v6 }
  0xbb   : > { %9393 = vmatmul.mubr.msk.f32.vlgmr.msra.gmra.mrb[6].mxu0 %vm248_vm3, %v9034_v17  ;;  %9401 = vmatpush3.msk.msra.mxu1 %vm252_vm2, %v10308_v28  ;;  %v10443_v51 = vsel %vm866_vm5, %v10310_v29, %v10308_v28  ;;  %v10457_v54 = vsel %vm866_vm5, %v10295_v26, %v10310_v29 }
  0xbc   : > { %3510 = vrot.lane.b32.xlu1 %v10136_v6, %s10015_s24  ;;  %9047 = vmatpush1.msk.msra.mxu0 %vm252_vm2, %v10113_v2 }
  0xbd   : > { %3512 = vrot.lane.b32.xlu0 %v10110_v1, %s10015_s24  ;;  %631 = vmatprep.mubr.f32.mxu0 %v10004_v0 }
  0xbe   : > { %v10332_v32 = vpop.permute.xlu1 %1190  ;;  %v1189_v33 = vpop.permute.xlu0 %1188  ;;  %9049 = vmatprep.subr.msk.mxu0 %vm252_vm2, %v10121_v3  ;;  %9403 = vmatmul.mubr.msk.f32.vlgmr.msra.gmra.mrb[0].mxu1 %vm248_vm3, %v10320_v30 }
  0xbf   : > { %9048 = vmatmul.mubr.msk.f32.vlgmr.msra.gmra.mrb[0].mxu0 %vm248_vm3, %v217_v31  ;;  %v10341_v34 = vsel %vm1196_vm4, %v1189_v33, %v10332_v32  ;;  %1355 = vmatprep.mubr.f32.mxu1 %v10004_v0 }
  0xc0   : > { %3520 = vrot.lane.b32.xlu1 %v10143_v7, %s10015_s24  ;;  %9073 = vmatprep.subr.msk.mxu1 %vm252_vm2, %v10341_v34 }
  0xc1   : > { %3508 = vrot.lane.b32.xlu0 %v10113_v2, %s10015_s24  ;;  %9050 = vmatpush1.msk.msra.mxu0 %vm252_vm2, %v10110_v1 }
  0xc2   : > { %702 = vmatprep.mubr.f32.mxu0 %v10004_v0  ;;  %v10353_v35 = vpop.permute.xlu1 %1184  ;;  %v1187_v36 = vpop.permute.xlu0 %1186  ;;  %9052 = vmatprep.subr.msk.mxu0 %vm252_vm2, %v10132_v5 }
  0xc3   : > { %9051 = vmatmul.mubr.msk.f32.vlgmr.msra.gmra.mrb[2].mxu0 %vm248_vm3, %v217_v31  ;;  %v10359_v37 = vsel %vm1196_vm4, %v1187_v36, %v1189_v33  ;;  %v10467_v55 = vsel %vm1196_vm4, %v10353_v35, %v1187_v36 }
  0xc4   : > { %3518 = vrot.lane.b32.xlu1 %v10132_v5, %s10015_s24  ;;  %9053 = vmatpush1.msk.msra.mxu0 %vm252_vm2, %v10124_v4 }
  0xc5   : > { %3522 = vrot.lane.b32.xlu0 %v10205_v8, %s10015_s24  ;;  %9074 = vmatpush1.msk.msra.mxu1 %vm252_vm2, %v10359_v37 }
  0xc6   : > { %773 = vmatprep.mubr.f32.mxu0 %v10004_v0  ;;  %9395 = vmatprep.subr.mxu0 %v10004_v0  ;;  %v10371_v38 = vpop.permute.xlu1 %1192  ;;  %v1183_v39 = vpop.permute.xlu0 %1182 }
  0xc7   : > { %9054 = vmatmul.mubr.msk.f32.vlgmr.msra.gmra.mrb[4].mxu0 %vm248_vm3, %v217_v31  ;;  %9405 = vmatprep.subr.mxu1 %v10004_v0  ;;  %v1197_v59 = vsel %vm1196_vm4, %v1183_v39, %v10353_v35  ;;  %v10512_v9 = vsel %vm1196_vm4, %v10332_v32, %v10371_v38 }
  0xc8   : > { %9396 = vmatpush3.msk.msra.mxu0 %vm252_vm2, %v10143_v7  ;;  %3849 = vrot.lane.b32.xlu1 %v10124_v4, %s10016_s5 }
  0xc9   : > { %9058 = vmatprep.subr.msk.mxu0 %vm252_vm2, %v10385_v41  ;;  %3847 = vrot.lane.b32.xlu0 %v10121_v3, %s10016_s5 }
  0xca   : > { %9397 = vmatprep.mubr.msk.f32.mxu0 %vm10006_vm0, %v10004_v0  ;;  %v1519_v42 = vpop.permute.xlu1 %1518  ;;  %v10395_v43 = vpop.permute.xlu0 %1194  ;;  %9075 = vmatmul.mubr.msk.f32.vlgmr.msra.gmra.mrb[2].mxu1 %vm248_vm3, %v10378_v40 }
  0xcb   : > { %9398 = vmatmul.mubr.msk.f32.vlgmr.msra.gmra.mrb[8].mxu0 %vm248_vm3, %v217_v31  ;;  %9406 = vmatpush3.msk.msra.mxu1 %vm252_vm2, %v10395_v43  ;;  %v10493_v60 = vsel %vm1196_vm4, %v10371_v38, %v10395_v43 }
  0xcc   : > { %9059 = vmatpush1.msk.msra.mxu0 %vm252_vm2, %v867_v44  ;;  %3843 = vrot.lane.b32.xlu1 %v10136_v6, %s10016_s5 }
  0xcd   : > { %9061 = vmatprep.subr.msk.mxu0 %vm252_vm2, %v10409_v45  ;;  %3845 = vrot.lane.b32.xlu0 %v10110_v1, %s10016_s5 }
  0xce   : > { %954 = vmatprep.mubr.f32.mxu0 %v10004_v0  ;;  %v1517_v46 = vpop.permute.xlu1 %1516  ;;  %v10418_v47 = vpop.permute.xlu0 %1520  ;;  %9407 = vmatprep.mubr.msk.f32.mxu1 %vm10006_vm0, %v10004_v0 }
  0xcf   : > { %9060 = vmatmul.mubr.msk.f32.vlgmr.msra.gmra.mrb[0].mxu0 %vm248_vm3, %v10320_v30  ;;  %v10431_v49 = vsel %vm1526_vm6, %v1519_v42, %v10418_v47  ;;  %9408 = vmatmul.mubr.msk.f32.vlgmr.msra.gmra.mrb[4].mxu1 %vm248_vm3, %v10378_v40  ;;  %v10436_v50 = vsel %vm1526_vm6, %v1517_v46, %v1519_v42 }
  0xd0   : > { %9062 = vmatpush1.msk.msra.mxu0 %vm252_vm2, %v10425_v48  ;;  %3853 = vrot.lane.b32.xlu1 %v10143_v7, %s10016_s5 }
  0xd1   : > { %9064 = vmatprep.subr.msk.mxu0 %vm252_vm2, %v10443_v51  ;;  %3841 = vrot.lane.b32.xlu0 %v10113_v2, %s10016_s5 }
  0xd2   : > { %9085 = vmatprep.subr.msk.mxu1 %vm252_vm2, %v10431_v49  ;;  %1025 = vmatprep.mubr.f32.mxu0 %v10004_v0  ;;  %v1513_v52 = vpop.permute.xlu1 %1512  ;;  %v1515_v53 = vpop.permute.xlu0 %1514 }
  0xd3   : > { %9086 = vmatpush1.msk.msra.mxu1 %vm252_vm2, %v10436_v50  ;;  %9063 = vmatmul.mubr.msk.f32.vlgmr.msra.gmra.mrb[2].mxu0 %vm248_vm3, %v10320_v30  ;;  %v10520_v10 = vsel %vm1526_vm6, %v1515_v53, %v1517_v46  ;;  %v1527_v14 = vsel %vm1526_vm6, %v1513_v52, %v1515_v53  ;;  %v9105_v46 = vld [vmem:[%s11340_s1 + $0x30] sm:$0x3f] }
  0xd4   : > { %9065 = vmatpush1.msk.msra.mxu0 %vm252_vm2, %v10457_v54  ;;  %3851 = vrot.lane.b32.xlu1 %v10132_v5, %s10016_s5 }
  0xd5   : > { %9070 = vmatprep.subr.msk.mxu0 %vm252_vm2, %v10467_v55  ;;  %3855 = vrot.lane.b32.xlu0 %v10205_v8, %s10016_s5  ;;  %s10022_s5 = smov 30  }
  0xd6   : > { %1096 = vmatprep.mubr.f32.mxu0 %v10004_v0  ;;  %v10481_v57 = vpop.permute.xlu1 %1524  ;;  %1685 = vmatprep.mubr.f32.mxu1 %v10004_v0  ;;  %v1523_v58 = vpop.permute.xlu0 %1522 }
  0xd7   : > { %9066 = vmatmul.mubr.msk.f32.vlgmr.msra.gmra.mrb[4].mxu0 %vm248_vm3, %v10320_v30  ;;  %9410 = vmatprep.subr.mxu1 %v10004_v0  ;;  %v10539_v16 = vsel %vm1526_vm6, %v1523_v58, %v10481_v57  ;;  %v10551_v23 = vsel %vm1526_vm6, %v10418_v47, %v1523_v58 }
  0xd8   : > { %9071 = vmatpush1.msk.msra.mxu0 %vm252_vm2, %v1197_v59  ;;  %9087 = vmatmul.mubr.msk.f32.vlgmr.msra.gmra.mrb[2].mxu1 %vm248_vm3, %v10478_v56 }
  0xd9   : > { %9076 = vmatprep.subr.msk.mxu0 %vm252_vm2, %v10493_v60  ;;  %9411 = vmatpush3.msk.msra.mxu1 %vm252_vm2, %v10481_v57 }
  0xda   : > { %4182 = vrot.lane.b32.xlu1 %v10124_v4, %s10017_s8  ;;  %4180 = vrot.lane.b32.xlu0 %v10121_v3, %s10017_s8  ;;  %v1852_v61 = vpop.permute.xlu1 %1851  ;;  %v1850_v62 = vpop.permute.xlu0 %1849 }
  0xdb   : > { %1284 = vmatprep.mubr.f32.mxu0 %v10004_v0  ;;  %v1863_v63 = vsel %vm1859_vm7, %v1850_v62, %v1852_v61  ;;  %9412 = vmatprep.mubr.msk.f32.mxu1 %vm10006_vm0, %v10004_v0 }
  0xdc   : > { %9072 = vmatmul.mubr.msk.f32.vlgmr.msra.gmra.mrb[0].mxu0 %vm248_vm3, %v10378_v40  ;;  %9097 = vmatprep.subr.msk.mxu1 %vm252_vm2, %v1863_v63 }
  0xdd   : > { %9077 = vmatpush1.msk.msra.mxu0 %vm252_vm2, %v10512_v9  ;;  %1426 = vmatprep.mubr.f32.mxu0 %v10004_v0 }
  0xde   : > { %9082 = vmatprep.subr.msk.mxu0 %vm252_vm2, %v10520_v10  ;;  %4176 = vrot.lane.b32.xlu1 %v10136_v6, %s10017_s8  ;;  %v1846_v11 = vpop.permute.xlu1 %1845  ;;  %v1848_v12 = vpop.permute.xlu0 %1847 }
  0xdf   : > { %4178 = vrot.lane.b32.xlu0 %v10110_v1, %s10017_s8  ;;  %v1862_v13 = vsel %vm1859_vm7, %v1848_v12, %v1850_v62  ;;  %9413 = vmatmul.mubr.msk.f32.vlgmr.msra.gmra.mrb[6].mxu1 %vm248_vm3, %v10478_v56  ;;  %v1861_v26 = vsel %vm1859_vm7, %v1846_v11, %v1848_v12 }
  0xe0   : > { %9078 = vmatmul.mubr.msk.f32.vlgmr.msra.gmra.mrb[4].mxu0 %vm248_vm3, %v10378_v40  ;;  %9098 = vmatpush1.msk.msra.mxu1 %vm252_vm2, %v1862_v13 }
  0xe1   : > { %9083 = vmatpush1.msk.msra.mxu0 %vm252_vm2, %v1527_v14  ;;  %1614 = vmatprep.mubr.f32.mxu0 %v10004_v0 }
  0xe2   : > { %9088 = vmatprep.subr.msk.mxu0 %vm252_vm2, %v10539_v16  ;;  %4186 = vrot.lane.b32.xlu1 %v10143_v7, %s10017_s8  ;;  %v1856_v17 = vpop.permute.xlu1 %1855  ;;  %v1844_v18 = vpop.permute.xlu0 %1843 }
  0xe3   : > { %4174 = vrot.lane.b32.xlu0 %v10113_v2, %s10017_s8  ;;  %2019 = vmatprep.mubr.f32.mxu1 %v10004_v0  ;;  %v1860_v32 = vsel %vm1859_vm7, %v1844_v18, %v1846_v11 }
  0xe4   : > { %9084 = vmatmul.mubr.msk.f32.vlgmr.msra.gmra.mrb[0].mxu0 %vm248_vm3, %v10478_v56  ;;  %9415 = vmatprep.subr.mxu1 %v10004_v0 }
  0xe5   : > { %9089 = vmatpush1.msk.msra.mxu0 %vm252_vm2, %v10551_v23  ;;  %1756 = vmatprep.mubr.f32.mxu0 %v10004_v0 }
  0xe6   : > { %9094 = vmatprep.subr.msk.mxu0 %vm252_vm2, %v1861_v26  ;;  %4184 = vrot.lane.b32.xlu1 %v10132_v5, %s10017_s8  ;;  %v1854_v27 = vpop.permute.xlu1 %1853  ;;  %v1858_v29 = vpop.permute.xlu0 %1857 }
  0xe7   : > { %4188 = vrot.lane.b32.xlu0 %v10205_v8, %s10017_s8  ;;  %v1866_v30 = vsel %vm1859_vm7, %v1856_v17, %v1858_v29  ;;  %9099 = vmatmul.mubr.msk.f32.vlgmr.msra.gmra.mrb[2].mxu1 %vm248_vm3, %v9093_v24  ;;  %v1865_v31 = vsel %vm1859_vm7, %v1854_v27, %v1856_v17  ;;  %v1864_v38 = vsel %vm1859_vm7, %v1852_v61, %v1854_v27  ;;  %v9117_v17 = vld [vmem:[%s11340_s1 + $0x38] sm:$0x3f]  ;;  %s10023_s8 = smov 29  }
  0xe8   : > { %9090 = vmatmul.mubr.msk.f32.vlgmr.msra.gmra.mrb[4].mxu0 %vm248_vm3, %v10478_v56  ;;  %9416 = vmatpush3.msk.msra.mxu1 %vm252_vm2, %v1866_v30 }
  0xe9   : > { %9095 = vmatpush1.msk.msra.mxu0 %vm252_vm2, %v1860_v32  ;;  %1948 = vmatprep.mubr.f32.mxu0 %v10004_v0 }
  0xea   : > { %4515 = vrot.lane.b32.xlu1 %v10124_v4, %s10018_s19  ;;  %9100 = vmatprep.subr.msk.mxu0 %vm252_vm2, %v1865_v31  ;;  %v2185_v33 = vpop.permute.xlu1 %2184  ;;  %v2183_v35 = vpop.permute.xlu0 %2182 }
  0xeb   : > { %4513 = vrot.lane.b32.xlu0 %v10121_v3, %s10018_s19  ;;  %v2196_v36 = vsel %vm2192_vm8, %v2183_v35, %v2185_v33  ;;  %9417 = vmatprep.mubr.msk.f32.mxu1 %vm10006_vm0, %v10004_v0 }
  0xec   : > { %9096 = vmatmul.mubr.msk.f32.vlgmr.msra.gmra.mrb[0].mxu0 %vm248_vm3, %v9093_v24  ;;  %9109 = vmatprep.subr.msk.mxu1 %vm252_vm2, %v2196_v36 }
  0xed   : > { %9101 = vmatpush1.msk.msra.mxu0 %vm252_vm2, %v1864_v38  ;;  %9418 = vmatmul.mubr.msk.f32.vlgmr.msra.gmra.mrb[8].mxu1 %vm248_vm3, %v9093_v24 }
  0xee   : > { %4509 = vrot.lane.b32.xlu1 %v10136_v6, %s10018_s19  ;;  %v2179_v39 = vpop.permute.xlu1 %2178  ;;  %v2181_v40 = vpop.permute.xlu0 %2180  ;;  %2090 = vmatprep.mubr.f32.mxu0 %v10004_v0 }
  0xef   : > { %4511 = vrot.lane.b32.xlu0 %v10110_v1, %s10018_s19  ;;  %v2195_v42 = vsel %vm2192_vm8, %v2181_v40, %v2183_v35  ;;  %v2194_v44 = vsel %vm2192_vm8, %v2179_v39, %v2181_v40  ;;  %2352 = vmatprep.mubr.f32.mxu1 %v10004_v0 }
  0xf0   : > { %9106 = vmatprep.subr.msk.mxu0 %vm252_vm2, %v2194_v44  ;;  %9110 = vmatpush1.msk.msra.mxu1 %vm252_vm2, %v2195_v42  ;;  %v9129_v44 = vld [vmem:[%s11340_s1 + $0x40] sm:$0x3f] }
  0xf1   : > { %9102 = vmatmul.mubr.msk.f32.vlgmr.msra.gmra.mrb[4].mxu0 %vm248_vm3, %v9093_v24  ;;  %9420 = vmatprep.subr.mxu1 %v10004_v0 }
  0xf2   : > { %4519 = vrot.lane.b32.xlu1 %v10143_v7, %s10018_s19  ;;  %v2189_v47 = vpop.permute.xlu1 %2188  ;;  %v2177_v52 = vpop.permute.xlu0 %2176  ;;  %2281 = vmatprep.mubr.f32.mxu0 %v10004_v0 }
  0xf3   : > { %4507 = vrot.lane.b32.xlu0 %v10113_v2, %s10018_s19  ;;  %v2193_v53 = vsel %vm2192_vm8, %v2177_v52, %v2179_v39  ;;  %9111 = vmatmul.mubr.msk.f32.vlgmr.msra.gmra.mrb[2].mxu1 %vm248_vm3, %v9105_v46 }
  0xf4   : > { %9107 = vmatpush1.msk.msra.mxu0 %vm252_vm2, %v2193_v53  ;;  %9422 = vmatprep.mubr.msk.f32.mxu1 %vm10006_vm0, %v10004_v0 }
  0xf5   : > { %9108 = vmatmul.mubr.msk.f32.vlgmr.msra.gmra.mrb[0].mxu0 %vm248_vm3, %v9105_v46 }
  0xf6   : > { %4517 = vrot.lane.b32.xlu1 %v10132_v5, %s10018_s19  ;;  %v2187_v56 = vpop.permute.xlu1 %2186  ;;  %v2191_v58 = vpop.permute.xlu0 %2190  ;;  %2423 = vmatprep.mubr.f32.mxu0 %v10004_v0 }
  0xf7   : > { %4521 = vrot.lane.b32.xlu0 %v10205_v8, %s10018_s19  ;;  %v2197_v59 = vsel %vm2192_vm8, %v2185_v33, %v2187_v56  ;;  %v2199_v61 = vsel %vm2192_vm8, %v2189_v47, %v2191_v58  ;;  %v2198_v62 = vsel %vm2192_vm8, %v2187_v56, %v2189_v47  ;;  %s10024_s19 = smov 28   ;;  %vm4856_vm8 = vcmask 490496  }
  0xf8   : > { %9112 = vmatprep.subr.msk.mxu0 %vm252_vm2, %v2198_v62  ;;  %9421 = vmatpush3.msk.msra.mxu1 %vm252_vm2, %v2199_v61 }
  0xf9   : > { %9113 = vmatpush1.msk.msra.mxu0 %vm252_vm2, %v2197_v59  ;;  %9423 = vmatmul.mubr.msk.f32.vlgmr.msra.gmra.mrb[10].mxu1 %vm248_vm3, %v9105_v46 }
  0xfa   : > { %4848 = vrot.lane.b32.xlu1 %v10124_v4, %s10019_s22  ;;  %v2518_v63 = vpop.permute.xlu1 %2517  ;;  %v2516_v11 = vpop.permute.xlu0 %2515  ;;  %9114 = vmatmul.mubr.msk.f32.vlgmr.msra.gmra.mrb[4].mxu0 %vm248_vm3, %v9105_v46 }
  0xfb   : > { %4846 = vrot.lane.b32.xlu0 %v10121_v3, %s10019_s22  ;;  %v2529_v12 = vsel %vm2525_vm9, %v2516_v11, %v2518_v63  ;;  %2685 = vmatprep.mubr.f32.mxu1 %v10004_v0 }
  0xfc   : > { %9121 = vmatprep.subr.msk.mxu1 %vm252_vm2, %v2529_v12  ;;  %2614 = vmatprep.mubr.f32.mxu0 %v10004_v0 }
  0xfe   : > { %4842 = vrot.lane.b32.xlu1 %v10136_v6, %s10019_s22  ;;  %v2512_v13 = vpop.permute.xlu1 %2511  ;;  %v2514_v14 = vpop.permute.xlu0 %2513 }
  0xff   : > { %4844 = vrot.lane.b32.xlu0 %v10110_v1, %s10019_s22  ;;  %v2528_v18 = vsel %vm2525_vm9, %v2514_v14, %v2516_v11  ;;  %v2527_v24 = vsel %vm2525_vm9, %v2512_v13, %v2514_v14 }
 0x100   : > { %9118 = vmatprep.subr.msk.mxu0 %vm252_vm2, %v2527_v24  ;;  %9122 = vmatpush1.msk.msra.mxu1 %vm252_vm2, %v2528_v18  ;;  %v9141_v18 = vld [vmem:[%s11340_s1 + $0x48] sm:$0x3f] }
 0x101   : > { %9425 = vmatprep.subr.mxu1 %v10004_v0  ;;  %9123 = vmatmul.mubr.msk.f32.vlgmr.msra.gmra.mrb[2].mxu1 %vm248_vm3, %v9117_v17 }
 0x102   : > { %4852 = vrot.lane.b32.xlu1 %v10143_v7, %s10019_s22  ;;  %v2522_v26 = vpop.permute.xlu1 %2521  ;;  %v2510_v27 = vpop.permute.xlu0 %2509  ;;  %9427 = vmatprep.mubr.msk.f32.mxu1 %vm10006_vm0, %v10004_v0 }
 0x103   : > { %4840 = vrot.lane.b32.xlu0 %v10113_v2, %s10019_s22  ;;  %v2526_v29 = vsel %vm2525_vm9, %v2510_v27, %v2512_v13 }
 0x104   : > { %9119 = vmatpush1.msk.msra.mxu0 %vm252_vm2, %v2526_v29 }
 0x105   : > { %9120 = vmatmul.mubr.msk.f32.vlgmr.msra.gmra.mrb[0].mxu0 %vm248_vm3, %v9117_v17 }
 0x106   : > { %4850 = vrot.lane.b32.xlu1 %v10132_v5, %s10019_s22  ;;  %v2520_v30 = vpop.permute.xlu1 %2519  ;;  %v2524_v31 = vpop.permute.xlu0 %2523  ;;  %2756 = vmatprep.mubr.f32.mxu0 %v10004_v0 }
 0x107   : > { %4854 = vrot.lane.b32.xlu0 %v10205_v8, %s10019_s22  ;;  %v2530_v32 = vsel %vm2525_vm9, %v2518_v63, %v2520_v30  ;;  %v2532_v33 = vsel %vm2525_vm9, %v2522_v26, %v2524_v31  ;;  %v2531_v35 = vsel %vm2525_vm9, %v2520_v30, %v2522_v26  ;;  %vm5189_vm9 = vcmask 261120  }
 0x108   : > { %9124 = vmatprep.subr.msk.mxu0 %vm252_vm2, %v2531_v35  ;;  %9426 = vmatpush3.msk.msra.mxu1 %vm252_vm2, %v2532_v33 }
 0x109   : > { %9125 = vmatpush1.msk.msra.mxu0 %vm252_vm2, %v2530_v32  ;;  %9428 = vmatmul.mubr.msk.f32.vlgmr.msra.gmra.mrb[12].mxu1 %vm248_vm3, %v9117_v17 }
 0x10a   : > { %5181 = vrot.lane.b32.xlu1 %v10124_v4, %s10020_s25  ;;  %v2851_v36 = vpop.permute.xlu1 %2850  ;;  %v2849_v38 = vpop.permute.xlu0 %2848  ;;  %9126 = vmatmul.mubr.msk.f32.vlgmr.msra.gmra.mrb[4].mxu0 %vm248_vm3, %v9117_v17 }
 0x10b   : > { %5179 = vrot.lane.b32.xlu0 %v10121_v3, %s10020_s25  ;;  %v2862_v39 = vsel %vm2858_vm10, %v2849_v38, %v2851_v36  ;;  %3018 = vmatprep.mubr.f32.mxu1 %v10004_v0 }
 0x10c   : > { %9133 = vmatprep.subr.msk.mxu1 %vm252_vm2, %v2862_v39  ;;  %2947 = vmatprep.mubr.f32.mxu0 %v10004_v0 }
 0x10e   : > { %5175 = vrot.lane.b32.xlu1 %v10136_v6, %s10020_s25  ;;  %v2845_v40 = vpop.permute.xlu1 %2844  ;;  %v2847_v42 = vpop.permute.xlu0 %2846 }
 0x10f   : > { %5177 = vrot.lane.b32.xlu0 %v10110_v1, %s10020_s25  ;;  %v2861_v46 = vsel %vm2858_vm10, %v2847_v42, %v2849_v38  ;;  %v2860_v47 = vsel %vm2858_vm10, %v2845_v40, %v2847_v42 }
 0x110   : > { %9130 = vmatprep.subr.msk.mxu0 %vm252_vm2, %v2860_v47  ;;  %9134 = vmatpush1.msk.msra.mxu1 %vm252_vm2, %v2861_v46  ;;  %v9153_v46 = vld [vmem:[%s11340_s1 + $0x50] sm:$0x3f] }
 0x111   : > { %9430 = vmatprep.subr.mxu1 %v10004_v0  ;;  %9135 = vmatmul.mubr.msk.f32.vlgmr.msra.gmra.mrb[2].mxu1 %vm248_vm3, %v9129_v44 }
 0x112   : > { %5185 = vrot.lane.b32.xlu1 %v10143_v7, %s10020_s25  ;;  %v2855_v52 = vpop.permute.xlu1 %2854  ;;  %v2843_v53 = vpop.permute.xlu0 %2842  ;;  %9432 = vmatprep.mubr.msk.f32.mxu1 %vm10006_vm0, %v10004_v0 }
 0x113   : > { %5173 = vrot.lane.b32.xlu0 %v10113_v2, %s10020_s25  ;;  %v2859_v56 = vsel %vm2858_vm10, %v2843_v53, %v2845_v40 }
 0x114   : > { %9131 = vmatpush1.msk.msra.mxu0 %vm252_vm2, %v2859_v56 }
 0x115   : > { %9132 = vmatmul.mubr.msk.f32.vlgmr.msra.gmra.mrb[0].mxu0 %vm248_vm3, %v9129_v44 }
 0x116   : > { %5183 = vrot.lane.b32.xlu1 %v10132_v5, %s10020_s25  ;;  %v2853_v58 = vpop.permute.xlu1 %2852  ;;  %v2857_v59 = vpop.permute.xlu0 %2856  ;;  %3089 = vmatprep.mubr.f32.mxu0 %v10004_v0 }
 0x117   : > { %5187 = vrot.lane.b32.xlu0 %v10205_v8, %s10020_s25  ;;  %v2863_v61 = vsel %vm2858_vm10, %v2851_v36, %v2853_v58  ;;  %v2865_v62 = vsel %vm2858_vm10, %v2855_v52, %v2857_v59  ;;  %v2864_v63 = vsel %vm2858_vm10, %v2853_v58, %v2855_v52  ;;  %vm5522_vm10 = vcmask 252928  }
 0x118   : > { %9136 = vmatprep.subr.msk.mxu0 %vm252_vm2, %v2864_v63  ;;  %9431 = vmatpush3.msk.msra.mxu1 %vm252_vm2, %v2865_v62 }
 0x119   : > { %9137 = vmatpush1.msk.msra.mxu0 %vm252_vm2, %v2863_v61  ;;  %9433 = vmatmul.mubr.msk.f32.vlgmr.msra.gmra.mrb[14].mxu1 %vm248_vm3, %v9129_v44 }
 0x11a   : > { %5514 = vrot.lane.b32.xlu1 %v10124_v4, %s10021_s28  ;;  %v3184_v11 = vpop.permute.xlu1 %3183  ;;  %v3182_v12 = vpop.permute.xlu0 %3181  ;;  %9138 = vmatmul.mubr.msk.f32.vlgmr.msra.gmra.mrb[4].mxu0 %vm248_vm3, %v9129_v44 }
 0x11b   : > { %5512 = vrot.lane.b32.xlu0 %v10121_v3, %s10021_s28  ;;  %v3195_v13 = vsel %vm3191_vm11, %v3182_v12, %v3184_v11  ;;  %3351 = vmatprep.mubr.f32.mxu1 %v10004_v0 }
 0x11c   : > { %9145 = vmatprep.subr.msk.mxu1 %vm252_vm2, %v3195_v13  ;;  %3280 = vmatprep.mubr.f32.mxu0 %v10004_v0 }
 0x11e   : > { %5508 = vrot.lane.b32.xlu1 %v10136_v6, %s10021_s28  ;;  %v3178_v14 = vpop.permute.xlu1 %3177  ;;  %v3180_v17 = vpop.permute.xlu0 %3179 }
 0x11f   : > { %5510 = vrot.lane.b32.xlu0 %v10110_v1, %s10021_s28  ;;  %v3194_v24 = vsel %vm3191_vm11, %v3180_v17, %v3182_v12  ;;  %v3193_v26 = vsel %vm3191_vm11, %v3178_v14, %v3180_v17  ;;  %v9165_v17 = vld [vmem:[%s11340_s1 + $0x58] sm:$0x3f] }
 0x120   : > { %9142 = vmatprep.subr.msk.mxu0 %vm252_vm2, %v3193_v26  ;;  %9146 = vmatpush1.msk.msra.mxu1 %vm252_vm2, %v3194_v24 }
 0x121   : > { %9435 = vmatprep.subr.mxu1 %v10004_v0  ;;  %9147 = vmatmul.mubr.msk.f32.vlgmr.msra.gmra.mrb[2].mxu1 %vm248_vm3, %v9141_v18 }
 0x122   : > { %5518 = vrot.lane.b32.xlu1 %v10143_v7, %s10021_s28  ;;  %v3188_v27 = vpop.permute.xlu1 %3187  ;;  %9437 = vmatprep.mubr.msk.f32.mxu1 %vm10006_vm0, %v10004_v0 }
 0x123   : > { %5506 = vrot.lane.b32.xlu0 %v10113_v2, %s10021_s28  ;;  %v3176_v29 = vpop.permute.xlu0 %3175 }
 0x124   : > { %v3192_v30 = vsel %vm3191_vm11, %v3176_v29, %v3178_v14 }
 0x125   : > { %9143 = vmatpush1.msk.msra.mxu0 %vm252_vm2, %v3192_v30 }
 0x126   : > { %5516 = vrot.lane.b32.xlu1 %v10132_v5, %s10021_s28  ;;  %v3186_v31 = vpop.permute.xlu1 %3185  ;;  %9144 = vmatmul.mubr.msk.f32.vlgmr.msra.gmra.mrb[0].mxu0 %vm248_vm3, %v9141_v18 }
 0x127   : > { %5520 = vrot.lane.b32.xlu0 %v10205_v8, %s10021_s28  ;;  %v3196_v32 = vsel %vm3191_vm11, %v3184_v11, %v3186_v31  ;;  %v3197_v33 = vsel %vm3191_vm11, %v3186_v31, %v3188_v27  ;;  %v3190_v35 = vpop.permute.xlu0 %3189  ;;  %3422 = vmatprep.mubr.f32.mxu0 %v10004_v0 }
 0x128   : > { %v3198_v36 = vsel %vm3191_vm11, %v3188_v27, %v3190_v35  ;;  %9148 = vmatprep.subr.msk.mxu0 %vm252_vm2, %v3197_v33  ;;  %v10843_v35 = vld [vmem:[%s10105_s10 + $0x10] sm:$0x77]  ;;  %vm5855_vm11 = vcmask 244736  }
 0x129   : > { %9436 = vmatpush3.msk.msra.mxu1 %vm252_vm2, %v3198_v36  ;;  %9149 = vmatpush1.msk.msra.mxu0 %vm252_vm2, %v3196_v32 }
 0x12a   : > { %5847 = vrot.lane.b32.xlu1 %v10124_v4, %s10022_s5  ;;  %v3517_v38 = vpop.permute.xlu1 %3516  ;;  %9438 = vmatmul.mubr.msk.f32.vlgmr.msra.gmra.mrb[16].mxu1 %vm248_vm3, %v9141_v18 }
 0x12b   : > { %5845 = vrot.lane.b32.xlu0 %v10121_v3, %s10022_s5  ;;  %v3515_v39 = vpop.permute.xlu0 %3514  ;;  %9150 = vmatmul.mubr.msk.f32.vlgmr.msra.gmra.mrb[4].mxu0 %vm248_vm3, %v9141_v18 }
 0x12c   : > { %v3528_v40 = vsel %vm3524_vm12, %v3515_v39, %v3517_v38  ;;  %3684 = vmatprep.mubr.f32.mxu1 %v10004_v0  ;;  %3613 = vmatprep.mubr.f32.mxu0 %v10004_v0 }
 0x12d   : > { %9157 = vmatprep.subr.msk.mxu1 %vm252_vm2, %v3528_v40  ;;  %v10858_v40 = vld [vmem:[%s10105_s10 + $0x8] sm:$0x77] }
 0x12e   : > { %5841 = vrot.lane.b32.xlu1 %v10136_v6, %s10022_s5  ;;  %v3511_v42 = vpop.permute.xlu1 %3510 }
 0x12f   : > { %5843 = vrot.lane.b32.xlu0 %v10110_v1, %s10022_s5  ;;  %v3513_v44 = vpop.permute.xlu0 %3512 }
 0x130   : > { %v3526_v47 = vsel %vm3524_vm12, %v3511_v42, %v3513_v44  ;;  %v3527_v52 = vsel %vm3524_vm12, %v3513_v44, %v3515_v39 }
 0x131   : > { %9154 = vmatprep.subr.msk.mxu0 %vm252_vm2, %v3526_v47  ;;  %9158 = vmatpush1.msk.msra.mxu1 %vm252_vm2, %v3527_v52  ;;  %v10865_v52 = vld [vmem:[%s10105_s10 + $0x18] sm:$0x77] }
 0x132   : > { %5851 = vrot.lane.b32.xlu1 %v10143_v7, %s10022_s5  ;;  %v3521_v53 = vpop.permute.xlu1 %3520  ;;  %9159 = vmatmul.mubr.msk.f32.vlgmr.msra.gmra.mrb[2].mxu1 %vm248_vm3, %v9153_v46 }
 0x133   : > { %5839 = vrot.lane.b32.xlu0 %v10113_v2, %s10022_s5  ;;  %v3509_v56 = vpop.permute.xlu0 %3508  ;;  %9440 = vmatprep.subr.mxu1 %v10004_v0 }
 0x134   : > { %v3525_v58 = vsel %vm3524_vm12, %v3509_v56, %v3511_v42  ;;  %9442 = vmatprep.mubr.msk.f32.mxu1 %vm10006_vm0, %v10004_v0 }
 0x135   : > { %9155 = vmatpush1.msk.msra.mxu0 %vm252_vm2, %v3525_v58 }
 0x136   : > { %5849 = vrot.lane.b32.xlu1 %v10132_v5, %s10022_s5  ;;  %v3519_v59 = vpop.permute.xlu1 %3518  ;;  %9156 = vmatmul.mubr.msk.f32.vlgmr.msra.gmra.mrb[0].mxu0 %vm248_vm3, %v9153_v46 }
 0x137   : > { %5853 = vrot.lane.b32.xlu0 %v10205_v8, %s10022_s5  ;;  %v3529_v2 = vsel %vm3524_vm12, %v3517_v38, %v3519_v59  ;;  %v3530_v61 = vsel %vm3524_vm12, %v3519_v59, %v3521_v53  ;;  %v3523_v62 = vpop.permute.xlu0 %3522  ;;  %3755 = vmatprep.mubr.f32.mxu0 %v10004_v0 }
 0x138   : > { %v3531_v63 = vsel %vm3524_vm12, %v3521_v53, %v3523_v62  ;;  %9160 = vmatprep.subr.msk.mxu0 %vm252_vm2, %v3530_v61  ;;  %v9177_v53 = vld [vmem:[%s11340_s1 + $0x60] sm:$0x3f]  ;;  %vm6188_vm12 = vcmask 236544  }
 0x139   : > { %9441 = vmatpush3.msk.msra.mxu1 %vm252_vm2, %v3531_v63  ;;  %9161 = vmatpush1.msk.msra.mxu0 %vm252_vm2, %v3529_v2 }
 0x13a   : > { %6180 = vrot.lane.b32.xlu1 %v10124_v4, %s10023_s8  ;;  %v3850_v11 = vpop.permute.xlu1 %3849  ;;  %9443 = vmatmul.mubr.msk.f32.vlgmr.msra.gmra.mrb[18].mxu1 %vm248_vm3, %v9153_v46 }
 0x13b   : > { %6178 = vrot.lane.b32.xlu0 %v10121_v3, %s10023_s8  ;;  %v3848_v12 = vpop.permute.xlu0 %3847  ;;  %9162 = vmatmul.mubr.msk.f32.vlgmr.msra.gmra.mrb[4].mxu0 %vm248_vm3, %v9153_v46 }
 0x13c   : > { %v3861_v13 = vsel %vm3857_vm13, %v3848_v12, %v3850_v11  ;;  %4017 = vmatprep.mubr.f32.mxu1 %v10004_v0  ;;  %3946 = vmatprep.mubr.f32.mxu0 %v10004_v0 }
 0x13d   : > { %9169 = vmatprep.subr.msk.mxu1 %vm252_vm2, %v3861_v13 }
 0x13e   : > { %6174 = vrot.lane.b32.xlu1 %v10136_v6, %s10023_s8  ;;  %v3844_v4 = vpop.permute.xlu1 %3843 }
 0x13f   : > { %6176 = vrot.lane.b32.xlu0 %v10110_v1, %s10023_s8  ;;  %v3846_v14 = vpop.permute.xlu0 %3845  ;;  %v9957_v1 = vld [vmem:[%s10105_s10] sm:$0x77] }
 0x140   : > { %v3859_v18 = vsel %vm3857_vm13, %v3844_v4, %v3846_v14  ;;  %v3860_v24 = vsel %vm3857_vm13, %v3846_v14, %v3848_v12 }
 0x141   : > { %9166 = vmatprep.subr.msk.mxu0 %vm252_vm2, %v3859_v18  ;;  %9170 = vmatpush1.msk.msra.mxu1 %vm252_vm2, %v3860_v24  ;;  %v9189_v18 = vld [vmem:[%s11340_s1 + $0x68] sm:$0x3f] }
 0x142   : > { %6184 = vrot.lane.b32.xlu1 %v10143_v7, %s10023_s8  ;;  %v3854_v26 = vpop.permute.xlu1 %3853  ;;  %9171 = vmatmul.mubr.msk.f32.vlgmr.msra.gmra.mrb[2].mxu1 %vm248_vm3, %v9165_v17 }
 0x143   : > { %6172 = vrot.lane.b32.xlu0 %v9957_v1, %s10023_s8  ;;  %v3842_v27 = vpop.permute.xlu0 %3841  ;;  %9445 = vmatprep.subr.mxu1 %v10004_v0 }
 0x144   : > { %v3858_v29 = vsel %vm3857_vm13, %v3842_v27, %v3844_v4  ;;  %9447 = vmatprep.mubr.msk.f32.mxu1 %vm10006_vm0, %v10004_v0 }
 0x145   : > { %9167 = vmatpush1.msk.msra.mxu0 %vm252_vm2, %v3858_v29 }
 0x146   : > { %6182 = vrot.lane.b32.xlu1 %v10132_v5, %s10023_s8  ;;  %v3852_v7 = vpop.permute.xlu1 %3851  ;;  %9168 = vmatmul.mubr.msk.f32.vlgmr.msra.gmra.mrb[0].mxu0 %vm248_vm3, %v9165_v17 }
 0x147   : > { %6186 = vrot.lane.b32.xlu0 %v10205_v8, %s10023_s8  ;;  %v3862_v30 = vsel %vm3857_vm13, %v3850_v11, %v3852_v7  ;;  %v3863_v31 = vsel %vm3857_vm13, %v3852_v7, %v3854_v26  ;;  %v3856_v32 = vpop.permute.xlu0 %3855  ;;  %4088 = vmatprep.mubr.f32.mxu0 %v10004_v0 }
 0x148   : > { %v3864_v33 = vsel %vm3857_vm13, %v3854_v26, %v3856_v32  ;;  %9172 = vmatprep.subr.msk.mxu0 %vm252_vm2, %v3863_v31  ;;  %vm6521_vm13 = vcmask 228352  }
 0x149   : > { %9446 = vmatpush3.msk.msra.mxu1 %vm252_vm2, %v3864_v33  ;;  %9173 = vmatpush1.msk.msra.mxu0 %vm252_vm2, %v3862_v30 }
 0x14a   : > { %6513 = vrot.lane.b32.xlu1 %v10843_v35, %s10024_s19  ;;  %9448 = vmatmul.mubr.msk.f32.vlgmr.msra.gmra.mrb[20].mxu1 %vm248_vm3, %v9165_v17 }
 0x14b   : > { %6511 = vrot.lane.b32.xlu0 %v10121_v3, %s10024_s19  ;;  %9174 = vmatmul.mubr.msk.f32.vlgmr.msra.gmra.mrb[4].mxu0 %vm248_vm3, %v9165_v17 }
 0x14c   : > { %v4183_v36 = vpop.permute.xlu1 %4182  ;;  %v4181_v38 = vpop.permute.xlu0 %4180  ;;  %4350 = vmatprep.mubr.f32.mxu1 %v10004_v0  ;;  %4279 = vmatprep.mubr.f32.mxu0 %v10004_v0 }
 0x14d   : > { %v4194_v39 = vsel %vm4190_vm14, %v4181_v38, %v4183_v36 }
 0x14e   : > { %6507 = vrot.lane.b32.xlu1 %v10136_v6, %s10024_s19  ;;  %9181 = vmatprep.subr.msk.mxu1 %vm252_vm2, %v4194_v39 }
 0x14f   : > { %6509 = vrot.lane.b32.xlu0 %v10858_v40, %s10024_s19 }
 0x150   : > { %v4177_v42 = vpop.permute.xlu1 %4176 }
 0x151   : > { %v4179_v44 = vpop.permute.xlu0 %4178 }
 0x152   : > { %v4192_v46 = vsel %vm4190_vm14, %v4177_v42, %v4179_v44  ;;  %v4193_v47 = vsel %vm4190_vm14, %v4179_v44, %v4181_v38  ;;  %6517 = vrot.lane.b32.xlu1 %v10865_v52, %s10024_s19 }
 0x153   : > { %6505 = vrot.lane.b32.xlu0 %v9957_v1, %s10024_s19  ;;  %9178 = vmatprep.subr.msk.mxu0 %vm252_vm2, %v4192_v46  ;;  %v9201_v46 = vld [vmem:[%s11340_s1 + $0x70] sm:$0x3f] }
 0x154   : > { %9182 = vmatpush1.msk.msra.mxu1 %vm252_vm2, %v4193_v47  ;;  %v4187_v56 = vpop.permute.xlu1 %4186 }
 0x155   : > { %v4175_v58 = vpop.permute.xlu0 %4174  ;;  %9183 = vmatmul.mubr.msk.f32.vlgmr.msra.gmra.mrb[2].mxu1 %vm248_vm3, %v9177_v53  ;;  %9450 = vmatprep.subr.mxu1 %v10004_v0 }
 0x156   : > { %v4191_v59 = vsel %vm4190_vm14, %v4175_v58, %v4177_v42  ;;  %6515 = vrot.lane.b32.xlu1 %v10132_v5, %s10024_s19  ;;  %9452 = vmatprep.mubr.msk.f32.mxu1 %vm10006_vm0, %v10004_v0 }
 0x157   : > { %6519 = vrot.lane.b32.xlu0 %v10205_v8, %s10024_s19  ;;  %9179 = vmatpush1.msk.msra.mxu0 %vm252_vm2, %v4191_v59 }
 0x158   : > { %v4185_v2 = vpop.permute.xlu1 %4184  ;;  %9180 = vmatmul.mubr.msk.f32.vlgmr.msra.gmra.mrb[0].mxu0 %vm248_vm3, %v9177_v53 }
 0x159   : > { %v4195_v61 = vsel %vm4190_vm14, %v4183_v36, %v4185_v2  ;;  %v4196_v62 = vsel %vm4190_vm14, %v4185_v2, %v4187_v56  ;;  %v4189_v63 = vpop.permute.xlu0 %4188  ;;  %4421 = vmatprep.mubr.f32.mxu0 %v10004_v0 }
 0x15a   : > { %v4197_v11 = vsel %vm4190_vm14, %v4187_v56, %v4189_v63  ;;  %7437 = vrot.lane.b32.xlu1 %v10205_v8, %s10007_s12  ;;  %9184 = vmatprep.subr.msk.mxu0 %vm252_vm2, %v4196_v62 }
 0x15b   : > { %7135 = vrot.lane.b32.xlu0 %v10205_v8, %s10005_s11  ;;  %9451 = vmatpush3.msk.msra.mxu1 %vm252_vm2, %v4197_v11 }
 0x15c   : > { %9185 = vmatpush1.msk.msra.mxu0 %vm252_vm2, %v4195_v61  ;;  %9453 = vmatmul.mubr.msk.f32.vlgmr.msra.gmra.mrb[22].mxu1 %vm248_vm3, %v9177_v53  ;;  %v4516_v12 = vpop.permute.xlu1 %4515 }
 0x15d   : > { %v4514_v13 = vpop.permute.xlu0 %4513  ;;  %9186 = vmatmul.mubr.msk.f32.vlgmr.msra.gmra.mrb[4].mxu0 %vm248_vm3, %v9177_v53  ;;  %4683 = vmatprep.mubr.f32.mxu1 %v10004_v0 }
 0x15e   : > { %v4527_v4 = vsel %vm4523_vm15, %v4514_v13, %v4516_v12  ;;  %8041 = vrot.lane.b32.xlu1 %v10205_v8, %s10009_s14  ;;  %4612 = vmatprep.mubr.f32.mxu0 %v10004_v0 }
 0x15f   : > { %7739 = vrot.lane.b32.xlu0 %v10205_v8, %s10008_s13  ;;  %9193 = vmatprep.subr.msk.mxu1 %vm252_vm2, %v4527_v4 }
 0x160   : > { %v4510_v14 = vpop.permute.xlu1 %4509 }
 0x161   : > { %v4512_v17 = vpop.permute.xlu0 %4511 }
 0x162   : > { %v4525_v24 = vsel %vm4523_vm15, %v4510_v14, %v4512_v17  ;;  %v4526_v26 = vsel %vm4523_vm15, %v4512_v17, %v4514_v13 }
 0x163   : > { %9190 = vmatprep.subr.msk.mxu0 %vm252_vm2, %v4525_v24  ;;  %9194 = vmatpush1.msk.msra.mxu1 %vm252_vm2, %v4526_v26 }
 0x164   : > { %v4520_v1 = vpop.permute.xlu1 %4519  ;;  %9195 = vmatmul.mubr.msk.f32.vlgmr.msra.gmra.mrb[2].mxu1 %vm248_vm3, %v9189_v18  ;;  %9455 = vmatprep.subr.mxu1 %v10004_v0 }
 0x165   : > { %v4508_v27 = vpop.permute.xlu0 %4507  ;;  %9457 = vmatprep.mubr.msk.f32.mxu1 %vm10006_vm0, %v10004_v0 }
 0x166   : > { %v4524_v29 = vsel %vm4523_vm15, %v4508_v27, %v4510_v14 }
 0x167   : > { %9191 = vmatpush1.msk.msra.mxu0 %vm252_vm2, %v4524_v29 }
 0x168   : > { %v4518_v7 = vpop.permute.xlu1 %4517  ;;  %9192 = vmatmul.mubr.msk.f32.vlgmr.msra.gmra.mrb[0].mxu0 %vm248_vm3, %v9189_v18 }
 0x169   : > { %v4528_v30 = vsel %vm4523_vm15, %v4516_v12, %v4518_v7  ;;  %v4529_v31 = vsel %vm4523_vm15, %v4518_v7, %v4520_v1  ;;  %v4522_v32 = vpop.permute.xlu0 %4521  ;;  %4754 = vmatprep.mubr.f32.mxu0 %v10004_v0 }
 0x16a   : > { %v4530_v33 = vsel %vm4523_vm15, %v4520_v1, %v4522_v32  ;;  %9196 = vmatprep.subr.msk.mxu0 %vm252_vm2, %v4529_v31 }
 0x16b   : > { %9456 = vmatpush3.msk.msra.mxu1 %vm252_vm2, %v4530_v33  ;;  %9197 = vmatpush1.msk.msra.mxu0 %vm252_vm2, %v4528_v30 }
 0x16c   : > { %9458 = vmatmul.mubr.msk.f32.vlgmr.msra.gmra.mrb[24].mxu1 %vm248_vm3, %v9189_v18  ;;  %v4849_v36 = vpop.permute.xlu1 %4848  ;;  %9198 = vmatmul.mubr.msk.f32.vlgmr.msra.gmra.mrb[4].mxu0 %vm248_vm3, %v9189_v18  ;;  %v9213_v18 = vld [vmem:[%s11340_s1 + $0x78] sm:$0x3f] }
 0x16d   : > { %v4847_v38 = vpop.permute.xlu0 %4846  ;;  %5016 = vmatprep.mubr.f32.mxu1 %v10004_v0  ;;  %4945 = vmatprep.mubr.f32.mxu0 %v10004_v0 }
 0x16e   : > { %v4860_v39 = vsel %vm4856_vm8, %v4847_v38, %v4849_v36 }
 0x16f   : > { %9205 = vmatprep.subr.msk.mxu1 %vm252_vm2, %v4860_v39 }
 0x170   : > { %v4843_v42 = vpop.permute.xlu1 %4842 }
 0x171   : > { %v4845_v44 = vpop.permute.xlu0 %4844 }
 0x172   : > { %v4858_v47 = vsel %vm4856_vm8, %v4843_v42, %v4845_v44  ;;  %v4859_v53 = vsel %vm4856_vm8, %v4845_v44, %v4847_v38 }
 0x173   : > { %9202 = vmatprep.subr.msk.mxu0 %vm252_vm2, %v4858_v47  ;;  %9206 = vmatpush1.msk.msra.mxu1 %vm252_vm2, %v4859_v53  ;;  %v9225_v53 = vld [vmem:[%s11340_s1 + $0x80] sm:$0x3f] }
 0x174   : > { %v4853_v56 = vpop.permute.xlu1 %4852  ;;  %9207 = vmatmul.mubr.msk.f32.vlgmr.msra.gmra.mrb[2].mxu1 %vm248_vm3, %v9201_v46  ;;  %9460 = vmatprep.subr.mxu1 %v10004_v0 }
 0x175   : > { %v4841_v58 = vpop.permute.xlu0 %4840  ;;  %9462 = vmatprep.mubr.msk.f32.mxu1 %vm10006_vm0, %v10004_v0 }
 0x176   : > { %v4857_v59 = vsel %vm4856_vm8, %v4841_v58, %v4843_v42 }
 0x177   : > { %9203 = vmatpush1.msk.msra.mxu0 %vm252_vm2, %v4857_v59 }
 0x178   : > { %v4851_v2 = vpop.permute.xlu1 %4850  ;;  %9204 = vmatmul.mubr.msk.f32.vlgmr.msra.gmra.mrb[0].mxu0 %vm248_vm3, %v9201_v46 }
 0x179   : > { %v4861_v61 = vsel %vm4856_vm8, %v4849_v36, %v4851_v2  ;;  %v4862_v62 = vsel %vm4856_vm8, %v4851_v2, %v4853_v56  ;;  %v4855_v63 = vpop.permute.xlu0 %4854  ;;  %5087 = vmatprep.mubr.f32.mxu0 %v10004_v0 }
 0x17a   : > { %v4863_v11 = vsel %vm4856_vm8, %v4853_v56, %v4855_v63  ;;  %9208 = vmatprep.subr.msk.mxu0 %vm252_vm2, %v4862_v62 }
 0x17b   : > { %9461 = vmatpush3.msk.msra.mxu1 %vm252_vm2, %v4863_v11  ;;  %9209 = vmatpush1.msk.msra.mxu0 %vm252_vm2, %v4861_v61 }
 0x17c   : > { %9463 = vmatmul.mubr.msk.f32.vlgmr.msra.gmra.mrb[26].mxu1 %vm248_vm3, %v9201_v46  ;;  %v5182_v12 = vpop.permute.xlu1 %5181  ;;  %9210 = vmatmul.mubr.msk.f32.vlgmr.msra.gmra.mrb[4].mxu0 %vm248_vm3, %v9201_v46 }
 0x17d   : > { %v5180_v13 = vpop.permute.xlu0 %5179  ;;  %5349 = vmatprep.mubr.f32.mxu1 %v10004_v0  ;;  %5278 = vmatprep.mubr.f32.mxu0 %v10004_v0 }
 0x17e   : > { %v5193_v4 = vsel %vm5189_vm9, %v5180_v13, %v5182_v12 }
 0x17f   : > { %9217 = vmatprep.subr.msk.mxu1 %vm252_vm2, %v5193_v4 }
 0x180   : > { %v5176_v14 = vpop.permute.xlu1 %5175 }
 0x181   : > { %v5178_v17 = vpop.permute.xlu0 %5177 }
 0x182   : > { %v5191_v24 = vsel %vm5189_vm9, %v5176_v14, %v5178_v17  ;;  %v5192_v26 = vsel %vm5189_vm9, %v5178_v17, %v5180_v13 }
 0x183   : > { %9214 = vmatprep.subr.msk.mxu0 %vm252_vm2, %v5191_v24  ;;  %9218 = vmatpush1.msk.msra.mxu1 %vm252_vm2, %v5192_v26 }
 0x184   : > { %v5186_v1 = vpop.permute.xlu1 %5185  ;;  %9219 = vmatmul.mubr.msk.f32.vlgmr.msra.gmra.mrb[2].mxu1 %vm248_vm3, %v9213_v18  ;;  %9465 = vmatprep.subr.mxu1 %v10004_v0 }
 0x185   : > { %v5174_v27 = vpop.permute.xlu0 %5173  ;;  %9467 = vmatprep.mubr.msk.f32.mxu1 %vm10006_vm0, %v10004_v0 }
 0x186   : > { %v5190_v29 = vsel %vm5189_vm9, %v5174_v27, %v5176_v14 }
 0x187   : > { %9215 = vmatpush1.msk.msra.mxu0 %vm252_vm2, %v5190_v29 }
 0x188   : > { %v5184_v7 = vpop.permute.xlu1 %5183  ;;  %9216 = vmatmul.mubr.msk.f32.vlgmr.msra.gmra.mrb[0].mxu0 %vm248_vm3, %v9213_v18 }
 0x189   : > { %v5194_v30 = vsel %vm5189_vm9, %v5182_v12, %v5184_v7  ;;  %v5195_v31 = vsel %vm5189_vm9, %v5184_v7, %v5186_v1  ;;  %v5188_v32 = vpop.permute.xlu0 %5187  ;;  %5420 = vmatprep.mubr.f32.mxu0 %v10004_v0 }
 0x18a   : > { %v5196_v33 = vsel %vm5189_vm9, %v5186_v1, %v5188_v32  ;;  %9220 = vmatprep.subr.msk.mxu0 %vm252_vm2, %v5195_v31 }
 0x18b   : > { %9466 = vmatpush3.msk.msra.mxu1 %vm252_vm2, %v5196_v33  ;;  %9221 = vmatpush1.msk.msra.mxu0 %vm252_vm2, %v5194_v30  ;;  %v9237_v30 = vld [vmem:[%s11340_s1 + $0x88] sm:$0x3f] }
 0x18c   : > { %9468 = vmatmul.mubr.msk.f32.vlgmr.msra.gmra.mrb[28].mxu1 %vm248_vm3, %v9213_v18  ;;  %v5515_v36 = vpop.permute.xlu1 %5514  ;;  %9222 = vmatmul.mubr.msk.f32.vlgmr.msra.gmra.mrb[4].mxu0 %vm248_vm3, %v9213_v18 }
 0x18d   : > { %v5513_v38 = vpop.permute.xlu0 %5512  ;;  %5682 = vmatprep.mubr.f32.mxu1 %v10004_v0  ;;  %5611 = vmatprep.mubr.f32.mxu0 %v10004_v0 }
 0x18e   : > { %v5526_v39 = vsel %vm5522_vm10, %v5513_v38, %v5515_v36  ;;  %v546_v42 = vpop.f32.mrb[6].mxu0 }
 0x18f   : > { %9229 = vmatprep.subr.msk.mxu1 %vm252_vm2, %v5526_v39  ;;  %v9394_v44 = vpop.f32.mrb[7].mxu0 }
 0x190   : > { %v5509_v46 = vpop.permute.xlu1 %5508 }
 0x191   : > { %v5511_v47 = vpop.permute.xlu0 %5510  ;;  %v1169_v56 = vpop.f32.mrb[0].mxu1 }
 0x192   : > { %v5524_v58 = vsel %vm5522_vm10, %v5509_v46, %v5511_v47  ;;  %v5525_v59 = vsel %vm5522_vm10, %v5511_v47, %v5513_v38  ;;  %v9404_v2 = vpop.f32.mrb[1].mxu1 }
 0x193   : > { %9226 = vmatprep.subr.msk.mxu0 %vm252_vm2, %v5524_v58  ;;  %9230 = vmatpush1.msk.msra.mxu1 %vm252_vm2, %v5525_v59 }
 0x194   : > { %v5519_v61 = vpop.permute.xlu1 %5518  ;;  %9231 = vmatmul.mubr.msk.f32.vlgmr.msra.gmra.mrb[2].mxu1 %vm248_vm3, %v9225_v53  ;;  %9470 = vmatprep.subr.mxu1 %v10004_v0 }
 0x195   : > { %v5507_v62 = vpop.permute.xlu0 %5506  ;;  %9472 = vmatprep.mubr.msk.f32.mxu1 %vm10006_vm0, %v10004_v0 }
 0x196   : > { %v5523_v63 = vsel %vm5522_vm10, %v5507_v62, %v5509_v46 }
 0x197   : > { %9227 = vmatpush1.msk.msra.mxu0 %vm252_vm2, %v5523_v63 }
 0x198   : > { %v5517_v11 = vpop.permute.xlu1 %5516  ;;  %9228 = vmatmul.mubr.msk.f32.vlgmr.msra.gmra.mrb[0].mxu0 %vm248_vm3, %v9225_v53 }
 0x199   : > { %v5527_v12 = vsel %vm5522_vm10, %v5515_v36, %v5517_v11  ;;  %v5528_v13 = vsel %vm5522_vm10, %v5517_v11, %v5519_v61  ;;  %v5521_v4 = vpop.permute.xlu0 %5520  ;;  %5753 = vmatprep.mubr.f32.mxu0 %v10004_v0 }
 0x19a   : > { %v5529_v14 = vsel %vm5522_vm10, %v5519_v61, %v5521_v4  ;;  %9232 = vmatprep.subr.msk.mxu0 %vm252_vm2, %v5528_v13  ;;  %v9249_v4 = vld [vmem:[%s11340_s1 + $0x90] sm:$0x3f] }
 0x19b   : > { %9471 = vmatpush3.msk.msra.mxu1 %vm252_vm2, %v5529_v14  ;;  %9233 = vmatpush1.msk.msra.mxu0 %vm252_vm2, %v5527_v12 }
 0x19c   : > { %9473 = vmatmul.mubr.msk.f32.vlgmr.msra.gmra.mrb[30].mxu1 %vm248_vm3, %v9225_v53  ;;  %v5848_v17 = vpop.permute.xlu1 %5847  ;;  %9234 = vmatmul.mubr.msk.f32.vlgmr.msra.gmra.mrb[4].mxu0 %vm248_vm3, %v9225_v53 }
 0x19d   : > { %v5846_v18 = vpop.permute.xlu0 %5845  ;;  %6015 = vmatprep.mubr.f32.mxu1 %v10004_v0  ;;  %5944 = vmatprep.mubr.f32.mxu0 %v10004_v0 }
 0x19e   : > { %v5859_v24 = vsel %vm5855_vm11, %v5846_v18, %v5848_v17  ;;  %v846_v26 = vpop.f32.mrb[8].mxu0 }
 0x19f   : > { %9241 = vmatprep.subr.msk.mxu1 %vm252_vm2, %v5859_v24  ;;  %v847_v1 = vadd.f32 %v846_v26, %v546_v42  ;;  %v9399_v27 = vpop.f32.mrb[9].mxu0 }
 0x1a0   : > { %v5842_v29 = vpop.permute.xlu1 %5841 }
 0x1a1   : > { %v5844_v7 = vpop.permute.xlu0 %5843  ;;  %v1179_v31 = vadd.f32 %v1169_v56, %v847_v1 }
 0x1a2   : > { %v5857_v32 = vsel %vm5855_vm11, %v5842_v29, %v5844_v7  ;;  %v5858_v33 = vsel %vm5855_vm11, %v5844_v7, %v5846_v18  ;;  %v1499_v36 = vpop.f32.mrb[4].mxu1 }
 0x1a3   : > { %9238 = vmatprep.subr.msk.mxu0 %vm252_vm2, %v5857_v32  ;;  %9242 = vmatpush1.msk.msra.mxu1 %vm252_vm2, %v5858_v33  ;;  %v1509_v38 = vadd.f32 %v1499_v36, %v1179_v31  ;;  %v9409_v39 = vpop.f32.mrb[5].mxu1 }
 0x1a4   : > { %v5852_v42 = vpop.permute.xlu1 %5851  ;;  %9243 = vmatmul.mubr.msk.f32.vlgmr.msra.gmra.mrb[2].mxu1 %vm248_vm3, %v9237_v30  ;;  %9475 = vmatprep.subr.mxu1 %v10004_v0 }
 0x1a5   : > { %v5840_v44 = vpop.permute.xlu0 %5839  ;;  %9477 = vmatprep.mubr.msk.f32.mxu1 %vm10006_vm0, %v10004_v0 }
 0x1a6   : > { %v5856_v46 = vsel %vm5855_vm11, %v5840_v44, %v5842_v29  ;;  %v11027_v47 = vpop.f32.mrb[2].mxu0 }
 0x1a7   : > { %9239 = vmatpush1.msk.msra.mxu0 %vm252_vm2, %v5856_v46  ;;  %v11030_v53 = vpop.f32.mrb[3].mxu0  ;;  %v8341_v46 = vld [vmem:[%s11341_s2] sm:$0x3f] }
 0x1a8   : > { %v5850_v56 = vpop.permute.xlu1 %5849  ;;  %9240 = vmatmul.mubr.msk.f32.vlgmr.msra.gmra.mrb[0].mxu0 %vm248_vm3, %v9237_v30 }
 0x1a9   : > { %v5860_v58 = vsel %vm5855_vm11, %v5848_v17, %v5850_v56  ;;  %v5861_v59 = vsel %vm5855_vm11, %v5850_v56, %v5852_v42  ;;  %v5854_v2 = vpop.permute.xlu0 %5853  ;;  %6086 = vmatprep.mubr.f32.mxu0 %v10004_v0 }
 0x1aa   : > { %v5862_v61 = vsel %vm5855_vm11, %v5852_v42, %v5854_v2  ;;  %9244 = vmatprep.subr.msk.mxu0 %vm252_vm2, %v5861_v59 }
 0x1ab   : > { %9476 = vmatpush3.msk.msra.mxu1 %vm252_vm2, %v5862_v61  ;;  %9245 = vmatpush1.msk.msra.mxu0 %vm252_vm2, %v5860_v58  ;;  %v9261_v58 = vld [vmem:[%s11340_s1 + $0x98] sm:$0x3f]  ;;  %v10025_v61 = vmov 0  }
 0x1ac   : > { %9478 = vmatmul.mubr.msk.f32.vlgmr.msra.gmra.mrb[32].mxu1 %vm248_vm3, %v9237_v30  ;;  %v6181_v62 = vpop.permute.xlu1 %6180  ;;  %9246 = vmatmul.mubr.msk.f32.vlgmr.msra.gmra.mrb[4].mxu0 %vm248_vm3, %v9237_v30 }
 0x1ad   : > { %v6179_v63 = vpop.permute.xlu0 %6178  ;;  %6348 = vmatprep.mubr.f32.mxu1 %v10004_v0  ;;  %6277 = vmatprep.mubr.f32.mxu0 %v10004_v0 }
 0x1ae   : > { %v6192_v11 = vsel %vm6188_vm12, %v6179_v63, %v6181_v62  ;;  %9927 = vset.pattern.permute.xlu0 %v10025_v61 }
 0x1af   : > { %9253 = vmatprep.subr.msk.mxu1 %vm252_vm2, %v6192_v11  ;;  %8344 = vperm.xlu0 %9927, %v8341_v46  }
 0x1b0   : > { %v6175_v12 = vpop.permute.xlu1 %6174 }
 0x1b1   : > { %v6177_v13 = vpop.permute.xlu0 %6176 }
 0x1b2   : > { %v6190_v14 = vsel %vm6188_vm12, %v6175_v12, %v6177_v13  ;;  %v6191_v17 = vsel %vm6188_vm12, %v6177_v13, %v6179_v63  ;;  %v1829_v18 = vpop.f32.mrb[6].mxu1 }
 0x1b3   : > { %9250 = vmatprep.subr.msk.mxu0 %vm252_vm2, %v6190_v14  ;;  %9254 = vmatpush1.msk.msra.mxu1 %vm252_vm2, %v6191_v17  ;;  %v1839_v24 = vadd.f32 %v1829_v18, %v1509_v38  ;;  %v9414_v26 = vpop.f32.mrb[7].mxu1 }
 0x1b4   : > { %v6185_v1 = vpop.permute.xlu1 %6184  ;;  %9255 = vmatmul.mubr.msk.f32.vlgmr.msra.gmra.mrb[2].mxu1 %vm248_vm3, %v9249_v4  ;;  %9480 = vmatprep.subr.mxu1 %v10004_v0 }
 0x1b5   : > { %v6173_v27 = vpop.permute.xlu0 %6172  ;;  %9482 = vmatprep.mubr.msk.f32.mxu1 %vm10006_vm0, %v10004_v0 }
 0x1b6   : > { %v6189_v29 = vsel %vm6188_vm12, %v6173_v27, %v6175_v12 }
 0x1b7   : > { %9251 = vmatpush1.msk.msra.mxu0 %vm252_vm2, %v6189_v29 }
 0x1b8   : > { %v6183_v7 = vpop.permute.xlu1 %6182  ;;  %9252 = vmatmul.mubr.msk.f32.vlgmr.msra.gmra.mrb[0].mxu0 %vm248_vm3, %v9249_v4 }
 0x1b9   : > { %v6193_v30 = vsel %vm6188_vm12, %v6181_v62, %v6183_v7  ;;  %v6194_v31 = vsel %vm6188_vm12, %v6183_v7, %v6185_v1  ;;  %v6187_v32 = vpop.permute.xlu0 %6186  ;;  %6419 = vmatprep.mubr.f32.mxu0 %v10004_v0 }
 0x1ba   : > { %v6195_v33 = vsel %vm6188_vm12, %v6185_v1, %v6187_v32  ;;  %9256 = vmatprep.subr.msk.mxu0 %vm252_vm2, %v6194_v31  ;;  %v9273_v1 = vld [vmem:[%s11340_s1 + $0xa0] sm:$0x3f] }
 0x1bb   : > { %9481 = vmatpush3.msk.msra.mxu1 %vm252_vm2, %v6195_v33  ;;  %9257 = vmatpush1.msk.msra.mxu0 %vm252_vm2, %v6193_v30 }
 0x1bc   : > { %9483 = vmatmul.mubr.msk.f32.vlgmr.msra.gmra.mrb[34].mxu1 %vm248_vm3, %v9249_v4  ;;  %v6514_v36 = vpop.permute.xlu1 %6513  ;;  %9258 = vmatmul.mubr.msk.f32.vlgmr.msra.gmra.mrb[4].mxu0 %vm248_vm3, %v9249_v4 }
 0x1bd   : > { %v6512_v38 = vpop.permute.xlu0 %6511  ;;  %6681 = vmatprep.mubr.f32.mxu1 %v10004_v0  ;;  %6610 = vmatprep.mubr.f32.mxu0 %v10004_v0 }
 0x1be   : > { %v6525_v39 = vsel %vm6521_vm13, %v6512_v38, %v6514_v36 }
 0x1bf   : > { %9265 = vmatprep.subr.msk.mxu1 %vm252_vm2, %v6525_v39 }
 0x1c0   : > { %v6508_v42 = vpop.permute.xlu1 %6507  ;;  %v2163_v44 = vpop.f32.mrb[8].mxu1 }
 0x1c1   : > { %v6510_v56 = vpop.permute.xlu0 %6509  ;;  %v2173_v59 = vadd.f32 %v2163_v44, %v1839_v24  ;;  %v9419_v2 = vpop.f32.mrb[9].mxu1 }
 0x1c2   : > { %v6523_v62 = vsel %vm6521_vm13, %v6508_v42, %v6510_v56  ;;  %v6524_v63 = vsel %vm6521_vm13, %v6510_v56, %v6512_v38 }
 0x1c3   : > { %9262 = vmatprep.subr.msk.mxu0 %vm252_vm2, %v6523_v62  ;;  %9266 = vmatpush1.msk.msra.mxu1 %vm252_vm2, %v6524_v63 }
 0x1c4   : > { %v6518_v11 = vpop.permute.xlu1 %6517  ;;  %9267 = vmatmul.mubr.msk.f32.vlgmr.msra.gmra.mrb[2].mxu1 %vm248_vm3, %v9261_v58  ;;  %9485 = vmatprep.subr.mxu1 %v10004_v0 }
 0x1c5   : > { %v6506_v12 = vpop.permute.xlu0 %6505  ;;  %9487 = vmatprep.mubr.msk.f32.mxu1 %vm10006_vm0, %v10004_v0 }
 0x1c6   : > { %v6522_v13 = vsel %vm6521_vm13, %v6506_v12, %v6508_v42 }
 0x1c7   : > { %9263 = vmatpush1.msk.msra.mxu0 %vm252_vm2, %v6522_v13 }
 0x1c8   : > { %v6516_v4 = vpop.permute.xlu1 %6515  ;;  %9264 = vmatmul.mubr.msk.f32.vlgmr.msra.gmra.mrb[0].mxu0 %vm248_vm3, %v9261_v58 }
 0x1c9   : > { %v6526_v14 = vsel %vm6521_vm13, %v6514_v36, %v6516_v4  ;;  %v6527_v17 = vsel %vm6521_vm13, %v6516_v4, %v6518_v11  ;;  %v6520_v18 = vpop.permute.xlu0 %6519  ;;  %6752 = vmatprep.mubr.f32.mxu0 %v10004_v0 }
 0x1ca   : > { %v6528_v24 = vsel %vm6521_vm13, %v6518_v11, %v6520_v18  ;;  %9268 = vmatprep.subr.msk.mxu0 %vm252_vm2, %v6527_v17 }
 0x1cb   : > { %9486 = vmatpush3.msk.msra.mxu1 %vm252_vm2, %v6528_v24  ;;  %9269 = vmatpush1.msk.msra.mxu0 %vm252_vm2, %v6526_v14 }
 0x1cc   : > { %9488 = vmatmul.mubr.msk.f32.vlgmr.msra.gmra.mrb[36].mxu1 %vm248_vm3, %v9261_v58  ;;  %9270 = vmatmul.mubr.msk.f32.vlgmr.msra.gmra.mrb[4].mxu0 %vm248_vm3, %v9261_v58  ;;  %v2496_v26 = vpop.f32.mrb[10].mxu1 }
 0x1cd   : > { %9277 = vmatprep.subr.msk.mxu1 %vm252_vm2, %v10843_v35  ;;  %9274 = vmatprep.subr.msk.mxu0 %vm252_vm2, %v10858_v40  ;;  %v2506_v27 = vadd.f32 %v2496_v26, %v2173_v59  ;;  %v9424_v29 = vpop.f32.mrb[11].mxu1 }
 0x1ce   : > { %9278 = vmatpush1.msk.msra.mxu1 %vm252_vm2, %v10121_v3  ;;  %9275 = vmatpush1.msk.msra.mxu0 %vm252_vm2, %v10136_v6  ;;  %v7136_v3 = vpop.permute.xlu0 %7135 }
 0x1cf   : > { %6978 = vmatprep.mubr.f32.mxu1 %v10004_v0  ;;  %9490 = vmatprep.subr.mxu1 %v10004_v0  ;;  %v7137_v6 = vsel %vm241_vm1, %v10258_v20, %v7136_v3 }
 0x1d0   : > { %6907 = vmatprep.mubr.f32.mxu0 %v10004_v0  ;;  %9279 = vmatmul.mubr.msk.f32.vlgmr.msra.gmra.mrb[2].mxu1 %vm248_vm3, %v9273_v1 }
 0x1d1   : > { %9280 = vmatprep.subr.msk.mxu0 %vm252_vm2, %v10865_v52  ;;  %9491 = vmatpush3.msk.msra.mxu1 %vm252_vm2, %v10205_v8  ;;  %v7438_v8 = vpop.permute.xlu1 %7437 }
 0x1d2   : > { %9276 = vmatmul.mubr.msk.f32.vlgmr.msra.gmra.mrb[0].mxu0 %vm248_vm3, %v9273_v1  ;;  %9289 = vmatprep.subr.msk.mxu1 %vm252_vm2, %v10284_v25  ;;  %v7740_v25 = vpop.permute.xlu0 %7739 }
 0x1d3   : > { %9281 = vmatpush1.msk.msra.mxu0 %vm252_vm2, %v10132_v5  ;;  %9492 = vmatprep.mubr.msk.f32.mxu1 %vm10006_vm0, %v10004_v0  ;;  %v9285_v5 = vld [vmem:[%s11340_s1 + $0xa8] sm:$0x3f] }
 0x1d4   : > { %9286 = vmatprep.subr.msk.mxu0 %vm252_vm2, %v10261_v21  ;;  %7049 = vmatprep.mubr.f32.mxu0 %v10004_v0  ;;  %v9297_v21 = vld [vmem:[%s11340_s1 + $0xb0] sm:$0x3f] }
 0x1d5   : > { %9493 = vmatmul.mubr.msk.f32.vlgmr.msra.gmra.mrb[38].mxu1 %vm248_vm3, %v9273_v1 }
 0x1d6   : > { %9290 = vmatpush1.msk.msra.mxu1 %vm252_vm2, %v10256_v19  ;;  %9282 = vmatmul.mubr.msk.f32.vlgmr.msra.gmra.mrb[4].mxu0 %vm248_vm3, %v9273_v1 }
 0x1d7   : > { %9287 = vmatpush1.msk.msra.mxu0 %vm252_vm2, %v10240_v15  ;;  %7280 = vmatprep.mubr.f32.mxu1 %v10004_v0 }
 0x1d8   : > { %9292 = vmatprep.subr.msk.mxu0 %vm252_vm2, %v7137_v6  ;;  %9495 = vmatprep.subr.mxu1 %v10004_v0 }
 0x1d9   : > { %7209 = vmatprep.mubr.f32.mxu0 %v10004_v0  ;;  %9291 = vmatmul.mubr.msk.f32.vlgmr.msra.gmra.mrb[2].mxu1 %vm248_vm3, %v9285_v5 }
 0x1da   : > { %9496 = vmatpush3.msk.msra.mxu1 %vm252_vm2, %v7136_v3  ;;  %9288 = vmatmul.mubr.msk.f32.vlgmr.msra.gmra.mrb[0].mxu0 %vm248_vm3, %v9285_v5 }
 0x1db   : > { %9293 = vmatpush1.msk.msra.mxu0 %vm252_vm2, %v10268_v22  ;;  %9301 = vmatprep.subr.msk.mxu1 %vm252_vm2, %v10457_v54  ;;  %v7439_v22 = vsel %vm866_vm5, %v10308_v28, %v7438_v8  ;;  %v9309_v28 = vld [vmem:[%s11340_s1 + $0xb8] sm:$0x3f] }
 0x1dc   : > { %9298 = vmatprep.subr.msk.mxu0 %vm252_vm2, %v10425_v48  ;;  %9497 = vmatprep.mubr.msk.f32.mxu1 %vm10006_vm0, %v10004_v0  ;;  %v2829_v15 = vpop.f32.mrb[12].mxu1  ;;  %v9321_v48 = vld [vmem:[%s11340_s1 + $0xc0] sm:$0x3f] }
 0x1dd   : > { %7351 = vmatprep.mubr.f32.mxu0 %v10004_v0  ;;  %9498 = vmatmul.mubr.msk.f32.vlgmr.msra.gmra.mrb[40].mxu1 %vm248_vm3, %v9285_v5  ;;  %v2839_v19 = vadd.f32 %v2829_v15, %v2506_v27  ;;  %v9429_v20 = vpop.f32.mrb[13].mxu1 }
 0x1de   : > { %9302 = vmatpush1.msk.msra.mxu1 %vm252_vm2, %v10409_v45  ;;  %9294 = vmatmul.mubr.msk.f32.vlgmr.msra.gmra.mrb[4].mxu0 %vm248_vm3, %v9285_v5 }
 0x1df   : > { %9299 = vmatpush1.msk.msra.mxu0 %vm252_vm2, %v10385_v41  ;;  %7582 = vmatprep.mubr.f32.mxu1 %v10004_v0  ;;  %v7741_v41 = vsel %vm1196_vm4, %v10395_v43, %v7740_v25 }
 0x1e0   : > { %9304 = vmatprep.subr.msk.mxu0 %vm252_vm2, %v7439_v22  ;;  %9500 = vmatprep.subr.mxu1 %v10004_v0 }
 0x1e1   : > { %7511 = vmatprep.mubr.f32.mxu0 %v10004_v0  ;;  %9303 = vmatmul.mubr.msk.f32.vlgmr.msra.gmra.mrb[2].mxu1 %vm248_vm3, %v9297_v21 }
 0x1e2   : > { %9501 = vmatpush3.msk.msra.mxu1 %vm252_vm2, %v7438_v8  ;;  %9300 = vmatmul.mubr.msk.f32.vlgmr.msra.gmra.mrb[0].mxu0 %vm248_vm3, %v9297_v21 }
 0x1e3   : > { %9305 = vmatpush1.msk.msra.mxu0 %vm252_vm2, %v10443_v51  ;;  %9313 = vmatprep.subr.msk.mxu1 %vm252_vm2, %v10512_v9 }
 0x1e4   : > { %9310 = vmatprep.subr.msk.mxu0 %vm252_vm2, %v10359_v37  ;;  %9502 = vmatprep.mubr.msk.f32.mxu1 %vm10006_vm0, %v10004_v0 }
 0x1e5   : > { %7653 = vmatprep.mubr.f32.mxu0 %v10004_v0  ;;  %9503 = vmatmul.mubr.msk.f32.vlgmr.msra.gmra.mrb[42].mxu1 %vm248_vm3, %v9297_v21 }
 0x1e6   : > { %9314 = vmatpush1.msk.msra.mxu1 %vm252_vm2, %v10341_v34  ;;  %9306 = vmatmul.mubr.msk.f32.vlgmr.msra.gmra.mrb[4].mxu0 %vm248_vm3, %v9297_v21  ;;  %v8042_v34 = vpop.permute.xlu1 %8041 }
 0x1e7   : > { %9311 = vmatpush1.msk.msra.mxu0 %vm252_vm2, %v10467_v55  ;;  %7884 = vmatprep.mubr.f32.mxu1 %v10004_v0 }
 0x1e8   : > { %9316 = vmatprep.subr.msk.mxu0 %vm252_vm2, %v7741_v41  ;;  %9505 = vmatprep.subr.mxu1 %v10004_v0 }
 0x1e9   : > { %7813 = vmatprep.mubr.f32.mxu0 %v10004_v0  ;;  %9315 = vmatmul.mubr.msk.f32.vlgmr.msra.gmra.mrb[2].mxu1 %vm248_vm3, %v9309_v28 }
 0x1ea   : > { %9506 = vmatpush3.msk.msra.mxu1 %vm252_vm2, %v7740_v25  ;;  %9312 = vmatmul.mubr.msk.f32.vlgmr.msra.gmra.mrb[0].mxu0 %vm248_vm3, %v9309_v28 }
 0x1eb   : > { %9317 = vmatpush1.msk.msra.mxu0 %vm252_vm2, %v10493_v60  ;;  %9325 = vmatprep.subr.msk.mxu1 %vm252_vm2, %v10551_v23 }
 0x1ec   : > { %9322 = vmatprep.subr.msk.mxu0 %vm252_vm2, %v10436_v50  ;;  %9507 = vmatprep.mubr.msk.f32.mxu1 %vm10006_vm0, %v10004_v0  ;;  %v3162_v37 = vpop.f32.mrb[14].mxu1  ;;  %v8043_v50 = vsel %vm1526_vm6, %v10481_v57, %v8042_v34 }
 0x1ed   : > { %7955 = vmatprep.mubr.f32.mxu0 %v10004_v0  ;;  %9508 = vmatmul.mubr.msk.f32.vlgmr.msra.gmra.mrb[44].mxu1 %vm248_vm3, %v9309_v28  ;;  %v3172_v43 = vadd.f32 %v3162_v37, %v2839_v19  ;;  %v9434_v45 = vpop.f32.mrb[15].mxu1 }
 0x1ee   : > { %9326 = vmatpush1.msk.msra.mxu1 %vm252_vm2, %v10431_v49  ;;  %9318 = vmatmul.mubr.msk.f32.vlgmr.msra.gmra.mrb[4].mxu0 %vm248_vm3, %v9309_v28 }
 0x1ef   : > { %9323 = vmatpush1.msk.msra.mxu0 %vm252_vm2, %v10520_v10  ;;  %8186 = vmatprep.mubr.f32.mxu1 %v10004_v0 }
 0x1f0   : > { %9328 = vmatprep.subr.msk.mxu0 %vm252_vm2, %v8043_v50  ;;  %8115 = vmatprep.mubr.f32.mxu0 %v10004_v0 }
 0x1f1   : > { %9327 = vmatmul.mubr.msk.f32.vlgmr.msra.gmra.mrb[2].mxu1 %vm248_vm3, %v9321_v48  ;;  %9510 = vmatprep.subr.mxu1 %v10004_v0 }
 0x1f2   : > { %9324 = vmatmul.mubr.msk.f32.vlgmr.msra.gmra.mrb[0].mxu0 %vm248_vm3, %v9321_v48  ;;  %9511 = vmatpush3.msk.msra.mxu1 %vm252_vm2, %v8042_v34 }
 0x1f3   : > { %9329 = vmatpush1.msk.msra.mxu0 %vm252_vm2, %v10539_v16  ;;  %9512 = vmatprep.mubr.msk.f32.mxu1 %vm10006_vm0, %v10004_v0  ;;  %vm10026_vm0 = vmmov 1  }
 0x1f4   : > { %8257 = vmatprep.mubr.f32.mxu0 %v10004_v0 }
 0x1f5   : > { %9513 = vmatmul.mubr.msk.f32.vlgmr.msra.gmra.mrb[46].mxu1 %vm248_vm3, %v9321_v48 }
 0x1f6   : > { %9330 = vmatmul.mubr.msk.f32.vlgmr.msra.gmra.mrb[4].mxu0 %vm248_vm3, %v9321_v48  ;;  %vm8659_vm3 = vcmask 744448  }
 0x1fd   : > { %v3495_v49 = vpop.f32.mrb[16].mxu1 }
 0x1fe   : > { %v3505_v51 = vadd.f32 %v3495_v49, %v3172_v43  ;;  %v9439_v54 = vpop.f32.mrb[17].mxu1 }
 0x20d   : > { %v3828_v55 = vpop.f32.mrb[18].mxu1 }
 0x20e   : > { %v3838_v57 = vadd.f32 %v3828_v55, %v3505_v51  ;;  %v9444_v60 = vpop.f32.mrb[19].mxu1 }
 0x21d   : > { %v4161_v9 = vpop.f32.mrb[20].mxu1 }
 0x21e   : > { %v4171_v10 = vadd.f32 %v4161_v9, %v3838_v57  ;;  %v9449_v23 = vpop.f32.mrb[21].mxu1 }
 0x22e   : > { %v8345_v8 = vpop.permute.xlu0 %8344 }
 0x22f   : > { %v4494_v35 = vpop.f32.mrb[22].mxu1 }
 0x230   : > { %v4504_v16 = vadd.f32 %v4494_v35, %v4171_v10  ;;  %v9454_v40 = vpop.f32.mrb[23].mxu1 }
 0x231   : > { %v8444_v40 = vld [vmem:[#allocation2 + $0x8] sm:$0xff] }
 0x23f   : > { %v4827_v52 = vpop.f32.mrb[24].mxu1 }
 0x240   : > { %v4837_v7 = vadd.f32 %v4827_v52, %v4504_v16  ;;  %v9459_v30 = vpop.f32.mrb[25].mxu1  ;;  %v8446_v52 = vld [vmem:[#allocation2 + $0x18] sm:$0xff] }
 0x241   : > { %v9515_v30 = vpack.c.bf16 %v8446_v52, %v8444_v40  ;;  %v8588_v40 = vld [vmem:[#allocation2 + $0x488] sm:$0xff] }
 0x243   : > { %9516 = vmatprep.subr.bf16.mxu1 %v9515_v30  ;;  %v8461_v30 = vld [vmem:[#allocation2 + $0x90] sm:$0xff] }
 0x24f   : > { %v5160_v31 = vpop.f32.mrb[26].mxu1 }
 0x250   : > { %v5170_v32 = vadd.f32 %v5160_v31, %v4837_v7  ;;  %v9464_v33 = vpop.f32.mrb[27].mxu1  ;;  %v8443_v7 = vld [vmem:[#allocation2] sm:$0xff]  ;;  %v8445_v31 = vld [vmem:[#allocation2 + $0x10] sm:$0xff] }
 0x251   : > { %v8450_v33 = vld [vmem:[#allocation2 + $0x38] sm:$0xff] }
 0x25f   : > { %v5493_v36 = vpop.f32.mrb[28].mxu1 }
 0x260   : > { %v5503_v38 = vadd.f32 %v5493_v36, %v5170_v32  ;;  %v9469_v39 = vpop.f32.mrb[29].mxu1  ;;  %v8448_v32 = vld [vmem:[#allocation2 + $0x28] sm:$0xff]  ;;  %v9517_v36 = vpack.c.bf16 %v8445_v31, %v8443_v7  ;;  %v8459_v7 = vld [vmem:[#allocation2 + $0x80] sm:$0xff]  ;;  %v8590_v31 = vld [vmem:[#allocation2 + $0x498] sm:$0xff] }
 0x261   : > { %v8572_v39 = vld [vmem:[#allocation2 + $0x408] sm:$0xff] }
 0x262   : > { %9518 = vmatpush1.bf16.msra.mxu1 %v9517_v36  ;;  %v8466_v36 = vld [vmem:[#allocation2 + $0xb8] sm:$0xff] }
 0x26f   : > { %v5826_v42 = vpop.f32.mrb[30].mxu1 }
 0x270   : > { %v5836_v44 = vadd.f32 %v5826_v42, %v5503_v38  ;;  %v9474_v46 = vpop.f32.mrb[31].mxu1  ;;  %v9519_v38 = vpack.c.bf16 %v8450_v33, %v8448_v32  ;;  %v8574_v42 = vld [vmem:[#allocation2 + $0x418] sm:$0xff]  ;;  %v8464_v33 = vld [vmem:[#allocation2 + $0xa8] sm:$0xff] }
 0x271   : > { %v9643_v46 = vpack.c.bf16 %v8574_v42, %v8572_v39  ;;  %v8587_v39 = vld [vmem:[#allocation2 + $0x480] sm:$0xff]  ;;  %v8589_v42 = vld [vmem:[#allocation2 + $0x490] sm:$0xff] }
 0x272   : > { %9520 = vmatprep.subr.bf16.mxu1 %v9519_v38  ;;  %v9659_v38 = vpack.c.bf16 %v8590_v31, %v8588_v40  ;;  %v8606_v40 = vld [vmem:[#allocation2 + $0x518] sm:$0xff] }
 0x273   : > { %9644 = vmatprep.subr.bf16.mxu0 %v9643_v46  ;;  %v8592_v46 = vld [vmem:[#allocation2 + $0x4a8] sm:$0xff] }
 0x27f   : > { %v6159_v56 = vpop.f32.mrb[32].mxu1 }
 0x280   : > { %v6169_v58 = vadd.f32 %v6159_v56, %v5836_v44  ;;  %v9479_v59 = vpop.f32.mrb[33].mxu1  ;;  %v8447_v44 = vld [vmem:[#allocation2 + $0x20] sm:$0xff]  ;;  %v8449_v56 = vld [vmem:[#allocation2 + $0x30] sm:$0xff] }
 0x281   : > { %v8573_v59 = vld [vmem:[#allocation2 + $0x410] sm:$0xff] }
 0x28f   : > { %v6492_v2 = vpop.f32.mrb[34].mxu1 }
 0x290   : > { %v6502_v61 = vadd.f32 %v6492_v2, %v6169_v58  ;;  %v9484_v62 = vpop.f32.mrb[35].mxu1  ;;  %v8571_v58 = vld [vmem:[#allocation2 + $0x400] sm:$0xff]  ;;  %v9521_v2 = vpack.c.bf16 %v8449_v56, %v8447_v44  ;;  %v9533_v44 = vpack.c.bf16 %v8461_v30, %v8459_v7  ;;  %v8594_v56 = vld [vmem:[#allocation2 + $0x4b8] sm:$0xff]  ;;  %v8477_v30 = vld [vmem:[#allocation2 + $0x110] sm:$0xff] }
 0x291   : > { %v8452_v62 = vld [vmem:[#allocation2 + $0x48] sm:$0xff]  ;;  %v8475_v7 = vld [vmem:[#allocation2 + $0x100] sm:$0xff] }
 0x292   : > { %9522 = vmatpush1.bf16.msra.mxu1 %v9521_v2  ;;  %v8465_v2 = vld [vmem:[#allocation2 + $0xb0] sm:$0xff] }
 0x29f   : > { %v6825_v63 = vpop.f32.mrb[36].mxu1 }
 0x2a0   : > { %v6835_v11 = vadd.f32 %v6825_v63, %v6502_v61  ;;  %v9489_v12 = vpop.f32.mrb[37].mxu1  ;;  %v9645_v61 = vpack.c.bf16 %v8573_v59, %v8571_v58  ;;  %v8454_v63 = vld [vmem:[#allocation2 + $0x58] sm:$0xff]  ;;  %v9535_v58 = vpack.c.bf16 %v8466_v36, %v8464_v33  ;;  %v8463_v59 = vld [vmem:[#allocation2 + $0xa0] sm:$0xff] }
 0x2a1   : > { %v9523_v12 = vpack.c.bf16 %v8454_v63, %v8452_v62  ;;  %v8468_v62 = vld [vmem:[#allocation2 + $0xc8] sm:$0xff]  ;;  %v8470_v63 = vld [vmem:[#allocation2 + $0xd8] sm:$0xff] }
 0x2a2   : > { %9646 = vmatpush1.bf16.msra.mxu0 %v9645_v61  ;;  %v9661_v61 = vpack.c.bf16 %v8589_v42, %v8587_v39  ;;  %v8482_v33 = vld [vmem:[#allocation2 + $0x138] sm:$0xff]  ;;  %v8605_v39 = vld [vmem:[#allocation2 + $0x510] sm:$0xff]  ;;  %v9549_v42 = vpack.c.bf16 %v8477_v30, %v8475_v7 }
 0x2a3   : > { %9524 = vmatprep.subr.bf16.mxu1 %v9523_v12  ;;  %v8591_v12 = vld [vmem:[#allocation2 + $0x4a0] sm:$0xff]  ;;  %v8493_v7 = vld [vmem:[#allocation2 + $0x190] sm:$0xff] }
 0x2a8   : > { %v7122_v13 = vpop.f32.mrb[38].mxu1 }
 0x2a9   : > { %v7132_v4 = vadd.f32 %v7122_v13, %v6835_v11  ;;  %v9494_v14 = vpop.f32.mrb[39].mxu1  ;;  %v8576_v11 = vld [vmem:[#allocation2 + $0x428] sm:$0xff]  ;;  %v8578_v13 = vld [vmem:[#allocation2 + $0x438] sm:$0xff] }
 0x2aa   : > { %v8453_v14 = vld [vmem:[#allocation2 + $0x50] sm:$0xff] }
 0x2b0   : > { %v7424_v17 = vpop.f32.mrb[40].mxu1 }
 0x2b1   : > { %v7434_v18 = vadd.f32 %v7424_v17, %v7132_v4  ;;  %v9499_v24 = vpop.f32.mrb[41].mxu1  ;;  %v8451_v4 = vld [vmem:[#allocation2 + $0x40] sm:$0xff]  ;;  %v9647_v17 = vpack.c.bf16 %v8578_v13, %v8576_v11  ;;  %v9663_v11 = vpack.c.bf16 %v8594_v56, %v8592_v46  ;;  %v8593_v13 = vld [vmem:[#allocation2 + $0x4b0] sm:$0xff]  ;;  %v8610_v46 = vld [vmem:[#allocation2 + $0x538] sm:$0xff] }
 0x2b2   : > { %v8577_v24 = vld [vmem:[#allocation2 + $0x430] sm:$0xff] }
 0x2b3   : > { %9648 = vmatprep.subr.bf16.mxu0 %v9647_v17  ;;  %v8598_v17 = vld [vmem:[#allocation2 + $0x4d8] sm:$0xff] }
 0x2b8   : > { %v7726_v26 = vpop.f32.mrb[42].mxu1 }
 0x2b9   : > { %v7736_v1 = vadd.f32 %v7726_v26, %v7434_v18  ;;  %v9504_v27 = vpop.f32.mrb[43].mxu1  ;;  %v8575_v18 = vld [vmem:[#allocation2 + $0x420] sm:$0xff]  ;;  %v8456_v26 = vld [vmem:[#allocation2 + $0x68] sm:$0xff] }
 0x2ba   : > { %v8458_v27 = vld [vmem:[#allocation2 + $0x78] sm:$0xff] }
 0x2c0   : > { %v8028_v29 = vpop.f32.mrb[44].mxu1 }
 0x2c1   : > { %v8038_v3 = vadd.f32 %v8028_v29, %v7736_v1  ;;  %v9509_v5 = vpop.f32.mrb[45].mxu1  ;;  %v9649_v1 = vpack.c.bf16 %v8577_v24, %v8575_v18  ;;  %v8580_v29 = vld [vmem:[#allocation2 + $0x448] sm:$0xff]  ;;  %v9539_v18 = vpack.c.bf16 %v8470_v63, %v8468_v62  ;;  %v8467_v24 = vld [vmem:[#allocation2 + $0xc0] sm:$0xff]  ;;  %v8486_v62 = vld [vmem:[#allocation2 + $0x158] sm:$0xff] }
 0x2c2   : > { %v9525_v5 = vpack.c.bf16 %v8453_v14, %v8451_v4  ;;  %v9537_v4 = vpack.c.bf16 %v8465_v2, %v8463_v59  ;;  %v8596_v14 = vld [vmem:[#allocation2 + $0x4c8] sm:$0xff]  ;;  %v8481_v59 = vld [vmem:[#allocation2 + $0x130] sm:$0xff] }
 0x2c3   : > { %9650 = vmatpush1.bf16.msra.mxu0 %v9649_v1  ;;  %v9665_v1 = vpack.c.bf16 %v8593_v13, %v8591_v12  ;;  %v8609_v12 = vld [vmem:[#allocation2 + $0x530] sm:$0xff] }
 0x2c4   : > { %v8188_v6 = vpop.f32.mrb[2].mxu1  ;;  %9526 = vmatpush1.bf16.msra.mxu1 %v9525_v5  ;;  %v8595_v5 = vld [vmem:[#allocation2 + $0x4c0] sm:$0xff] }
 0x2c5   : > { %v9733_v15 = vadd.f32 %v8188_v6, %v11027_v47  ;;  %v8117_v19 = vpop.f32.mrb[0].mxu0  ;;  %v8190_v20 = vpop.f32.mrb[3].mxu1 }
 0x2c6   : > { %v9734_v21 = vadd.f32 %v8190_v20, %v11030_v53  ;;  %v8119_v22 = vpop.f32.mrb[1].mxu0  ;;  %v11244_v50 = vadd.f32 %v8345_v8, %v8117_v19  ;;  %v9527_v19 = vpack.c.bf16 %v8458_v27, %v8456_v26  ;;  %v8457_v20 = vld [vmem:[#allocation2 + $0x70] sm:$0xff]  ;;  %v8472_v27 = vld [vmem:[#allocation2 + $0xe8] sm:$0xff] }
 0x2c7   : > { %v11236_v25 = vadd.f32 %v8345_v8, %v8119_v22  ;;  %v11238_v28 = vadd.f32 %v9733_v15, %v8345_v8  ;;  %v8579_v15 = vld [vmem:[#allocation2 + $0x440] sm:$0xff]  ;;  %v8460_v22 = vld [vmem:[#allocation2 + $0x88] sm:$0xff]  ;;  %v8469_v26 = vld [vmem:[#allocation2 + $0xd0] sm:$0xff] }
 0x2c8   : > { %v8330_v41 = vpop.f32.mrb[46].mxu1  ;;  %v11240_v34 = vadd.f32 %v9734_v21, %v8345_v8  ;;  %v8354_v9 = vmax.f32 %v11244_v50, 0.0  ;;  %v8581_v21 = vld [vmem:[#allocation2 + $0x450] sm:$0xff]  ;;  %9528 = vmatprep.subr.bf16.mxu1 %v9527_v19  ;;  %v8602_v19 = vld [vmem:[#allocation2 + $0x4f8] sm:$0xff] }
 0x2c9   : > { %v8355_v37 = vmax.f32 %v11236_v25, 0.0  ;;  %v8356_v43 = vmax.f32 %v11238_v28, 0.0  ;;  %v8340_v45 = vadd.f32 %v8330_v41, %v8038_v3  ;;  %v8259_v48 = vpop.f32.mrb[4].mxu0  ;;  %v9514_v47 = vpop.f32.mrb[47].mxu1  ;;  %v8582_v3 = vld [vmem:[#allocation2 + $0x458] sm:$0xff]  ;;  %v9653_v41 = vpack.c.bf16 %v8581_v21, %v8579_v15  ;;  %v8600_v15 = vld [vmem:[#allocation2 + $0x4e8] sm:$0xff] }
 0x2ca   : > { %v11246_v49 = vadd.f32 %v8345_v8, %v8259_v48  ;;  %v8261_v53 = vpop.f32.mrb[5].mxu0  ;;  %v8357_v55 = vmax.f32 %v11240_v34, 0.0  ;;  %v9651_v6 = vpack.c.bf16 %v8582_v3, %v8580_v29  ;;  %v8584_v48 = vld [vmem:[#allocation2 + $0x468] sm:$0xff]  ;;  %v8586_v47 = vld [vmem:[#allocation2 + $0x478] sm:$0xff]  ;;  %v9667_v3 = vpack.c.bf16 %v8598_v17, %v8596_v14  ;;  %v8471_v21 = vld [vmem:[#allocation2 + $0xe0] sm:$0xff] }
 0x2cb   : > { %v9928_v51 = vpack.i.bf16 %v8356_v43, %v8355_v37  ;;  %v11252_v54 = vadd.f32 %v8345_v8, %v8261_v53  ;;  %v11259_v10 = vadd.f32 %v8345_v8, %v8340_v45  ;;  %v8455_v8 = vld [vmem:[#allocation2 + $0x60] sm:$0xff]  ;;  %v8462_v45 = vld [vmem:[#allocation2 + $0x98] sm:$0xff]  ;;  %v9655_v53 = vpack.c.bf16 %v8586_v47, %v8584_v48 }
 0x2cc   : > { %v8358_v57 = vmax.f32 %v11246_v49, 0.0  ;;  %v9933_v35 = vpack.i.bf16 %v8354_v9, %v8357_v55  ;;  %9652 = vmatprep.subr.bf16.mxu0 %v9651_v6  ;;  %v9531_v52 = vpack.c.bf16 %v8462_v45, %v8460_v22  ;;  %v8474_v29 = vld [vmem:[#allocation2 + $0xf8] sm:$0xff]  ;;  %v8597_v6 = vld [vmem:[#allocation2 + $0x4d0] sm:$0xff]  ;;  %v8476_v45 = vld [vmem:[#allocation2 + $0x108] sm:$0xff]  ;;  %v9671_v47 = vpack.c.bf16 %v8602_v19, %v8600_v15 }
 0x2cd   : > { %v8359_v60 = vmax.f32 %v11252_v54, 0.0  ;;  %9929 = vrot.lane.b32.xlu1 %v9928_v51, %s10005_s11  ;;  %v8360_v16 = vmax.f32 %v11259_v10, 0.0  ;;  %v8583_v51 = vld [vmem:[#allocation2 + $0x460] sm:$0xff]  ;;  %9654 = vmatpush1.bf16.msra.mxu0 %v9653_v41  ;;  %v8473_v22 = vld [vmem:[#allocation2 + $0xf0] sm:$0xff]  ;;  %v9669_v41 = vpack.c.bf16 %v8597_v6, %v8595_v5  ;;  %v8478_v48 = vld [vmem:[#allocation2 + $0x118] sm:$0xff] }
 0x2ce   : > { %9656 = vmatprep.subr.bf16.mxu0 %v9655_v53  ;;  %v8599_v53 = vld [vmem:[#allocation2 + $0x4e0] sm:$0xff]  ;;  %v8614_v14 = vld [vmem:[#allocation2 + $0x558] sm:$0xff]  ;;  %v8613_v5 = vld [vmem:[#allocation2 + $0x550] sm:$0xff] }
 0x2cf   : > { %v9938_v23 = vpack.i.bf16 %v8358_v57, %v8359_v60  ;;  %v8618_v15 = vld [vmem:[#allocation2 + $0x578] sm:$0xff]  ;;  %v8507_v10 = vld [vmem:[#allocation2 + $0x200] sm:$0xff] }
 0x2d1   : > { %9939 = vrot.lane.b32.xlu0 %v9938_v23, %s10005_s11  ;;  %9934 = vrot.lane.b32.xlu1 %v9933_v35, %s10005_s11  ;;  %v8585_v23 = vld [vmem:[#allocation2 + $0x470] sm:$0xff]  ;;  %v9529_v35 = vpack.c.bf16 %v8457_v20, %v8455_v8  ;;  %v9541_v8 = vpack.c.bf16 %v8469_v26, %v8467_v24  ;;  %v9543_v20 = vpack.c.bf16 %v8474_v29, %v8472_v27  ;;  %v8490_v27 = vld [vmem:[#allocation2 + $0x178] sm:$0xff] }
 0x2d2   : > { %v9657_v32 = vpack.c.bf16 %v8585_v23, %v8583_v51  ;;  %v8601_v51 = vld [vmem:[#allocation2 + $0x4f0] sm:$0xff]  ;;  %v9545_v23 = vpack.c.bf16 %v8473_v22, %v8471_v21 }
 0x2d3   : > { %9530 = vmatpush1.bf16.msra.mxu1 %v9529_v35  ;;  %v8604_v35 = vld [vmem:[#allocation2 + $0x508] sm:$0xff]  ;;  %v9673_v31 = vpack.c.bf16 %v8601_v51, %v8599_v53  ;;  %v8485_v24 = vld [vmem:[#allocation2 + $0x150] sm:$0xff] }
 0x2d4   : > { %9532 = vmatprep.subr.bf16.mxu1 %v9531_v52  ;;  %9658 = vmatpush1.bf16.msra.mxu0 %v9657_v32  ;;  %v9547_v52 = vpack.c.bf16 %v8478_v48, %v8476_v45  ;;  %v8480_v32 = vld [vmem:[#allocation2 + $0x128] sm:$0xff]  ;;  %v9675_v36 = vpack.c.bf16 %v8606_v40, %v8604_v35  ;;  %v8489_v21 = vld [vmem:[#allocation2 + $0x170] sm:$0xff]  ;;  %v8494_v45 = vld [vmem:[#allocation2 + $0x198] sm:$0xff] }
 0x2d5   : > { %8380 = vrot.lane.b32.xlu1 %v8360_v16, %s10005_s11  ;;  %9660 = vmatprep.subr.bf16.mxu0 %v9659_v38  ;;  %v8603_v38 = vld [vmem:[#allocation2 + $0x500] sm:$0xff]  ;;  %v9551_v56 = vpack.c.bf16 %v8482_v33, %v8480_v32  ;;  %v8617_v53 = vld [vmem:[#allocation2 + $0x570] sm:$0xff]  ;;  %v8622_v35 = vld [vmem:[#allocation2 + $0x598] sm:$0xff]  ;;  %s9339_s11 = sshll.u32 %s11352_s16, 4 }
 0x2d6   : > { %v9677_v2 = vpack.c.bf16 %v8605_v39, %v8603_v38  ;;  %v8498_v32 = vld [vmem:[#allocation2 + $0x1b8] sm:$0xff]  ;;  %v8621_v38 = vld [vmem:[#allocation2 + $0x590] sm:$0xff]  ;;  %s212_s23 = scalar_lea.vmem %s11343_s4, %s9339_s11 }
 0x2d7   : > { %9534 = vmatpush1.bf16.msra.mxu1 %v9533_v44  ;;  %v8608_v44 = vld [vmem:[#allocation2 + $0x528] sm:$0xff] }
 0x2d8   : > { %9536 = vmatprep.subr.bf16.mxu1 %v9535_v58  ;;  %9662 = vmatpush1.bf16.msra.mxu0 %v9661_v61  ;;  %v8479_v58 = vld [vmem:[#allocation2 + $0x120] sm:$0xff]  ;;  %v8484_v61 = vld [vmem:[#allocation2 + $0x148] sm:$0xff]  ;;  %v9679_v63 = vpack.c.bf16 %v8610_v46, %v8608_v44  ;;  %v8626_v44 = vld [vmem:[#allocation2 + $0x5b8] sm:$0xff] }
 0x2d9   : > { %9664 = vmatprep.subr.bf16.mxu0 %v9663_v11  ;;  %v8607_v11 = vld [vmem:[#allocation2 + $0x520] sm:$0xff]  ;;  %v9553_v13 = vpack.c.bf16 %v8481_v59, %v8479_v58  ;;  %v9555_v17 = vpack.c.bf16 %v8486_v62, %v8484_v61  ;;  %v8497_v58 = vld [vmem:[#allocation2 + $0x1b0] sm:$0xff]  ;;  %v8502_v61 = vld [vmem:[#allocation2 + $0x1d8] sm:$0xff] }
 0x2da   : > { %v9681_v26 = vpack.c.bf16 %v8609_v12, %v8607_v11  ;;  %v8499_v12 = vld [vmem:[#allocation2 + $0x1c0] sm:$0xff] }
 0x2db   : > { %9538 = vmatpush1.bf16.msra.mxu1 %v9537_v4  ;;  %v8612_v4 = vld [vmem:[#allocation2 + $0x548] sm:$0xff] }
 0x2dc   : > { %9540 = vmatprep.subr.bf16.mxu1 %v9539_v18  ;;  %9666 = vmatpush1.bf16.msra.mxu0 %v9665_v1  ;;  %v8483_v18 = vld [vmem:[#allocation2 + $0x140] sm:$0xff]  ;;  %v8488_v1 = vld [vmem:[#allocation2 + $0x168] sm:$0xff]  ;;  %v9683_v29 = vpack.c.bf16 %v8614_v14, %v8612_v4 }
 0x2dd   : > { %9668 = vmatprep.subr.bf16.mxu0 %v9667_v3  ;;  %v8611_v3 = vld [vmem:[#allocation2 + $0x540] sm:$0xff]  ;;  %v9557_v6 = vpack.c.bf16 %v8485_v24, %v8483_v18  ;;  %v9559_v19 = vpack.c.bf16 %v8490_v27, %v8488_v1  ;;  %v8504_v24 = vld [vmem:[#allocation2 + $0x1e8] sm:$0xff] }
 0x2de   : > { %v9685_v22 = vpack.c.bf16 %v8613_v5, %v8611_v3  ;;  %v8623_v4 = vld [vmem:[#allocation2 + $0x5a0] sm:$0xff]  ;;  %v8628_v1 = vld [vmem:[#allocation2 + $0x5c8] sm:$0xff]  ;;  %v8505_v5 = vld [vmem:[#allocation2 + $0x1f0] sm:$0xff] }
 0x2df   : > { %9542 = vmatpush1.bf16.msra.mxu1 %v9541_v8  ;;  %v8616_v8 = vld [vmem:[#allocation2 + $0x568] sm:$0xff]  ;;  %v8503_v3 = vld [vmem:[#allocation2 + $0x1e0] sm:$0xff] }
 0x2e0   : > { %9544 = vmatprep.subr.bf16.mxu1 %v9543_v20  ;;  %9670 = vmatpush1.bf16.msra.mxu0 %v9669_v41  ;;  %v8487_v20 = vld [vmem:[#allocation2 + $0x160] sm:$0xff]  ;;  %v8492_v41 = vld [vmem:[#allocation2 + $0x188] sm:$0xff]  ;;  %v9687_v48 = vpack.c.bf16 %v8618_v15, %v8616_v8  ;;  %v9577_v15 = vpack.c.bf16 %v8505_v5, %v8503_v3  ;;  %v8637_v5 = vld [vmem:[#allocation2 + $0x610] sm:$0xff] }
 0x2e1   : > { %9672 = vmatprep.subr.bf16.mxu0 %v9671_v47  ;;  %v8615_v47 = vld [vmem:[#allocation2 + $0x560] sm:$0xff]  ;;  %v9561_v51 = vpack.c.bf16 %v8489_v21, %v8487_v20  ;;  %v9563_v40 = vpack.c.bf16 %v8494_v45, %v8492_v41  ;;  %v8629_v20 = vld [vmem:[#allocation2 + $0x5d0] sm:$0xff]  ;;  %v8508_v45 = vld [vmem:[#allocation2 + $0x208] sm:$0xff] }
 0x2e2   : > { %v9689_v30 = vpack.c.bf16 %v8617_v53, %v8615_v47  ;;  %v8632_v47 = vld [vmem:[#allocation2 + $0x5e8] sm:$0xff]  ;;  %v8635_v3 = vld [vmem:[#allocation2 + $0x600] sm:$0xff] }
 0x2e3   : > { %9546 = vmatpush1.bf16.msra.mxu1 %v9545_v23  ;;  %v8620_v23 = vld [vmem:[#allocation2 + $0x588] sm:$0xff] }
 0x2e4   : > { %9548 = vmatprep.subr.bf16.mxu1 %v9547_v52  ;;  %9674 = vmatpush1.bf16.msra.mxu0 %v9673_v31  ;;  %v8491_v52 = vld [vmem:[#allocation2 + $0x180] sm:$0xff]  ;;  %v8496_v31 = vld [vmem:[#allocation2 + $0x1a8] sm:$0xff]  ;;  %v9691_v33 = vpack.c.bf16 %v8622_v35, %v8620_v23 }
 0x2e5   : > { %9676 = vmatprep.subr.bf16.mxu0 %v9675_v36  ;;  %v8619_v36 = vld [vmem:[#allocation2 + $0x580] sm:$0xff]  ;;  %v9565_v39 = vpack.c.bf16 %v8493_v7, %v8491_v52  ;;  %v9567_v46 = vpack.c.bf16 %v8498_v32, %v8496_v31 }
 0x2e6   : > { %v9693_v59 = vpack.c.bf16 %v8621_v38, %v8619_v36  ;;  %v8631_v7 = vld [vmem:[#allocation2 + $0x5e0] sm:$0xff] }
 0x2e7   : > { %9550 = vmatpush1.bf16.msra.mxu1 %v9549_v42  ;;  %v8624_v42 = vld [vmem:[#allocation2 + $0x5a8] sm:$0xff] }
 0x2e8   : > { %9552 = vmatprep.subr.bf16.mxu1 %v9551_v56  ;;  %9678 = vmatpush1.bf16.msra.mxu0 %v9677_v2  ;;  %v8495_v56 = vld [vmem:[#allocation2 + $0x1a0] sm:$0xff]  ;;  %v8500_v2 = vld [vmem:[#allocation2 + $0x1c8] sm:$0xff]  ;;  %v9695_v62 = vpack.c.bf16 %v8626_v44, %v8624_v42 }
 0x2e9   : > { %9680 = vmatprep.subr.bf16.mxu0 %v9679_v63  ;;  %v9569_v63 = vpack.c.bf16 %v8497_v58, %v8495_v56  ;;  %v9571_v11 = vpack.c.bf16 %v8502_v61, %v8500_v2 }
 0x2eb   : > { %9554 = vmatpush1.bf16.msra.mxu1 %v9553_v13  ;;  %v8501_v13 = vld [vmem:[#allocation2 + $0x1d0] sm:$0xff] }
 0x2ec   : > { %9556 = vmatprep.subr.bf16.mxu1 %v9555_v17  ;;  %9682 = vmatpush1.bf16.msra.mxu0 %v9681_v26  ;;  %v9573_v14 = vpack.c.bf16 %v8501_v13, %v8499_v12  ;;  %v8625_v17 = vld [vmem:[#allocation2 + $0x5b0] sm:$0xff]  ;;  %v8506_v26 = vld [vmem:[#allocation2 + $0x1f8] sm:$0xff]  ;;  %v8512_v12 = vld [vmem:[#allocation2 + $0x228] sm:$0xff] }
 0x2ed   : > { %9684 = vmatprep.subr.bf16.mxu0 %v9683_v29  ;;  %v9697_v18 = vpack.c.bf16 %v8625_v17, %v8623_v4  ;;  %v9575_v27 = vpack.c.bf16 %v8506_v26, %v8504_v24  ;;  %v8630_v29 = vld [vmem:[#allocation2 + $0x5d8] sm:$0xff]  ;;  %v8511_v24 = vld [vmem:[#allocation2 + $0x220] sm:$0xff] }
 0x2ee   : > { %v9699_v8 = vpack.c.bf16 %v8630_v29, %v8628_v1  ;;  %v8514_v13 = vld [vmem:[#allocation2 + $0x238] sm:$0xff]  ;;  %v8513_v29 = vld [vmem:[#allocation2 + $0x230] sm:$0xff] }
 0x2ef   : > { %9558 = vmatpush1.bf16.msra.mxu1 %v9557_v6 }
 0x2f0   : > { %9560 = vmatprep.subr.bf16.mxu1 %v9559_v19  ;;  %9686 = vmatpush1.bf16.msra.mxu0 %v9685_v22  ;;  %v8627_v19 = vld [vmem:[#allocation2 + $0x5c0] sm:$0xff] }
 0x2f1   : > { %9688 = vmatprep.subr.bf16.mxu0 %v9687_v48  ;;  %v9701_v41 = vpack.c.bf16 %v8629_v20, %v8627_v19  ;;  %v8510_v48 = vld [vmem:[#allocation2 + $0x218] sm:$0xff] }
 0x2f2   : > { %v9579_v53 = vpack.c.bf16 %v8510_v48, %v8508_v45 }
 0x2f3   : > { %9562 = vmatpush1.bf16.msra.mxu1 %v9561_v51  ;;  %v8634_v51 = vld [vmem:[#allocation2 + $0x5f8] sm:$0xff] }
 0x2f4   : > { %9564 = vmatprep.subr.bf16.mxu1 %v9563_v40  ;;  %9690 = vmatpush1.bf16.msra.mxu0 %v9689_v30  ;;  %v9703_v52 = vpack.c.bf16 %v8634_v51, %v8632_v47  ;;  %v8633_v30 = vld [vmem:[#allocation2 + $0x5f0] sm:$0xff]  ;;  %v9585_v47 = vpack.c.bf16 %v8513_v29, %v8511_v24  ;;  %v8515_v51 = vld [vmem:[#allocation2 + $0x240] sm:$0xff]  ;;  %v8534_v29 = vld [vmem:[#allocation2 + $0x2d8] sm:$0xff] }
 0x2f5   : > { %9692 = vmatprep.subr.bf16.mxu0 %v9691_v33  ;;  %v9705_v38 = vpack.c.bf16 %v8633_v30, %v8631_v7  ;;  %v8641_v7 = vld [vmem:[#allocation2 + $0x630] sm:$0xff]  ;;  %v8520_v30 = vld [vmem:[#allocation2 + $0x268] sm:$0xff] }
 0x2f7   : > { %9566 = vmatpush1.bf16.msra.mxu1 %v9565_v39  ;;  %v8636_v39 = vld [vmem:[#allocation2 + $0x608] sm:$0xff] }
 0x2f8   : > { %9568 = vmatprep.subr.bf16.mxu1 %v9567_v46  ;;  %9694 = vmatpush1.bf16.msra.mxu0 %v9693_v59  ;;  %v8638_v46 = vld [vmem:[#allocation2 + $0x618] sm:$0xff] }
 0x2f9   : > { %9696 = vmatprep.subr.bf16.mxu0 %v9695_v62 }
 0x2fb   : > { %9570 = vmatpush1.bf16.msra.mxu1 %v9569_v63  ;;  %v9707_v63 = vpack.c.bf16 %v8638_v46, %v8636_v39  ;;  %v8521_v46 = vld [vmem:[#allocation2 + $0x270] sm:$0xff] }
 0x2fc   : > { %9572 = vmatprep.subr.bf16.mxu1 %v9571_v11  ;;  %9698 = vmatpush1.bf16.msra.mxu0 %v9697_v18 }
 0x2fd   : > { %9700 = vmatprep.subr.bf16.mxu0 %v9699_v8  ;;  %v8516_v8 = vld [vmem:[#allocation2 + $0x248] sm:$0xff] }
 0x2ff   : > { %9574 = vmatpush1.bf16.msra.mxu1 %v9573_v14 }
 0x300   : > { %9576 = vmatprep.subr.bf16.mxu1 %v9575_v27  ;;  %9702 = vmatpush1.bf16.msra.mxu0 %v9701_v41  ;;  %v9583_v27 = vpack.c.bf16 %v8514_v13, %v8512_v12  ;;  %v8528_v12 = vld [vmem:[#allocation2 + $0x2a8] sm:$0xff]  ;;  %v8530_v13 = vld [vmem:[#allocation2 + $0x2b8] sm:$0xff] }
 0x301   : > { %9704 = vmatprep.subr.bf16.mxu0 %v9703_v52  ;;  %v8639_v52 = vld [vmem:[#allocation2 + $0x620] sm:$0xff] }
 0x303   : > { %9578 = vmatpush1.bf16.msra.mxu1 %v9577_v15  ;;  %v8518_v15 = vld [vmem:[#allocation2 + $0x258] sm:$0xff] }
 0x304   : > { %9580 = vmatprep.subr.bf16.mxu1 %v9579_v53  ;;  %9706 = vmatpush1.bf16.msra.mxu0 %v9705_v38  ;;  %v9709_v53 = vpack.c.bf16 %v8637_v5, %v8635_v3  ;;  %v8646_v38 = vld [vmem:[#allocation2 + $0x658] sm:$0xff]  ;;  %v8656_v3 = vld [vmem:[#allocation2 + $0x6a8] sm:$0xff] }
 0x305   : > { %9708 = vmatprep.subr.bf16.mxu0 %v9707_v63  ;;  %v8526_v63 = vld [vmem:[#allocation2 + $0x298] sm:$0xff] }
 0x306   : > { %v8658_v5 = vld [vmem:[#allocation2 + $0x6b8] sm:$0x7] }
 0x33f   : > { %v9930_v6 = vpop.permute.xlu1 %9929 }
 0x340   : > { %v9932_v21 = vunpack.i.h.bf16 %v9930_v6  ;;  %v9931_v22 = vunpack.i.l.bf16 %v9930_v6 }
 0x342   : > { %v8383_v23 = vsel %vm241_vm1, %v9931_v22, %v9932_v21 }
 0x343   : > { %v9940_v35 = vpop.permute.xlu0 %9939  ;;  %v9935_v40 = vpop.permute.xlu1 %9934  ;;  %v8396_v56 = vmax.f32 %v8355_v37, %v8383_v23  ;;  %v8517_v23 = vld [vmem:[#allocation2 + $0x250] sm:$0xff] }
 0x344   : > { %v9942_v31 = vunpack.i.h.bf16 %v9940_v35  ;;  %v9941_v32 = vunpack.i.l.bf16 %v9940_v35  ;;  %v9937_v33 = vunpack.i.h.bf16 %v9935_v40  ;;  %v9936_v36 = vunpack.i.l.bf16 %v9935_v40 }
 0x345   : > { %v9587_v40 = vpack.c.bf16 %v8518_v15, %v8516_v8  ;;  %v9589_v39 = vpack.c.bf16 %v8517_v23, %v8515_v51 }
 0x346   : > { %v8382_v42 = vsel %vm241_vm1, %v9937_v33, %v9931_v22  ;;  %v8384_v44 = vsel %vm241_vm1, %v9932_v21, %v9936_v36  ;;  %v8386_v61 = vsel %vm241_vm1, %v9942_v31, %v9941_v32  ;;  %v8385_v50 = vsel %vm241_vm1, %v9936_v36, %v9942_v31  ;;  %v8640_v21 = vld [vmem:[#allocation2 + $0x628] sm:$0xff]  ;;  %v8642_v22 = vld [vmem:[#allocation2 + $0x638] sm:$0xff] }
 0x347   : > { %v8395_v58 = vmax.f32 %v8354_v9, %v8382_v42  ;;  %v11284_v59 = vmax.f32 %v8356_v43, %v8384_v44  ;;  %v8381_v2 = vpop.permute.xlu1 %8380  ;;  %v8399_v28 = vmax.f32 %v8358_v57, %v8386_v61  ;;  %v8398_v54 = vmax.f32 %v8357_v55, %v8385_v50  ;;  %v8522_v33 = vld [vmem:[#allocation2 + $0x278] sm:$0xff]  ;;  %v8644_v36 = vld [vmem:[#allocation2 + $0x648] sm:$0xff]  ;;  %v8519_v44 = vld [vmem:[#allocation2 + $0x260] sm:$0xff] }
 0x348   : > { %v8387_v62 = vsel %vm241_vm1, %v9941_v32, %v8381_v2  ;;  %v11296_v37 = vmax.f32 %v8360_v16, %v8381_v2  ;;  %v8509_v16 = vld [vmem:[#allocation2 + $0x210] sm:$0xff]  ;;  %v9711_v32 = vpack.c.bf16 %v8642_v22, %v8640_v21  ;;  %v9713_v42 = vpack.c.bf16 %v8641_v7, %v8639_v52  ;;  %v8643_v2 = vld [vmem:[#allocation2 + $0x640] sm:$0xff]  ;;  %vm9728_vm1 = vmpackc.low %vm252_vm2, %vm10026_vm0 }
 0x349   : > { %v8400_v11 = vmax.f32 %v8359_v60, %v8387_v62  ;;  %8409 = vrot.lane.b32.xlu1 %v8395_v58, %s10010_s17  ;;  %v9943_v25 = vpack.i.bf16 %v11284_v59, %v8396_v56  ;;  %v9581_v18 = vpack.c.bf16 %v8509_v16, %v8507_v10  ;;  %v8645_v61 = vld [vmem:[#allocation2 + $0x650] sm:$0xff]  ;;  %v8524_v62 = vld [vmem:[#allocation2 + $0x288] sm:$0xff]  ;;  %v8523_v50 = vld [vmem:[#allocation2 + $0x280] sm:$0xff]  ;;  %v9727_v21 = vpack.c.bf16 %v8658_v5, %v8656_v3 }
 0x34a   : > { %v8647_v10 = vld [vmem:[#allocation2 + $0x660] sm:$0xff]  ;;  %v8649_v16 = vld [vmem:[#allocation2 + $0x670] sm:$0xff]  ;;  %v8540_v7 = vld [vmem:[#allocation2 + $0x308] sm:$0xff]  ;;  %vm8954_vm2 = vcmask 553984  }
 0x34b   : > { %9944 = vrot.lane.b32.xlu0 %v9943_v25, %s10010_s17  ;;  %v9948_v43 = vpack.i.bf16 %v8399_v28, %v8400_v11  ;;  %v8650_v25 = vld [vmem:[#allocation2 + $0x678] sm:$0xff]  ;;  %v8533_v22 = vld [vmem:[#allocation2 + $0x2d0] sm:$0xff]  ;;  %v8568_v3 = vld [vmem:[#allocation2 + $0x3e8] sm:$0xff] }
 0x34c   : > { %v8537_v52 = vld [vmem:[#allocation2 + $0x2f0] sm:$0xff]  ;;  %v8570_v5 = vld [vmem:[#allocation2 + $0x3f8] sm:$0xff] }
 0x34d   : > { %8421 = vrot.lane.b32.xlu1 %v11296_v37, %s10010_s17 }
 0x34f   : > { %9949 = vrot.lane.b32.xlu0 %v9948_v43, %s10010_s17  ;;  %v9717_v43 = vpack.c.bf16 %v8645_v61, %v8643_v2  ;;  %v8548_v2 = vld [vmem:[#allocation2 + $0x348] sm:$0xff]  ;;  %v8550_v61 = vld [vmem:[#allocation2 + $0x358] sm:$0xff] }
 0x353   : > { %8415 = vrot.lane.b32.xlu0 %v8398_v54, %s10010_s17 }
 0x3bb   : > { %v8410_v49 = vpop.permute.xlu1 %8409 }
 0x3bd   : > { %v11306_v57 = vpop.permute.xlu0 %9944 }
 0x3be   : > { %v9947_v60 = vunpack.i.h.bf16 %v11306_v57  ;;  %v9946_v9 = vunpack.i.l.bf16 %v11306_v57 }
 0x3bf   : > { %v11314_v6 = vpop.permute.xlu1 %8421 }
 0x3c0   : > { %v8423_v4 = vsel %vm1859_vm7, %v8410_v49, %v9946_v9  ;;  %v8424_v34 = vsel %vm1859_vm7, %v9946_v9, %v9947_v60  ;;  %v9595_v49 = vpack.c.bf16 %v8526_v63, %v8524_v62  ;;  %v9619_v63 = vpack.c.bf16 %v8550_v61, %v8548_v2 }
 0x3c1   : > { %v8436_v55 = vmax.f32 %v8395_v58, %v8423_v4  ;;  %v9950_v14 = vpop.permute.xlu0 %9949  ;;  %v8437_v17 = vmax.f32 %v8396_v56, %v8424_v34  ;;  %v9591_v56 = vpack.c.bf16 %v8522_v33, %v8520_v30  ;;  %v9715_v58 = vpack.c.bf16 %v8646_v38, %v8644_v36  ;;  %v8652_v4 = vld [vmem:[#allocation2 + $0x688] sm:$0xff]  ;;  %v8654_v34 = vld [vmem:[#allocation2 + $0x698] sm:$0xff]  ;;  %v8539_v36 = vld [vmem:[#allocation2 + $0x300] sm:$0xff] }
 0x3c2   : > { %v9952_v26 = vunpack.i.h.bf16 %v9950_v14  ;;  %v9951_v1 = vunpack.i.l.bf16 %v9950_v14  ;;  %v8527_v14 = vld [vmem:[#allocation2 + $0x2a0] sm:$0xff]  ;;  %v9723_v24 = vpack.c.bf16 %v8654_v34, %v8652_v4  ;;  %v8542_v30 = vld [vmem:[#allocation2 + $0x318] sm:$0xff]  ;;  %v8541_v38 = vld [vmem:[#allocation2 + $0x310] sm:$0xff] }
 0x3c3   : > { %8733 = vmatprep.mubr.f32.mxu1 %v8437_v17  ;;  %v8529_v17 = vld [vmem:[#allocation2 + $0x2b0] sm:$0xff]  ;;  %v9611_v33 = vpack.c.bf16 %v8542_v30, %v8540_v7  ;;  %v8560_v4 = vld [vmem:[#allocation2 + $0x3a8] sm:$0xff]  ;;  %v8562_v34 = vld [vmem:[#allocation2 + $0x3b8] sm:$0xff] }
 0x3c4   : > { %v8427_v19 = vsel %vm1859_vm7, %v9952_v26, %v9951_v1  ;;  %8734 = vmatmul.mubr.f32.vlgmr.msra.gmra.mrb[48].mxu1 %v8436_v55  ;;  %v8428_v20 = vsel %vm1859_vm7, %v9951_v1, %v11314_v6  ;;  %v8653_v1 = vld [vmem:[#allocation2 + $0x690] sm:$0xff]  ;;  %v9601_v8 = vpack.c.bf16 %v8529_v17, %v8527_v14  ;;  %v8559_v14 = vld [vmem:[#allocation2 + $0x3a0] sm:$0xff] }
 0x3c5   : > { %v8440_v41 = vmax.f32 %v8399_v28, %v8427_v19  ;;  %9582 = vmatpush1.bf16.msra.mxu1 %v9581_v18  ;;  %v11319_v45 = vpop.permute.xlu0 %8415  ;;  %v8441_v48 = vmax.f32 %v8400_v11, %v8428_v20  ;;  %v8648_v11 = vld [vmem:[#allocation2 + $0x668] sm:$0xff]  ;;  %v9593_v28 = vpack.c.bf16 %v8521_v46, %v8519_v44  ;;  %v9599_v18 = vpack.c.bf16 %v8530_v13, %v8528_v12  ;;  %v8531_v19 = vld [vmem:[#allocation2 + $0x2c0] sm:$0xff]  ;;  %v8557_v13 = vld [vmem:[#allocation2 + $0x390] sm:$0xff] }
 0x3c6   : > { %v8426_v35 = vsel %vm1859_vm7, %v11319_v45, %v9952_v26  ;;  %9584 = vmatprep.subr.bf16.mxu1 %v9583_v27  ;;  %v9719_v9 = vpack.c.bf16 %v8650_v25, %v8648_v11  ;;  %v8651_v26 = vld [vmem:[#allocation2 + $0x680] sm:$0xff]  ;;  %v8532_v27 = vld [vmem:[#allocation2 + $0x2c8] sm:$0xff]  ;;  %v9605_v51 = vpack.c.bf16 %v8533_v22, %v8531_v19  ;;  %v9613_v44 = vpack.c.bf16 %v8541_v38, %v8539_v36  ;;  %v8554_v25 = vld [vmem:[#allocation2 + $0x378] sm:$0xff] }
 0x3c7   : > { %v8439_v31 = vmax.f32 %v8398_v54, %v8426_v35  ;;  %8875 = vmatprep.mubr.f32.mxu0 %v8441_v48  ;;  %v8525_v54 = vld [vmem:[#allocation2 + $0x290] sm:$0xff]  ;;  %v9725_v15 = vpack.c.bf16 %v8653_v1, %v8651_v26  ;;  %v9603_v20 = vpack.c.bf16 %v8534_v29, %v8532_v27  ;;  %v8552_v11 = vld [vmem:[#allocation2 + $0x368] sm:$0xff]  ;;  %v8555_v12 = vld [vmem:[#allocation2 + $0x380] sm:$0xff]  ;;  %v8425_v22 = vsel %vm1859_vm7, %v9947_v60, %v11319_v45 }
 0x3c8   : > { %8876 = vmatmul.mubr.f32.vlgmr.msra.gmra.mrb[10].mxu0 %v8440_v41  ;;  %v9597_v55 = vpack.c.bf16 %v8525_v54, %v8523_v50  ;;  %v8655_v41 = vld [vmem:[#allocation2 + $0x6a0] sm:$0xff]  ;;  %v8657_v48 = vld [vmem:[#allocation2 + $0x6b0] sm:$0x7] }
 0x3c9   : > { %9586 = vmatpush1.bf16.msra.mxu1 %v9585_v47  ;;  %9710 = vmatpush1.bf16.msra.mxu0 %v9709_v53  ;;  %v8536_v47 = vld [vmem:[#allocation2 + $0x2e8] sm:$0xff]  ;;  %v8538_v53 = vld [vmem:[#allocation2 + $0x2f8] sm:$0xff]  ;;  %v9730_v23 = vpack.c.bf16 %v8657_v48, %v8655_v41  ;;  %v8551_v50 = vld [vmem:[#allocation2 + $0x360] sm:$0xff]  ;;  %v8438_v41 = vmax.f32 %v11284_v59, %v8425_v22 }
 0x3ca   : > { %8804 = vmatprep.mubr.f32.mxu1 %v8439_v31  ;;  %9588 = vmatprep.subr.bf16.mxu1 %v9587_v40  ;;  %v9607_v35 = vpack.c.bf16 %v8538_v53, %v8536_v47  ;;  %v8535_v40 = vld [vmem:[#allocation2 + $0x2e0] sm:$0xff]  ;;  %v8553_v54 = vld [vmem:[#allocation2 + $0x370] sm:$0xff] }
 0x3cb   : > { %9712 = vmatprep.subr.bf16.mxu0 %v9711_v32  ;;  %8946 = vmatprep.mubr.f32.mxu0 %v10004_v0  ;;  %v9721_v0 = vpack.c.bf16 %v8649_v16, %v8647_v10  ;;  %v9609_v31 = vpack.c.bf16 %v8537_v52, %v8535_v40  ;;  %v8442_v32 = vmax.f32 %v11296_v37, %v11314_v6  ;;  %v8547_v37 = vld [vmem:[#allocation2 + $0x340] sm:$0xff]  ;;  %v8549_v6 = vld [vmem:[#allocation2 + $0x350] sm:$0xff] }
 0x3cc   : > { %v9625_v10 = vpack.c.bf16 %v8553_v54, %v8551_v50  ;;  %v8561_v17 = vld [vmem:[#allocation2 + $0x3b0] sm:$0xff]  ;;  %v8563_v27 = vld [vmem:[#allocation2 + $0x3c0] sm:$0xff] }
 0x3cd   : > { %9590 = vmatpush1.bf16.msra.mxu1 %v9589_v39  ;;  %9714 = vmatpush1.bf16.msra.mxu0 %v9713_v42  ;;  %v8544_v39 = vld [vmem:[#allocation2 + $0x328] sm:$0xff]  ;;  %v8546_v42 = vld [vmem:[#allocation2 + $0x338] sm:$0xff]  ;;  %v9633_v26 = vpack.c.bf16 %v8561_v17, %v8559_v14  ;;  %v8565_v29 = vld [vmem:[#allocation2 + $0x3d0] sm:$0xff] }
 0x3ce   : > { %9592 = vmatprep.subr.bf16.mxu1 %v9591_v56  ;;  %9716 = vmatprep.subr.bf16.mxu0 %v9715_v58  ;;  %v9615_v46 = vpack.c.bf16 %v8546_v42, %v8544_v39  ;;  %v8543_v56 = vld [vmem:[#allocation2 + $0x320] sm:$0xff]  ;;  %v8545_v58 = vld [vmem:[#allocation2 + $0x330] sm:$0xff] }
 0x3cf   : > { %v9617_v62 = vpack.c.bf16 %v8545_v58, %v8543_v56  ;;  %v8567_v19 = vld [vmem:[#allocation2 + $0x3e0] sm:$0xff] }
 0x3d1   : > { %9594 = vmatpush1.bf16.msra.mxu1 %v9593_v28  ;;  %9718 = vmatpush1.bf16.msra.mxu0 %v9717_v43  ;;  %v9621_v28 = vpack.c.bf16 %v8549_v6, %v8547_v37  ;;  %v9623_v43 = vpack.c.bf16 %v8554_v25, %v8552_v11 }
 0x3d2   : > { %9596 = vmatprep.subr.bf16.mxu1 %v9595_v49  ;;  %9720 = vmatprep.subr.bf16.mxu0 %v9719_v9  ;;  %v8556_v49 = vld [vmem:[#allocation2 + $0x388] sm:$0xff]  ;;  %v8558_v9 = vld [vmem:[#allocation2 + $0x398] sm:$0xff] }
 0x3d3   : > { %v9627_v16 = vpack.c.bf16 %v8558_v9, %v8556_v49 }
 0x3d5   : > { %9598 = vmatpush1.bf16.msra.mxu1 %v9597_v55  ;;  %9722 = vmatpush1.bf16.msra.mxu0 %v9721_v0  ;;  %v9629_v55 = vpack.c.bf16 %v8557_v13, %v8555_v12  ;;  %v9631_v0 = vpack.c.bf16 %v8562_v34, %v8560_v4 }
 0x3d6   : > { %9600 = vmatprep.subr.bf16.mxu1 %v9599_v18  ;;  %9724 = vmatprep.subr.bf16.mxu0 %v9723_v24  ;;  %v8564_v18 = vld [vmem:[#allocation2 + $0x3c8] sm:$0xff]  ;;  %v8566_v24 = vld [vmem:[#allocation2 + $0x3d8] sm:$0xff] }
 0x3d7   : > { %v9635_v1 = vpack.c.bf16 %v8566_v24, %v8564_v18 }
 0x3d9   : > { %9602 = vmatpush1.bf16.msra.mxu1 %v9601_v8  ;;  %9726 = vmatpush1.bf16.msra.mxu0 %v9725_v15  ;;  %v9637_v8 = vpack.c.bf16 %v8565_v29, %v8563_v27  ;;  %v9639_v15 = vpack.c.bf16 %v8570_v5, %v8568_v3 }
 0x3da   : > { %9604 = vmatprep.subr.bf16.mxu1 %v9603_v20  ;;  %9729 = vmatprep.subr.msk.bf16.mxu0 %vm9728_vm1, %v9727_v21  ;;  %v8569_v20 = vld [vmem:[#allocation2 + $0x3f0] sm:$0xff] }
 0x3db   : > { %v9641_v21 = vpack.c.bf16 %v8569_v20, %v8567_v19 }
 0x3dd   : > { %9606 = vmatpush1.bf16.msra.mxu1 %v9605_v51  ;;  %9732 = vmatpush1.bf16.msk.msra.mxu0 %vm9728_vm1, %v9730_v23 }
 0x3de   : > { %9608 = vmatprep.subr.bf16.mxu1 %v9607_v35 }
 0x3e0   : > { %9335 = vmatmul.mubr.msk.f32.vlgmr.msra.gmra.mrb[10].mxu0 %vm8659_vm3, %v8442_v32 }
 0x3e1   : > { %9610 = vmatpush1.bf16.msra.mxu1 %v9609_v31 }
 0x3e2   : > { %9612 = vmatprep.subr.bf16.mxu1 %v9611_v33 }
 0x3e5   : > { %9614 = vmatpush1.bf16.msra.mxu1 %v9613_v44 }
 0x3e6   : > { %9616 = vmatprep.subr.bf16.mxu1 %v9615_v46 }
 0x3e9   : > { %9618 = vmatpush1.bf16.msra.mxu1 %v9617_v62 }
 0x3ea   : > { %9620 = vmatprep.subr.bf16.mxu1 %v9619_v63 }
 0x3ed   : > { %9622 = vmatpush1.bf16.msra.mxu1 %v9621_v28 }
 0x3ee   : > { %9624 = vmatprep.subr.bf16.mxu1 %v9623_v43 }
 0x3f1   : > { %9626 = vmatpush1.bf16.msra.mxu1 %v9625_v10 }
 0x3f2   : > { %9628 = vmatprep.subr.bf16.mxu1 %v9627_v16 }
 0x3f5   : > { %9630 = vmatpush1.bf16.msra.mxu1 %v9629_v55 }
 0x3f6   : > { %9632 = vmatprep.subr.bf16.mxu1 %v9631_v0 }
 0x3f9   : > { %9634 = vmatpush1.bf16.msra.mxu1 %v9633_v26 }
 0x3fa   : > { %9636 = vmatprep.subr.bf16.mxu1 %v9635_v1 }
 0x3fd   : > { %9638 = vmatpush1.bf16.msra.mxu1 %v9637_v8 }
 0x3fe   : > { %9640 = vmatprep.subr.bf16.mxu1 %v9639_v15 }
 0x401   : > { %9642 = vmatpush1.bf16.msra.mxu1 %v9641_v21 }
 0x404   : > { %8805 = vmatmul.mubr.f32.vlgmr.msra.gmra.mrb[48].mxu1 %v8438_v41 }
 0x4b3   : > { %v8948_v48 = vpop.f32.mrb[10].mxu0 }
 0x4b4   : > { %v8950_v47 = vpop.f32.mrb[11].mxu0 }
 0x4d7   : > { %v8806_v53 = vpop.f32.mrb[48].mxu1 }
 0x4d8   : > { %v9735_v51 = vadd.f32 %v8948_v48, %v8806_v53  ;;  %v8808_v23 = vpop.f32.mrb[49].mxu1 }
 0x4d9   : > { %v9736_v35 = vadd.f32 %v8950_v47, %v8808_v23 }
 0x4da   : > { %8953 = vst [vmem:[%s212_s23] sm:$0x3f] %v9735_v51 }
 0x4db   : > { %8955 = vst.msk [vmem:[%s212_s23 + $0x8] sm:$0x3f] %vm8954_vm2, %v9736_v35 }
 0x4dc PF: > { %s15_s15 = sadd.s32 1, %s9999_s15  }
 0x4dd   : > { %p12_p3 = scmp.ge.s32.totalorder %s15_s15, 4  }
 0x4df   :  { %14 = sbr.rel (!%p12_p3) target bundleno = 1 (0x1), region = 95 }
 0x4e6   :  { %8977 = vsyncpa [#allocation3], 1 }
 0x4e7   :  { %8979 = vsyncpa [#allocation3 + $0x1], 1 }

</bundles_post_ra>
